<compile_context>
chip_gen: v7x
topology: tpu7x:2x2x1
jax: 0.10.0
libtpu: 0.0.40
codegen_flags: <defaults>
</compile_context>

<pallas_src>
import functools

import jax
import jax.numpy as jnp
from jax import lax
from jax.experimental import pallas as pl
from jax.experimental.pallas import tpu as pltpu


# ----------------------------- fused Pallas kernel ---------------------------

def _fused_block_kernel(x_ref, xph_ref, emb_ref, wd_ref, wu_ref,       # inputs
                        out1_ref, lx_ref, bnph_ref,                    # outputs
                        rcpad_ref,                                     # scratch
                        *, n, cin, oh, ow, fan_in):
    # ---- skip path: in-place LeakyReLU(0.2) on x (NCHW, elementwise) -------
    xv = x_ref[...]
    lx_ref[...] = jnp.where(xv >= 0.0, xv, 0.2 * xv)

    # ---- down: LeakyReLU + Conv2d(4x4, stride 2, pad 1, no bias) -----------
    # xph: (4*n, oh+1, ow+1, cin) zero-padded, parity-phase-decomposed input.
    # leaky_relu(0) == 0, so activating after padding is equivalent.
    lxph = []
    for ph in range(4):
        v = xph_ref[ph * n:(ph + 1) * n, :, :, :]          # (n, oh+1, ow+1, cin)
        lxph.append(jnp.where(v >= 0.0, v, 0.2 * v))

    taps = []
    for kh in range(4):
        for kw in range(4):
            ph = (kh % 2) * 2 + (kw % 2)
            ah, aw = kh // 2, kw // 2
            taps.append(lxph[ph][:, ah:ah + oh, aw:aw + ow, :])   # (n, oh, ow, cin)
    patches = jnp.concatenate(taps, axis=-1)                      # (n, oh, ow, 16*cin)
    patches = patches.reshape(n * oh * ow, 16 * cin)              # rows = (n, oh, ow)
    d = jnp.dot(patches, wd_ref[...],
                preferred_element_type=jnp.float32)               # (n*oh*ow, inner_nc)

    # ---- bottom: concat embeddings, then in-place ReLU (== out1) -----------
    rc = jnp.maximum(jnp.concatenate([d, emb_ref[...]], axis=-1), 0.0)
    out1_ref[...] = rc                                            # (n*oh*ow, fan_in)

    # ---- up: ConvTranspose2d(4x4, s2, p1) via sub-pixel 2x2 convs ----------
    rcpad_ref[...] = jnp.zeros_like(rcpad_ref)
    rcpad_ref[:, 1:oh + 1, 1:ow + 1, :] = rc.reshape(n, oh, ow, fan_in)
    rcp = rcpad_ref[...]                                          # (n, oh+2, ow+2, fan_in)

    # input-row offsets hit by output parity phase r (paired with kernel rows
    # (1,3) for r==0 and (0,2) for r==1 - see weight repacking below).
    offs = ((0, -1), (1, 0))
    ups = []
    for r in range(2):
        for s in range(2):
            tps = []
            for dh in offs[r]:
                for dw in offs[s]:
                    tps.append(rcp[:, 1 + dh:1 + dh + oh, 1 + dw:1 + dw + ow, :])
            a = jnp.concatenate(tps, axis=-1).reshape(n * oh * ow, 4 * fan_in)
            ups.append(jnp.dot(a, wu_ref[r * 2 + s],
                               preferred_element_type=jnp.float32))   # (n*oh*ow, outer_nc)

    # ---- upnorm: BatchNorm2d, training-mode batch stats (gamma=1, beta=0) --
    cnt = 4.0 * n * oh * ow
    tot = ups[0] + ups[1] + ups[2] + ups[3]
    mean = tot.sum(axis=0, keepdims=True) / cnt
    sq = ((ups[0] - mean) ** 2 + (ups[1] - mean) ** 2 +
          (ups[2] - mean) ** 2 + (ups[3] - mean) ** 2)
    var = sq.sum(axis=0, keepdims=True) / cnt
    scale = lax.rsqrt(var + 1e-5)
    for p in range(4):
        bnph_ref[p] = (ups[p] - mean) * scale


# --------------------------- tiny host-side plumbing -------------------------

def _phase_decompose(x_nchw):
    """Zero-pad by 1 and split H/W parity -> (4*N, H/2+1, W/2+1, C), NHWC."""
    n, c, h, w = x_nchw.shape
    xp = jnp.pad(x_nchw, ((0, 0), (0, 0), (1, 1), (1, 1)))
    xp = jnp.transpose(xp, (0, 2, 3, 1))                          # (n, h+2, w+2, c)
    xp = xp.reshape(n, (h + 2) // 2, 2, (w + 2) // 2, 2, c)       # (n, i, hp, j, wp, c)
    xp = jnp.transpose(xp, (2, 4, 0, 1, 3, 5))                    # (hp, wp, n, i, j, c)
    return xp.reshape(4 * n, (h + 2) // 2, (w + 2) // 2, c)


def _down_weight_matrix(w_down):
    """Conv2d weight (Cout, Cin, 4, 4) -> (16*Cin, Cout), rows = (kh, kw, ci)."""
    cout, cin, kh, kw = w_down.shape
    return jnp.transpose(w_down, (2, 3, 1, 0)).reshape(kh * kw * cin, cout)


_KH_FOR_PHASE = ((1, 3), (0, 2))   # kernel rows that contribute to output phase r


def _up_phase_weight_matrices(w_up):
    """ConvTranspose2d weight (Cin, Cout, 4, 4) -> (4, 4*Cin, Cout) sub-pixel mats."""
    mats = []
    for r in range(2):
        for s in range(2):
            rows = [w_up[:, :, kh, kw]
                    for kh in _KH_FOR_PHASE[r] for kw in _KH_FOR_PHASE[s]]
            mats.append(jnp.concatenate(rows, axis=0))            # (4*Cin, Cout)
    return jnp.stack(mats, axis=0)


@jax.jit
def unet_innermost_forward(x, emb, w_down, w_up):
    """x: (N, input_nc, H, W); emb: (N, embed_nc, H/2, W/2);
    w_down: (inner_nc, input_nc, 4, 4); w_up: (fan_in, outer_nc, 4, 4)."""
    n, cin, h, w = x.shape
    embed_nc = emb.shape[1]
    fan_in, outer_nc = w_up.shape[0], w_up.shape[1]
    inner_nc = w_down.shape[0]
    oh, ow = h // 2, w // 2

    xf = x.astype(jnp.float32)
    xph = _phase_decompose(xf)                                          # (4n, oh+1, ow+1, cin)
    emb_rows = jnp.transpose(emb.astype(jnp.float32),
                             (0, 2, 3, 1)).reshape(n * oh * ow, embed_nc)
    wd_mat = _down_weight_matrix(w_down.astype(jnp.float32))            # (16*cin, inner_nc)
    wu_mat = _up_phase_weight_matrices(w_up.astype(jnp.float32))        # (4, 4*fan_in, outer_nc)

    kernel = functools.partial(_fused_block_kernel, n=n, cin=cin, oh=oh, ow=ow,
                               fan_in=fan_in)

    out_shape = (
        jax.ShapeDtypeStruct((n * oh * ow, fan_in), jnp.float32),       # rc  (out1 rows)
        jax.ShapeDtypeStruct((n, cin, h, w), jnp.float32),              # leaky_relu(x), NCHW
        jax.ShapeDtypeStruct((4, n * oh * ow, outer_nc), jnp.float32),  # bn, phase-decomposed
    )

    def full_spec(shape):
        nd = len(shape)
        return pl.BlockSpec(shape, lambda i, nd=nd: (0,) * nd)

    out1_rows, lx_nchw, bn_ph = pl.pallas_call(
        kernel,
        out_shape=out_shape,
        grid=(1,),
        in_specs=[full_spec(xf.shape), full_spec(xph.shape),
                  full_spec(emb_rows.shape), full_spec(wd_mat.shape),
                  full_spec(wu_mat.shape)],
        out_specs=tuple(full_spec(s.shape) for s in out_shape),
        scratch_shapes=[pltpu.VMEM((n, oh + 2, ow + 2, fan_in), jnp.float32)],
        compiler_params=pltpu.CompilerParams(
            dimension_semantics=("arbitrary",)),
    )(xf, xph, emb_rows, wd_mat, wu_mat)

    # Tiny (<30 KB) layout plumbing back to NCHW.
    out1 = jnp.transpose(out1_rows.reshape(n, oh, ow, fan_in), (0, 3, 1, 2))
    bn = bn_ph.reshape(2, 2, n, oh, ow, outer_nc)                 # (r, s, n, a, b, co)
    bn = jnp.transpose(bn, (2, 5, 3, 0, 4, 1)).reshape(n, outer_nc, h, w)
    out2 = jnp.concatenate([lx_nchw, bn], axis=1)
    return out1, out2


# ----------------------------- pure-JAX reference ----------------------------

def reference_forward(x, emb, w_down, w_up):
    lx = jnp.where(x >= 0, x, 0.2 * x)
    d = lax.conv_general_dilated(lx, w_down, (2, 2), ((1, 1), (1, 1)),
                                 dimension_numbers=("NCHW", "OIHW", "NCHW"))
    cat = jnp.concatenate([d, emb], axis=1)
    rc = jnp.maximum(cat, 0.0)
    w_eq = jnp.transpose(jnp.flip(w_up, axis=(2, 3)), (1, 0, 2, 3))
    up = lax.conv_general_dilated(rc, w_eq, (1, 1), ((2, 2), (2, 2)),
                                  lhs_dilation=(2, 2),
                                  dimension_numbers=("NCHW", "OIHW", "NCHW"))
    mean = jnp.mean(up, axis=(0, 2, 3), keepdims=True)
    var = jnp.mean((up - mean) ** 2, axis=(0, 2, 3), keepdims=True)
    bn = (up - mean) * lax.rsqrt(var + 1e-5)
    return rc, jnp.concatenate([lx, bn], axis=1)


# ----------------------------------- main ------------------------------------

if __name__ == "__main__":
    # innermost block config
    input_nc = outer_nc = 4
    inner_nc = 8
    embed_nc = 4
    fan_in = inner_nc + embed_nc
    Nb, Hs, Ws = 2, 16, 16

    key = jax.random.PRNGKey(0)
    kx, ke, kd, ku = jax.random.split(key, 4)
    x = jax.random.normal(kx, (Nb, input_nc, Hs, Ws), jnp.float32)
    emb = jax.random.normal(ke, (Nb, embed_nc, Hs // 2, Ws // 2), jnp.float32)
    # deterministic synthetic weights (PyTorch shape conventions)
    w_down = 0.1 * jax.random.normal(kd, (inner_nc, input_nc, 4, 4), jnp.float32)
    w_up = 0.1 * jax.random.normal(ku, (fan_in, outer_nc, 4, 4), jnp.float32)

    out1, out2 = unet_innermost_forward(x, emb, w_down, w_up)
    jax.block_until_ready((out1, out2))

    ref1, ref2 = reference_forward(x, emb, w_down, w_up)
    assert out1.shape == (Nb, fan_in, Hs // 2, Ws // 2), out1.shape
    assert out2.shape == (Nb, input_nc + outer_nc, Hs, Ws), out2.shape
    assert jnp.allclose(out1, ref1, atol=1e-3, rtol=1e-3)
    assert jnp.allclose(out2, ref2, atol=1e-3, rtol=1e-3)

    print("KERNEL_OK")
</pallas_src>

<mosaic_0001>
module attributes {stable_mosaic.version = 11 : i64} {
  func.func @_fused_block_kernel(%arg0: i32, %arg1: memref<2x4x16x16xf32, #tpu.memory_space<vmem>>, %arg2: memref<8x9x9x4xf32, #tpu.memory_space<vmem>>, %arg3: memref<128x4xf32, #tpu.memory_space<vmem>>, %arg4: memref<64x8xf32, #tpu.memory_space<vmem>>, %arg5: memref<4x48x4xf32, #tpu.memory_space<vmem>>, %arg6: memref<128x12xf32, #tpu.memory_space<vmem>>, %arg7: memref<2x4x16x16xf32, #tpu.memory_space<vmem>>, %arg8: memref<4x128x4xf32, #tpu.memory_space<vmem>>, %arg9: memref<2x10x10x12xf32, #tpu.memory_space<vmem>>) attributes {dimension_semantics = [#tpu.dimension_semantics<arbitrary>], iteration_bounds = array<i64: 1>, scalar_prefetch = 0 : i64, scratch_operands = 1 : i64, tpu.core_type = #tpu.core_type<tc>, window_params = [{pipeline_mode = #tpu.pipeline_mode<synchronous>, transform_indices = @transform_0, window_bounds = array<i64: 2, 4, 16, 16>}, {pipeline_mode = #tpu.pipeline_mode<synchronous>, transform_indices = @transform_1, window_bounds = array<i64: 8, 9, 9, 4>}, {pipeline_mode = #tpu.pipeline_mode<synchronous>, transform_indices = @transform_2, window_bounds = array<i64: 128, 4>}, {pipeline_mode = #tpu.pipeline_mode<synchronous>, transform_indices = @transform_3, window_bounds = array<i64: 64, 8>}, {pipeline_mode = #tpu.pipeline_mode<synchronous>, transform_indices = @transform_4, window_bounds = array<i64: 4, 48, 4>}, {pipeline_mode = #tpu.pipeline_mode<synchronous>, transform_indices = @transform_5, window_bounds = array<i64: 128, 12>}, {pipeline_mode = #tpu.pipeline_mode<synchronous>, transform_indices = @transform_6, window_bounds = array<i64: 2, 4, 16, 16>}, {pipeline_mode = #tpu.pipeline_mode<synchronous>, transform_indices = @transform_7, window_bounds = array<i64: 4, 128, 4>}]} {
    %c0 = arith.constant 0 : index
    %c0_0 = arith.constant 0 : index
    %c0_1 = arith.constant 0 : index
    %c0_2 = arith.constant 0 : index
    %0 = vector.load %arg1[%c0, %c0_0, %c0_1, %c0_2] : memref<2x4x16x16xf32, #tpu.memory_space<vmem>>, vector<2x4x16x16xf32>
    %cst = arith.constant 0.000000e+00 : f32
    %1 = vector.broadcast %cst : f32 to vector<2x4x16x16xf32>
    %2 = arith.cmpf oge, %0, %1 : vector<2x4x16x16xf32>
    %cst_3 = arith.constant 2.000000e-01 : f32
    %3 = vector.broadcast %cst_3 : f32 to vector<2x4x16x16xf32>
    %4 = arith.mulf %3, %0 : vector<2x4x16x16xf32>
    %5 = arith.select %2, %0, %4 : vector<2x4x16x16xi1>, vector<2x4x16x16xf32>
    %c0_4 = arith.constant 0 : index
    %c0_5 = arith.constant 0 : index
    %c0_6 = arith.constant 0 : index
    %c0_7 = arith.constant 0 : index
    %6 = vector.load %arg7[%c0_4, %c0_5, %c0_6, %c0_7] : memref<2x4x16x16xf32, #tpu.memory_space<vmem>>, vector<2x4x16x16xf32>
    tpu.vector_store %arg7[%c0_4, %c0_5, %c0_6, %c0_7], %5 {strides = array<i32>} : memref<2x4x16x16xf32, #tpu.memory_space<vmem>>, vector<2x4x16x16xf32>,
    %c0_8 = arith.constant 0 : index
    %c0_9 = arith.constant 0 : index
    %c0_10 = arith.constant 0 : index
    %c0_11 = arith.constant 0 : index
    %7 = vector.load %arg2[%c0_8, %c0_9, %c0_10, %c0_11] : memref<8x9x9x4xf32, #tpu.memory_space<vmem>>, vector<2x9x9x4xf32>
    %cst_12 = arith.constant 0.000000e+00 : f32
    %8 = vector.broadcast %cst_12 : f32 to vector<2x9x9x4xf32>
    %9 = arith.cmpf oge, %7, %8 : vector<2x9x9x4xf32>
    %cst_13 = arith.constant 2.000000e-01 : f32
    %10 = vector.broadcast %cst_13 : f32 to vector<2x9x9x4xf32>
    %11 = arith.mulf %10, %7 : vector<2x9x9x4xf32>
    %12 = arith.select %9, %7, %11 : vector<2x9x9x4xi1>, vector<2x9x9x4xf32>
    %c2 = arith.constant 2 : index
    %c0_14 = arith.constant 0 : index
    %c0_15 = arith.constant 0 : index
    %c0_16 = arith.constant 0 : index
    %13 = vector.load %arg2[%c2, %c0_14, %c0_15, %c0_16] : memref<8x9x9x4xf32, #tpu.memory_space<vmem>>, vector<2x9x9x4xf32>
    %cst_17 = arith.constant 0.000000e+00 : f32
    %14 = vector.broadcast %cst_17 : f32 to vector<2x9x9x4xf32>
    %15 = arith.cmpf oge, %13, %14 : vector<2x9x9x4xf32>
    %cst_18 = arith.constant 2.000000e-01 : f32
    %16 = vector.broadcast %cst_18 : f32 to vector<2x9x9x4xf32>
    %17 = arith.mulf %16, %13 : vector<2x9x9x4xf32>
    %18 = arith.select %15, %13, %17 : vector<2x9x9x4xi1>, vector<2x9x9x4xf32>
    %c4 = arith.constant 4 : index
    %c0_19 = arith.constant 0 : index
    %c0_20 = arith.constant 0 : index
    %c0_21 = arith.constant 0 : index
    %19 = vector.load %arg2[%c4, %c0_19, %c0_20, %c0_21] : memref<8x9x9x4xf32, #tpu.memory_space<vmem>>, vector<2x9x9x4xf32>
    %cst_22 = arith.constant 0.000000e+00 : f32
    %20 = vector.broadcast %cst_22 : f32 to vector<2x9x9x4xf32>
    %21 = arith.cmpf oge, %19, %20 : vector<2x9x9x4xf32>
    %cst_23 = arith.constant 2.000000e-01 : f32
    %22 = vector.broadcast %cst_23 : f32 to vector<2x9x9x4xf32>
    %23 = arith.mulf %22, %19 : vector<2x9x9x4xf32>
    %24 = arith.select %21, %19, %23 : vector<2x9x9x4xi1>, vector<2x9x9x4xf32>
    %c6 = arith.constant 6 : index
    %c0_24 = arith.constant 0 : index
    %c0_25 = arith.constant 0 : index
    %c0_26 = arith.constant 0 : index
    %25 = vector.load %arg2[%c6, %c0_24, %c0_25, %c0_26] : memref<8x9x9x4xf32, #tpu.memory_space<vmem>>, vector<2x9x9x4xf32>
    %cst_27 = arith.constant 0.000000e+00 : f32
    %26 = vector.broadcast %cst_27 : f32 to vector<2x9x9x4xf32>
    %27 = arith.cmpf oge, %25, %26 : vector<2x9x9x4xf32>
    %cst_28 = arith.constant 2.000000e-01 : f32
    %28 = vector.broadcast %cst_28 : f32 to vector<2x9x9x4xf32>
    %29 = arith.mulf %28, %25 : vector<2x9x9x4xf32>
    %30 = arith.select %27, %25, %29 : vector<2x9x9x4xi1>, vector<2x9x9x4xf32>
    %31 = vector.extract_strided_slice %12 {offsets = [0, 0, 0, 0], sizes = [2, 8, 8, 4], strides = [1, 1, 1, 1]} : vector<2x9x9x4xf32> to vector<2x8x8x4xf32>
    %32 = vector.extract_strided_slice %18 {offsets = [0, 0, 0, 0], sizes = [2, 8, 8, 4], strides = [1, 1, 1, 1]} : vector<2x9x9x4xf32> to vector<2x8x8x4xf32>
    %33 = vector.extract_strided_slice %12 {offsets = [0, 0, 1, 0], sizes = [2, 8, 8, 4], strides = [1, 1, 1, 1]} : vector<2x9x9x4xf32> to vector<2x8x8x4xf32>
    %34 = vector.extract_strided_slice %18 {offsets = [0, 0, 1, 0], sizes = [2, 8, 8, 4], strides = [1, 1, 1, 1]} : vector<2x9x9x4xf32> to vector<2x8x8x4xf32>
    %35 = vector.extract_strided_slice %24 {offsets = [0, 0, 0, 0], sizes = [2, 8, 8, 4], strides = [1, 1, 1, 1]} : vector<2x9x9x4xf32> to vector<2x8x8x4xf32>
    %36 = vector.extract_strided_slice %30 {offsets = [0, 0, 0, 0], sizes = [2, 8, 8, 4], strides = [1, 1, 1, 1]} : vector<2x9x9x4xf32> to vector<2x8x8x4xf32>
    %37 = vector.extract_strided_slice %24 {offsets = [0, 0, 1, 0], sizes = [2, 8, 8, 4], strides = [1, 1, 1, 1]} : vector<2x9x9x4xf32> to vector<2x8x8x4xf32>
    %38 = vector.extract_strided_slice %30 {offsets = [0, 0, 1, 0], sizes = [2, 8, 8, 4], strides = [1, 1, 1, 1]} : vector<2x9x9x4xf32> to vector<2x8x8x4xf32>
    %39 = vector.extract_strided_slice %12 {offsets = [0, 1, 0, 0], sizes = [2, 8, 8, 4], strides = [1, 1, 1, 1]} : vector<2x9x9x4xf32> to vector<2x8x8x4xf32>
    %40 = vector.extract_strided_slice %18 {offsets = [0, 1, 0, 0], sizes = [2, 8, 8, 4], strides = [1, 1, 1, 1]} : vector<2x9x9x4xf32> to vector<2x8x8x4xf32>
    %41 = vector.extract_strided_slice %12 {offsets = [0, 1, 1, 0], sizes = [2, 8, 8, 4], strides = [1, 1, 1, 1]} : vector<2x9x9x4xf32> to vector<2x8x8x4xf32>
    %42 = vector.extract_strided_slice %18 {offsets = [0, 1, 1, 0], sizes = [2, 8, 8, 4], strides = [1, 1, 1, 1]} : vector<2x9x9x4xf32> to vector<2x8x8x4xf32>
    %43 = vector.extract_strided_slice %24 {offsets = [0, 1, 0, 0], sizes = [2, 8, 8, 4], strides = [1, 1, 1, 1]} : vector<2x9x9x4xf32> to vector<2x8x8x4xf32>
    %44 = vector.extract_strided_slice %30 {offsets = [0, 1, 0, 0], sizes = [2, 8, 8, 4], strides = [1, 1, 1, 1]} : vector<2x9x9x4xf32> to vector<2x8x8x4xf32>
    %45 = vector.extract_strided_slice %24 {offsets = [0, 1, 1, 0], sizes = [2, 8, 8, 4], strides = [1, 1, 1, 1]} : vector<2x9x9x4xf32> to vector<2x8x8x4xf32>
    %46 = vector.extract_strided_slice %30 {offsets = [0, 1, 1, 0], sizes = [2, 8, 8, 4], strides = [1, 1, 1, 1]} : vector<2x9x9x4xf32> to vector<2x8x8x4xf32>
    %47 = tpu.concatenate %31, %32, %33, %34, %35, %36, %37, %38, %39, %40, %41, %42, %43, %44, %45, %46 in 3 : vector<2x8x8x4xf32>, vector<2x8x8x4xf32>, vector<2x8x8x4xf32>, vector<2x8x8x4xf32>, vector<2x8x8x4xf32>, vector<2x8x8x4xf32>, vector<2x8x8x4xf32>, vector<2x8x8x4xf32>, vector<2x8x8x4xf32>, vector<2x8x8x4xf32>, vector<2x8x8x4xf32>, vector<2x8x8x4xf32>, vector<2x8x8x4xf32>, vector<2x8x8x4xf32>, vector<2x8x8x4xf32>, vector<2x8x8x4xf32> -> vector<2x8x8x64xf32>
    %48 = vector.shape_cast %47 : vector<2x8x8x64xf32> to vector<128x64xf32>
    %c0_29 = arith.constant 0 : index
    %c0_30 = arith.constant 0 : index
    %49 = vector.load %arg4[%c0_29, %c0_30] : memref<64x8xf32, #tpu.memory_space<vmem>>, vector<64x8xf32>
    %cst_31 = arith.constant dense<0.000000e+00> : vector<128x8xf32>
    %50 = tpu.matmul %48, %49, %cst_31 {dimension_numbers = #tpu.dot_dimension_numbers<[1], [0], [0], [1], [0, 0, 1, 1], [], []>} : vector<128x64xf32>, vector<64x8xf32>, vector<128x8xf32> -> vector<128x8xf32>
    %c0_32 = arith.constant 0 : index
    %c0_33 = arith.constant 0 : index
    %51 = vector.load %arg3[%c0_32, %c0_33] : memref<128x4xf32, #tpu.memory_space<vmem>>, vector<128x4xf32>
    %52 = tpu.concatenate %50, %51 in 1 : vector<128x8xf32>, vector<128x4xf32> -> vector<128x12xf32>
    %cst_34 = arith.constant 0.000000e+00 : f32
    %53 = vector.broadcast %cst_34 : f32 to vector<128x12xf32>
    %54 = arith.maximumf %52, %53 : vector<128x12xf32>
    %c0_35 = arith.constant 0 : index
    %c0_36 = arith.constant 0 : index
    %55 = vector.load %arg6[%c0_35, %c0_36] : memref<128x12xf32, #tpu.memory_space<vmem>>, vector<128x12xf32>
    tpu.vector_store %arg6[%c0_35, %c0_36], %54 {strides = array<i32>} : memref<128x12xf32, #tpu.memory_space<vmem>>, vector<128x12xf32>,
    %cst_37 = arith.constant 0.000000e+00 : f32
    %56 = vector.broadcast %cst_37 : f32 to vector<2x10x10x12xf32>
    %c0_38 = arith.constant 0 : index
    %c0_39 = arith.constant 0 : index
    %c0_40 = arith.constant 0 : index
    %c0_41 = arith.constant 0 : index
    %57 = vector.load %arg9[%c0_38, %c0_39, %c0_40, %c0_41] : memref<2x10x10x12xf32, #tpu.memory_space<vmem>>, vector<2x10x10x12xf32>
    tpu.vector_store %arg9[%c0_38, %c0_39, %c0_40, %c0_41], %56 {strides = array<i32>} : memref<2x10x10x12xf32, #tpu.memory_space<vmem>>, vector<2x10x10x12xf32>,
    %58 = vector.shape_cast %54 : vector<128x12xf32> to vector<2x8x8x12xf32>
    %c0_42 = arith.constant 0 : index
    %c1 = arith.constant 1 : index
    %c1_43 = arith.constant 1 : index
    %c0_44 = arith.constant 0 : index
    %59 = vector.load %arg9[%c0_42, %c1, %c1_43, %c0_44] : memref<2x10x10x12xf32, #tpu.memory_space<vmem>>, vector<2x8x8x12xf32>
    tpu.vector_store %arg9[%c0_42, %c1, %c1_43, %c0_44], %58 {strides = array<i32>} : memref<2x10x10x12xf32, #tpu.memory_space<vmem>>, vector<2x8x8x12xf32>,
    %c0_45 = arith.constant 0 : index
    %c0_46 = arith.constant 0 : index
    %c0_47 = arith.constant 0 : index
    %c0_48 = arith.constant 0 : index
    %60 = vector.load %arg9[%c0_45, %c0_46, %c0_47, %c0_48] : memref<2x10x10x12xf32, #tpu.memory_space<vmem>>, vector<2x10x10x12xf32>
    %61 = vector.extract_strided_slice %60 {offsets = [0, 1, 1, 0], sizes = [2, 8, 8, 12], strides = [1, 1, 1, 1]} : vector<2x10x10x12xf32> to vector<2x8x8x12xf32>
    %62 = vector.extract_strided_slice %60 {offsets = [0, 1, 0, 0], sizes = [2, 8, 8, 12], strides = [1, 1, 1, 1]} : vector<2x10x10x12xf32> to vector<2x8x8x12xf32>
    %63 = vector.extract_strided_slice %60 {offsets = [0, 0, 1, 0], sizes = [2, 8, 8, 12], strides = [1, 1, 1, 1]} : vector<2x10x10x12xf32> to vector<2x8x8x12xf32>
    %64 = vector.extract_strided_slice %60 {offsets = [0, 0, 0, 0], sizes = [2, 8, 8, 12], strides = [1, 1, 1, 1]} : vector<2x10x10x12xf32> to vector<2x8x8x12xf32>
    %65 = tpu.concatenate %61, %62, %63, %64 in 3 : vector<2x8x8x12xf32>, vector<2x8x8x12xf32>, vector<2x8x8x12xf32>, vector<2x8x8x12xf32> -> vector<2x8x8x48xf32>
    %66 = vector.shape_cast %65 : vector<2x8x8x48xf32> to vector<128x48xf32>
    %c0_49 = arith.constant 0 : index
    %c0_50 = arith.constant 0 : index
    %c0_51 = arith.constant 0 : index
    %67 = vector.load %arg5[%c0_49, %c0_50, %c0_51] : memref<4x48x4xf32, #tpu.memory_space<vmem>>, vector<1x48x4xf32>
    %68 = vector.shape_cast %67 : vector<1x48x4xf32> to vector<48x4xf32>
    %cst_52 = arith.constant dense<0.000000e+00> : vector<128x4xf32>
    %69 = tpu.matmul %66, %68, %cst_52 {dimension_numbers = #tpu.dot_dimension_numbers<[1], [0], [0], [1], [0, 0, 1, 1], [], []>} : vector<128x48xf32>, vector<48x4xf32>, vector<128x4xf32> -> vector<128x4xf32>
    %70 = vector.extract_strided_slice %60 {offsets = [0, 1, 2, 0], sizes = [2, 8, 8, 12], strides = [1, 1, 1, 1]} : vector<2x10x10x12xf32> to vector<2x8x8x12xf32>
    %71 = vector.extract_strided_slice %60 {offsets = [0, 1, 1, 0], sizes = [2, 8, 8, 12], strides = [1, 1, 1, 1]} : vector<2x10x10x12xf32> to vector<2x8x8x12xf32>
    %72 = vector.extract_strided_slice %60 {offsets = [0, 0, 2, 0], sizes = [2, 8, 8, 12], strides = [1, 1, 1, 1]} : vector<2x10x10x12xf32> to vector<2x8x8x12xf32>
    %73 = vector.extract_strided_slice %60 {offsets = [0, 0, 1, 0], sizes = [2, 8, 8, 12], strides = [1, 1, 1, 1]} : vector<2x10x10x12xf32> to vector<2x8x8x12xf32>
    %74 = tpu.concatenate %70, %71, %72, %73 in 3 : vector<2x8x8x12xf32>, vector<2x8x8x12xf32>, vector<2x8x8x12xf32>, vector<2x8x8x12xf32> -> vector<2x8x8x48xf32>
    %75 = vector.shape_cast %74 : vector<2x8x8x48xf32> to vector<128x48xf32>
    %c1_53 = arith.constant 1 : index
    %c0_54 = arith.constant 0 : index
    %c0_55 = arith.constant 0 : index
    %76 = vector.load %arg5[%c1_53, %c0_54, %c0_55] : memref<4x48x4xf32, #tpu.memory_space<vmem>>, vector<1x48x4xf32>
    %77 = vector.shape_cast %76 : vector<1x48x4xf32> to vector<48x4xf32>
    %cst_56 = arith.constant dense<0.000000e+00> : vector<128x4xf32>
    %78 = tpu.matmul %75, %77, %cst_56 {dimension_numbers = #tpu.dot_dimension_numbers<[1], [0], [0], [1], [0, 0, 1, 1], [], []>} : vector<128x48xf32>, vector<48x4xf32>, vector<128x4xf32> -> vector<128x4xf32>
    %79 = vector.extract_strided_slice %60 {offsets = [0, 2, 1, 0], sizes = [2, 8, 8, 12], strides = [1, 1, 1, 1]} : vector<2x10x10x12xf32> to vector<2x8x8x12xf32>
    %80 = vector.extract_strided_slice %60 {offsets = [0, 2, 0, 0], sizes = [2, 8, 8, 12], strides = [1, 1, 1, 1]} : vector<2x10x10x12xf32> to vector<2x8x8x12xf32>
    %81 = vector.extract_strided_slice %60 {offsets = [0, 1, 1, 0], sizes = [2, 8, 8, 12], strides = [1, 1, 1, 1]} : vector<2x10x10x12xf32> to vector<2x8x8x12xf32>
    %82 = vector.extract_strided_slice %60 {offsets = [0, 1, 0, 0], sizes = [2, 8, 8, 12], strides = [1, 1, 1, 1]} : vector<2x10x10x12xf32> to vector<2x8x8x12xf32>
    %83 = tpu.concatenate %79, %80, %81, %82 in 3 : vector<2x8x8x12xf32>, vector<2x8x8x12xf32>, vector<2x8x8x12xf32>, vector<2x8x8x12xf32> -> vector<2x8x8x48xf32>
    %84 = vector.shape_cast %83 : vector<2x8x8x48xf32> to vector<128x48xf32>
    %c2_57 = arith.constant 2 : index
    %c0_58 = arith.constant 0 : index
    %c0_59 = arith.constant 0 : index
    %85 = vector.load %arg5[%c2_57, %c0_58, %c0_59] : memref<4x48x4xf32, #tpu.memory_space<vmem>>, vector<1x48x4xf32>
    %86 = vector.shape_cast %85 : vector<1x48x4xf32> to vector<48x4xf32>
    %cst_60 = arith.constant dense<0.000000e+00> : vector<128x4xf32>
    %87 = tpu.matmul %84, %86, %cst_60 {dimension_numbers = #tpu.dot_dimension_numbers<[1], [0], [0], [1], [0, 0, 1, 1], [], []>} : vector<128x48xf32>, vector<48x4xf32>, vector<128x4xf32> -> vector<128x4xf32>
    %88 = vector.extract_strided_slice %60 {offsets = [0, 2, 2, 0], sizes = [2, 8, 8, 12], strides = [1, 1, 1, 1]} : vector<2x10x10x12xf32> to vector<2x8x8x12xf32>
    %89 = vector.extract_strided_slice %60 {offsets = [0, 2, 1, 0], sizes = [2, 8, 8, 12], strides = [1, 1, 1, 1]} : vector<2x10x10x12xf32> to vector<2x8x8x12xf32>
    %90 = vector.extract_strided_slice %60 {offsets = [0, 1, 2, 0], sizes = [2, 8, 8, 12], strides = [1, 1, 1, 1]} : vector<2x10x10x12xf32> to vector<2x8x8x12xf32>
    %91 = vector.extract_strided_slice %60 {offsets = [0, 1, 1, 0], sizes = [2, 8, 8, 12], strides = [1, 1, 1, 1]} : vector<2x10x10x12xf32> to vector<2x8x8x12xf32>
    %92 = tpu.concatenate %88, %89, %90, %91 in 3 : vector<2x8x8x12xf32>, vector<2x8x8x12xf32>, vector<2x8x8x12xf32>, vector<2x8x8x12xf32> -> vector<2x8x8x48xf32>
    %93 = vector.shape_cast %92 : vector<2x8x8x48xf32> to vector<128x48xf32>
    %c3 = arith.constant 3 : index
    %c0_61 = arith.constant 0 : index
    %c0_62 = arith.constant 0 : index
    %94 = vector.load %arg5[%c3, %c0_61, %c0_62] : memref<4x48x4xf32, #tpu.memory_space<vmem>>, vector<1x48x4xf32>
    %95 = vector.shape_cast %94 : vector<1x48x4xf32> to vector<48x4xf32>
    %cst_63 = arith.constant dense<0.000000e+00> : vector<128x4xf32>
    %96 = tpu.matmul %93, %95, %cst_63 {dimension_numbers = #tpu.dot_dimension_numbers<[1], [0], [0], [1], [0, 0, 1, 1], [], []>} : vector<128x48xf32>, vector<48x4xf32>, vector<128x4xf32> -> vector<128x4xf32>
    %97 = arith.addf %69, %78 : vector<128x4xf32>
    %98 = arith.addf %97, %87 : vector<128x4xf32>
    %99 = arith.addf %98, %96 : vector<128x4xf32>
    %cst_64 = arith.constant dense<0.000000e+00> : vector<4xf32>
    %100 = vector.multi_reduction <add>, %99, %cst_64 [0] : vector<128x4xf32> to vector<4xf32>
    %101 = vector.shape_cast %100 : vector<4xf32> to vector<1x4xf32>
    %cst_65 = arith.constant 5.120000e+02 : f32
    %102 = vector.broadcast %cst_65 : f32 to vector<1x4xf32>
    %103 = arith.divf %101, %102 : vector<1x4xf32>
    %104 = vector.broadcast %103 : vector<1x4xf32> to vector<128x4xf32>
    %105 = arith.subf %69, %104 : vector<128x4xf32>
    %106 = arith.mulf %105, %105 : vector<128x4xf32>
    %107 = vector.broadcast %103 : vector<1x4xf32> to vector<128x4xf32>
    %108 = arith.subf %78, %107 : vector<128x4xf32>
    %109 = arith.mulf %108, %108 : vector<128x4xf32>
    %110 = arith.addf %106, %109 : vector<128x4xf32>
    %111 = vector.broadcast %103 : vector<1x4xf32> to vector<128x4xf32>
    %112 = arith.subf %87, %111 : vector<128x4xf32>
    %113 = arith.mulf %112, %112 : vector<128x4xf32>
    %114 = arith.addf %110, %113 : vector<128x4xf32>
    %115 = vector.broadcast %103 : vector<1x4xf32> to vector<128x4xf32>
    %116 = arith.subf %96, %115 : vector<128x4xf32>
    %117 = arith.mulf %116, %116 : vector<128x4xf32>
    %118 = arith.addf %114, %117 : vector<128x4xf32>
    %cst_66 = arith.constant dense<0.000000e+00> : vector<4xf32>
    %119 = vector.multi_reduction <add>, %118, %cst_66 [0] : vector<128x4xf32> to vector<4xf32>
    %120 = vector.shape_cast %119 : vector<4xf32> to vector<1x4xf32>
    %cst_67 = arith.constant 5.120000e+02 : f32
    %121 = vector.broadcast %cst_67 : f32 to vector<1x4xf32>
    %122 = arith.divf %120, %121 : vector<1x4xf32>
    %cst_68 = arith.constant 9.99999974E-6 : f32
    %123 = vector.broadcast %cst_68 : f32 to vector<1x4xf32>
    %124 = arith.addf %122, %123 : vector<1x4xf32>
    %125 = math.rsqrt %124 : vector<1x4xf32>
    %126 = vector.broadcast %103 : vector<1x4xf32> to vector<128x4xf32>
    %127 = arith.subf %69, %126 : vector<128x4xf32>
    %128 = vector.broadcast %125 : vector<1x4xf32> to vector<128x4xf32>
    %129 = arith.mulf %127, %128 : vector<128x4xf32>
    %c0_69 = arith.constant 0 : index
    %c0_70 = arith.constant 0 : index
    %c0_71 = arith.constant 0 : index
    %130 = vector.load %arg8[%c0_69, %c0_70, %c0_71] : memref<4x128x4xf32, #tpu.memory_space<vmem>>, vector<1x128x4xf32>
    %131 = vector.shape_cast %130 : vector<1x128x4xf32> to vector<128x4xf32>
    %132 = vector.shape_cast %129 : vector<128x4xf32> to vector<1x128x4xf32>
    tpu.vector_store %arg8[%c0_69, %c0_70, %c0_71], %132 {strides = array<i32>} : memref<4x128x4xf32, #tpu.memory_space<vmem>>, vector<1x128x4xf32>,
    %133 = vector.broadcast %103 : vector<1x4xf32> to vector<128x4xf32>
    %134 = arith.subf %78, %133 : vector<128x4xf32>
    %135 = vector.broadcast %125 : vector<1x4xf32> to vector<128x4xf32>
    %136 = arith.mulf %134, %135 : vector<128x4xf32>
    %c1_72 = arith.constant 1 : index
    %c0_73 = arith.constant 0 : index
    %c0_74 = arith.constant 0 : index
    %137 = vector.load %arg8[%c1_72, %c0_73, %c0_74] : memref<4x128x4xf32, #tpu.memory_space<vmem>>, vector<1x128x4xf32>
    %138 = vector.shape_cast %137 : vector<1x128x4xf32> to vector<128x4xf32>
    %139 = vector.shape_cast %136 : vector<128x4xf32> to vector<1x128x4xf32>
    tpu.vector_store %arg8[%c1_72, %c0_73, %c0_74], %139 {strides = array<i32>} : memref<4x128x4xf32, #tpu.memory_space<vmem>>, vector<1x128x4xf32>,
    %140 = vector.broadcast %103 : vector<1x4xf32> to vector<128x4xf32>
    %141 = arith.subf %87, %140 : vector<128x4xf32>
    %142 = vector.broadcast %125 : vector<1x4xf32> to vector<128x4xf32>
    %143 = arith.mulf %141, %142 : vector<128x4xf32>
    %c2_75 = arith.constant 2 : index
    %c0_76 = arith.constant 0 : index
    %c0_77 = arith.constant 0 : index
    %144 = vector.load %arg8[%c2_75, %c0_76, %c0_77] : memref<4x128x4xf32, #tpu.memory_space<vmem>>, vector<1x128x4xf32>
    %145 = vector.shape_cast %144 : vector<1x128x4xf32> to vector<128x4xf32>
    %146 = vector.shape_cast %143 : vector<128x4xf32> to vector<1x128x4xf32>
    tpu.vector_store %arg8[%c2_75, %c0_76, %c0_77], %146 {strides = array<i32>} : memref<4x128x4xf32, #tpu.memory_space<vmem>>, vector<1x128x4xf32>,
    %147 = vector.broadcast %103 : vector<1x4xf32> to vector<128x4xf32>
    %148 = arith.subf %96, %147 : vector<128x4xf32>
    %149 = vector.broadcast %125 : vector<1x4xf32> to vector<128x4xf32>
    %150 = arith.mulf %148, %149 : vector<128x4xf32>
    %c3_78 = arith.constant 3 : index
    %c0_79 = arith.constant 0 : index
    %c0_80 = arith.constant 0 : index
    %151 = vector.load %arg8[%c3_78, %c0_79, %c0_80] : memref<4x128x4xf32, #tpu.memory_space<vmem>>, vector<1x128x4xf32>
    %152 = vector.shape_cast %151 : vector<1x128x4xf32> to vector<128x4xf32>
    %153 = vector.shape_cast %150 : vector<128x4xf32> to vector<1x128x4xf32>
    tpu.vector_store %arg8[%c3_78, %c0_79, %c0_80], %153 {strides = array<i32>} : memref<4x128x4xf32, #tpu.memory_space<vmem>>, vector<1x128x4xf32>,
    return
  }
  func.func @transform_0(%arg0: i32) -> (i32, i32, i32, i32) {
    %c0_i32 = arith.constant 0 : i32
    %c0_i32_0 = arith.constant 0 : i32
    %c0_i32_1 = arith.constant 0 : i32
    %c0_i32_2 = arith.constant 0 : i32
    %c0_i32_3 = arith.constant 0 : i32
    return %c0_i32, %c0_i32_0, %c0_i32_1, %c0_i32_2 : i32, i32, i32, i32
  }
  func.func @transform_1(%arg0: i32) -> (i32, i32, i32, i32) {
    %c0_i32 = arith.constant 0 : i32
    %c0_i32_0 = arith.constant 0 : i32
    %c0_i32_1 = arith.constant 0 : i32
    %c0_i32_2 = arith.constant 0 : i32
    %c0_i32_3 = arith.constant 0 : i32
    return %c0_i32, %c0_i32_0, %c0_i32_1, %c0_i32_2 : i32, i32, i32, i32
  }
  func.func @transform_2(%arg0: i32) -> (i32, i32) {
    %c0_i32 = arith.constant 0 : i32
    %c0_i32_0 = arith.constant 0 : i32
    %c0_i32_1 = arith.constant 0 : i32
    return %c0_i32, %c0_i32_0 : i32, i32
  }
  func.func @transform_3(%arg0: i32) -> (i32, i32) {
    %c0_i32 = arith.constant 0 : i32
    %c0_i32_0 = arith.constant 0 : i32
    %c0_i32_1 = arith.constant 0 : i32
    return %c0_i32, %c0_i32_0 : i32, i32
  }
  func.func @transform_4(%arg0: i32) -> (i32, i32, i32) {
    %c0_i32 = arith.constant 0 : i32
    %c0_i32_0 = arith.constant 0 : i32
    %c0_i32_1 = arith.constant 0 : i32
    %c0_i32_2 = arith.constant 0 : i32
    return %c0_i32, %c0_i32_0, %c0_i32_1 : i32, i32, i32
  }
  func.func @transform_5(%arg0: i32) -> (i32, i32) {
    %c0_i32 = arith.constant 0 : i32
    %c0_i32_0 = arith.constant 0 : i32
    %c0_i32_1 = arith.constant 0 : i32
    return %c0_i32, %c0_i32_0 : i32, i32
  }
  func.func @transform_6(%arg0: i32) -> (i32, i32, i32, i32) {
    %c0_i32 = arith.constant 0 : i32
    %c0_i32_0 = arith.constant 0 : i32
    %c0_i32_1 = arith.constant 0 : i32
    %c0_i32_2 = arith.constant 0 : i32
    %c0_i32_3 = arith.constant 0 : i32
    return %c0_i32, %c0_i32_0, %c0_i32_1, %c0_i32_2 : i32, i32, i32, i32
  }
  func.func @transform_7(%arg0: i32) -> (i32, i32, i32) {
    %c0_i32 = arith.constant 0 : i32
    %c0_i32_0 = arith.constant 0 : i32
    %c0_i32_1 = arith.constant 0 : i32
    %c0_i32_2 = arith.constant 0 : i32
    return %c0_i32, %c0_i32_0, %c0_i32_1 : i32, i32, i32
  }
}

</mosaic_0001>

<bundles_post_ra>
// kernel: unet_innermost_forward.1
= control target key start
LH: loop header
LB: loop body
LE: loop exit
PB: predicated region body
PF: predicated region fallthrough
CT: control target
= control target key end

     0   :  { %vm9580_vm0 = vcmask 1046528   ;;  %s5006_s13 = smov 4   ;;  %s5007_s20 = smov 8   ;;  %s9572_s0 = inlined_call_operand.vmem [shape: f32[2,4,16,16], index: 0, kind: input, shape index: {}]   ;;  %s9573_s1 = inlined_call_operand.vmem [shape: f32[8,9,9,4], index: 1, kind: input, shape index: {}]   ;;  %s9574_s2 = inlined_call_operand.vmem [shape: f32[128,4], index: 2, kind: input, shape index: {}]   ;;  %s9575_s3 = inlined_call_operand.vmem [shape: f32[64,8], index: 3, kind: input, shape index: {}]   ;;  %s9576_s4 = inlined_call_operand.vmem [shape: f32[4,48,4], index: 4, kind: input, shape index: {}]   ;;  %s9577_s5 = inlined_call_operand.hbm [shape: f32[128,12], index: 5, kind: output, shape index: {0}]   ;;  %s9578_s6 = inlined_call_operand.vmem [shape: f32[2,4,16,16], index: 6, kind: output, shape index: {1}]   ;;  %s9579_s7 = inlined_call_operand.vmem [shape: f32[4,128,4], index: 7, kind: output, shape index: {2}]  }
   0x1   :  { %v4334_v0 = vld [vmem:[%s9573_s1 + $0x120] sm:$0xff]  ;;  %v106_v2 = vld [vmem:[%s9573_s1 + $0x8] sm:$0x1]  ;;  %v4336_v6 = vld [vmem:[%s9573_s1 + $0x130] sm:$0xff]  ;;  %s5008_s25 = smov 12   ;;  %s5009_s14 = smov 16  }
   0x2   :  { %v105_v1 = vld [vmem:[%s9573_s1] sm:$0xff]  ;;  %vm286_vm1 = vcmp.ge.f32.partialorder %v4334_v0, 0.0  ;;  %v322_v3 = vmul.f32 0.2, %v4334_v0  ;;  %vm142_vm3 = vcmp.ge.f32.partialorder %v106_v2, 0.0  ;;  %v107_v7 = vld [vmem:[%s9573_s1 + $0x10] sm:$0xff] }
   0x3   :  { %vm141_vm2 = vcmp.ge.f32.partialorder %v105_v1, 0.0  ;;  %v177_v4 = vmul.f32 0.2, %v105_v1  ;;  %v178_v5 = vmul.f32 0.2, %v106_v2  ;;  %vm288_vm4 = vcmp.ge.f32.partialorder %v4336_v6, 0.0 }
   0x4   :  { %v358_v8 = vsel %vm286_vm1, %v4334_v0, %v322_v3  ;;  %v324_v9 = vmul.f32 0.2, %v4336_v6  ;;  %v108_v10 = vld [vmem:[%s9573_s1 + $0x18] sm:$0x1]  ;;  %vm143_vm5 = vcmp.ge.f32.partialorder %v107_v7, 0.0  ;;  %v4370_v22 = vld [vmem:[%s9573_s1 + $0x240] sm:$0xff] }
   0x5   :  { %700 = vrot.lane.b32.xlu0 %v358_v8, %s5006_s13  ;;  %v893_v11 = vrot.slane %v358_v8, 1  ;;  %v5083_v12 = vsel %vm141_vm2, %v105_v1, %v177_v4  ;;  %v214_v13 = vsel %vm142_vm3, %v106_v2, %v178_v5  ;;  %vm144_vm6 = vcmp.ge.f32.partialorder %v108_v10, 0.0  ;;  %v4335_v14 = vld [vmem:[%s9573_s1 + $0x128] sm:$0x1]  ;;  %v4337_v19 = vld [vmem:[%s9573_s1 + $0x138] sm:$0x1] }
   0x6   :  { %v781_v15 = vrot.slane %v5083_v12, 1  ;;  %v782_v16 = vrot.slane %v214_v13, 1  ;;  %v5089_v17 = vsel %vm288_vm4, %v4336_v6, %v324_v9  ;;  %v179_v18 = vmul.f32 0.2, %v107_v7  ;;  %v4338_v34 = vld [vmem:[%s9573_s1 + $0x140] sm:$0xff]  ;;  %v4372_v36 = vld [vmem:[%s9573_s1 + $0x250] sm:$0xff] }
   0x7   :  { %v180_v20 = vmul.f32 0.2, %v108_v10  ;;  %vm287_vm7 = vcmp.ge.f32.partialorder %v4335_v14, 0.0  ;;  %v323_v21 = vmul.f32 0.2, %v4335_v14  ;;  %vm289_vm8 = vcmp.ge.f32.partialorder %v4337_v19, 0.0 }
   0x8   :  { %v783_v23 = vsel %vm9580_vm0, %v781_v15, %v782_v16  ;;  %v5099_v24 = vsel %vm143_vm5, %v107_v7, %v179_v18  ;;  %v325_v25 = vmul.f32 0.2, %v4337_v19  ;;  %v896_v26 = vrot.slane %v5089_v17, 1  ;;  %v109_v40 = vld [vmem:[%s9573_s1 + $0x20] sm:$0xff]  ;;  %v110_v41 = vld [vmem:[%s9573_s1 + $0x28] sm:$0x1] }
   0x9   :  { %9672 = vst [vmem:[#allocation6_spill] sm:$0xff] %v5099_v24  ;;  %829 = vrot.lane.b32.xlu1 %v783_v23, %s5007_s20  ;;  %702 = vrot.lane.b32.xlu0 %v5089_v17, %s5006_s13  ;;  %v216_v27 = vsel %vm144_vm6, %v108_v10, %v180_v20  ;;  %v784_v28 = vrot.slane %v5099_v24, 1  ;;  %v359_v29 = vsel %vm287_vm7, %v4335_v14, %v323_v21  ;;  %v467_v33 = vmul.f32 0.2, %v4370_v22  ;;  %v4406_v45 = vld [vmem:[%s9573_s1 + $0x360] sm:$0xff]  ;;  %v4340_v46 = vld [vmem:[%s9573_s1 + $0x150] sm:$0xff] }
   0xa   :  { %v785_v30 = vrot.slane %v216_v27, 1  ;;  %v894_v31 = vrot.slane %v359_v29, 1  ;;  %v361_v32 = vsel %vm289_vm8, %v4337_v19, %v325_v25  ;;  %vm431_vm9 = vcmp.ge.f32.partialorder %v4370_v22, 0.0  ;;  %v4371_v47 = vld [vmem:[%s9573_s1 + $0x248] sm:$0x1]  ;;  %v111_v52 = vld [vmem:[%s9573_s1 + $0x30] sm:$0xff] }
   0xb   :  { %v897_v35 = vrot.slane %v361_v32, 1  ;;  %v326_v39 = vmul.f32 0.2, %v4338_v34  ;;  %v5129_v43 = vsel %vm431_vm9, %v4370_v22, %v467_v33  ;;  %vm290_vm10 = vcmp.ge.f32.partialorder %v4338_v34, 0.0  ;;  %v112_v53 = vld [vmem:[%s9573_s1 + $0x38] sm:$0x1] }
   0xc   :  { %v5114_v37 = vsel %vm9580_vm0, %v784_v28, %v785_v30  ;;  %v895_v38 = vsel %vm9580_vm0, %v893_v11, %v894_v31  ;;  %v469_v44 = vmul.f32 0.2, %v4372_v36  ;;  %vm433_vm11 = vcmp.ge.f32.partialorder %v4372_v36, 0.0  ;;  %v4408_v56 = vld [vmem:[%s9573_s1 + $0x370] sm:$0xff]  ;;  %v4339_v60 = vld [vmem:[%s9573_s1 + $0x148] sm:$0x1] }
   0xd   :  { %831 = vrot.lane.b32.xlu1 %v5114_v37, %s5007_s20  ;;  %941 = vrot.lane.b32.xlu0 %v895_v38, %s5008_s25  ;;  %v5127_v42 = vsel %vm9580_vm0, %v896_v26, %v897_v35  ;;  %vm145_vm12 = vcmp.ge.f32.partialorder %v109_v40, 0.0  ;;  %vm146_vm13 = vcmp.ge.f32.partialorder %v110_v41, 0.0  ;;  %v181_v48 = vmul.f32 0.2, %v109_v40  ;;  %v4373_v62 = vld [vmem:[%s9573_s1 + $0x258] sm:$0x1] }
   0xe   :  { %v182_v49 = vmul.f32 0.2, %v110_v41  ;;  %v5144_v50 = vsel %vm290_vm10, %v4338_v34, %v326_v39  ;;  %v612_v51 = vmul.f32 0.2, %v4406_v45  ;;  %v5152_v54 = vsel %vm433_vm11, %v4372_v36, %v469_v44  ;;  %v4407_v10 = vld [vmem:[%s9573_s1 + $0x368] sm:$0x1] }
   0xf   :  { %vm576_vm14 = vcmp.ge.f32.partialorder %v4406_v45, 0.0  ;;  %v328_v55 = vmul.f32 0.2, %v4340_v46  ;;  %v468_v57 = vmul.f32 0.2, %v4371_v47  ;;  %vm292_vm15 = vcmp.ge.f32.partialorder %v4340_v46, 0.0 }
  0x10   :  { %v5158_v58 = vsel %vm145_vm12, %v109_v40, %v181_v48  ;;  %v218_v59 = vsel %vm146_vm13, %v110_v41, %v182_v49  ;;  %vm432_vm1 = vcmp.ge.f32.partialorder %v4371_v47, 0.0  ;;  %vm147_vm2 = vcmp.ge.f32.partialorder %v111_v52, 0.0  ;;  %v4341_v11 = vld [vmem:[%s9573_s1 + $0x158] sm:$0x1]  ;;  %s5010_s8 = smov 20   ;;  %s5011_s11 = smov 24  }
  0x11   :  { %943 = vrot.lane.b32.xlu1 %v5127_v42, %s5008_s25  ;;  %1005 = vrot.lane.b32.xlu0 %v5129_v43, %s5009_s14  ;;  %9673 = vst [vmem:[#allocation7_spill] sm:$0xff] %v5158_v58  ;;  %vm148_vm3 = vcmp.ge.f32.partialorder %v112_v53, 0.0  ;;  %v183_v61 = vmul.f32 0.2, %v111_v52  ;;  %v648_v63 = vsel %vm576_vm14, %v4406_v45, %v612_v51  ;;  %vm578_vm4 = vcmp.ge.f32.partialorder %v4408_v56, 0.0  ;;  %v4342_v51 = vld [vmem:[%s9573_s1 + $0x160] sm:$0xff] }
  0x12   :  { %v614_v0 = vmul.f32 0.2, %v4408_v56  ;;  %v184_v1 = vmul.f32 0.2, %v112_v53  ;;  %v5171_v2 = vsel %vm292_vm15, %v4340_v46, %v328_v55  ;;  %v787_v3 = vrot.slane %v5158_v58, 1  ;;  %s5012_s18 = smov 28  }
  0x13   :  { %v788_v4 = vrot.slane %v218_v59, 1  ;;  %v504_v5 = vsel %vm432_vm1, %v4371_v47, %v468_v57  ;;  %v5174_v6 = vsel %vm147_vm2, %v111_v52, %v183_v61  ;;  %v327_v8 = vmul.f32 0.2, %v4339_v60  ;;  %v4409_v25 = vld [vmem:[%s9573_s1 + $0x378] sm:$0x1]  ;;  %v4410_v57 = vld [vmem:[%s9573_s1 + $0x380] sm:$0xff] }
  0x14   :  { %9674 = vst [vmem:[#allocation8_spill] sm:$0xff] %v5174_v6  ;;  %v220_v7 = vsel %vm148_vm3, %v112_v53, %v184_v1  ;;  %v470_v9 = vmul.f32 0.2, %v4373_v62  ;;  %vm291_vm5 = vcmp.ge.f32.partialorder %v4339_v60, 0.0  ;;  %vm434_vm6 = vcmp.ge.f32.partialorder %v4373_v62, 0.0  ;;  %v113_v59 = vld [vmem:[%s9573_s1 + $0x40] sm:$0xff] }
  0x15   :  { %704 = vrot.lane.b32.xlu1 %v5144_v50, %s5006_s13  ;;  %1007 = vrot.lane.b32.xlu0 %v5152_v54, %s5009_s14  ;;  %v1133_v13 = vrot.slane %v5129_v43, 1  ;;  %v5187_v14 = vsel %vm578_vm4, %v4408_v56, %v614_v0  ;;  %v5190_v15 = vsel %vm9580_vm0, %v787_v3, %v788_v4  ;;  %v1134_v16 = vrot.slane %v504_v5, 1  ;;  %v4374_v43 = vld [vmem:[%s9573_s1 + $0x260] sm:$0xff]  ;;  %v4376_v56 = vld [vmem:[%s9573_s1 + $0x270] sm:$0xff] }
  0x16   :  { %v790_v18 = vrot.slane %v5174_v6, 1  ;;  %v791_v19 = vrot.slane %v220_v7, 1  ;;  %v363_v20 = vsel %vm291_vm5, %v4339_v60, %v327_v8  ;;  %v506_v21 = vsel %vm434_vm6, %v4373_v62, %v470_v9  ;;  %v114_v60 = vld [vmem:[%s9573_s1 + $0x48] sm:$0x1] }
  0x17   :  { %v613_v22 = vmul.f32 0.2, %v4407_v10  ;;  %v329_v23 = vmul.f32 0.2, %v4341_v11  ;;  %vm577_vm7 = vcmp.ge.f32.partialorder %v4407_v10, 0.0  ;;  %vm293_vm8 = vcmp.ge.f32.partialorder %v4341_v11, 0.0 }
  0x18   :  { %v899_v26 = vrot.slane %v5144_v50, 1  ;;  %v1136_v27 = vrot.slane %v5152_v54, 1  ;;  %v1135_v28 = vsel %vm9580_vm0, %v1133_v13, %v1134_v16  ;;  %v5204_v29 = vsel %vm9580_vm0, %v790_v18, %v791_v19  ;;  %v4375_v3 = vld [vmem:[%s9573_s1 + $0x268] sm:$0x1] }
  0x19   :  { %1069 = vrot.lane.b32.xlu1 %v648_v63, %s5010_s8  ;;  %706 = vrot.lane.b32.xlu0 %v5171_v2, %s5006_s13  ;;  %v900_v30 = vrot.slane %v363_v20, 1  ;;  %v1137_v31 = vrot.slane %v506_v21, 1  ;;  %v649_v32 = vsel %vm577_vm7, %v4407_v10, %v613_v22  ;;  %v365_v33 = vsel %vm293_vm8, %v4341_v11, %v329_v23 }
  0x1a   :  { %v615_v34 = vmul.f32 0.2, %v4409_v25  ;;  %vm579_vm9 = vcmp.ge.f32.partialorder %v4409_v25, 0.0  ;;  %v1245_v35 = vrot.slane %v648_v63, 1  ;;  %v902_v36 = vrot.slane %v5171_v2, 1 }
  0x1b   :  { %v5211_v38 = vsel %vm9580_vm0, %v899_v26, %v900_v30  ;;  %v5214_v39 = vsel %vm9580_vm0, %v1136_v27, %v1137_v31  ;;  %v1246_v40 = vrot.slane %v649_v32, 1  ;;  %v903_v41 = vrot.slane %v365_v33, 1 }
  0x1c   :  { %v651_v44 = vsel %vm579_vm9, %v4409_v25, %v615_v34  ;;  %v1248_v45 = vrot.slane %v5187_v14, 1  ;;  %v471_v48 = vmul.f32 0.2, %v4374_v43  ;;  %vm435_vm10 = vcmp.ge.f32.partialorder %v4374_v43, 0.0 }
  0x1d   :  { %833 = vrot.lane.b32.xlu1 %v5190_v15, %s5007_s20  ;;  %1071 = vrot.lane.b32.xlu0 %v5187_v14, %s5010_s8  ;;  %v1247_v46 = vsel %vm9580_vm0, %v1245_v35, %v1246_v40  ;;  %v5226_v47 = vsel %vm9580_vm0, %v902_v36, %v903_v41  ;;  %v1249_v49 = vrot.slane %v651_v44, 1  ;;  %v330_v55 = vmul.f32 0.2, %v4342_v51 }
  0x1e   :  { %v5234_v52 = vsel %vm435_vm10, %v4374_v43, %v471_v48  ;;  %vm294_vm11 = vcmp.ge.f32.partialorder %v4342_v51, 0.0  ;;  %v473_v62 = vmul.f32 0.2, %v4376_v56  ;;  %v616_v63 = vmul.f32 0.2, %v4410_v57 }
  0x1f   :  { %v5237_v53 = vsel %vm9580_vm0, %v1248_v45, %v1249_v49  ;;  %v5255_v61 = vsel %vm294_vm11, %v4342_v51, %v330_v55  ;;  %vm437_vm12 = vcmp.ge.f32.partialorder %v4376_v56, 0.0  ;;  %vm580_vm13 = vcmp.ge.f32.partialorder %v4410_v57, 0.0 }
  0x20   :  { %v185_v0 = vmul.f32 0.2, %v113_v59  ;;  %v186_v1 = vmul.f32 0.2, %v114_v60  ;;  %vm149_vm14 = vcmp.ge.f32.partialorder %v113_v59, 0.0  ;;  %vm150_vm15 = vcmp.ge.f32.partialorder %v114_v60, 0.0 }
  0x21   :  { %1181 = vrot.lane.b32.xlu1 %v1135_v28, %s5011_s11  ;;  %835 = vrot.lane.b32.xlu0 %v5204_v29, %s5007_s20 }
  0x25   :  { %945 = vrot.lane.b32.xlu1 %v5211_v38, %s5008_s25  ;;  %1183 = vrot.lane.b32.xlu0 %v5214_v39, %s5011_s11 }
  0x29   :  { %1293 = vrot.lane.b32.xlu1 %v1247_v46, %s5012_s18  ;;  %947 = vrot.lane.b32.xlu0 %v5226_v47, %s5008_s25 }
  0x2d   :  { %1009 = vrot.lane.b32.xlu1 %v5234_v52, %s5009_s14  ;;  %1295 = vrot.lane.b32.xlu0 %v5237_v53, %s5012_s18 }
  0x2e   :  { %13 = vsyncpa [#allocation4], 0  ;;  %s5013_s9 = smov 32   ;;  %v5264_v4 = vsel %vm437_vm12, %v4376_v56, %v473_v62  ;;  %v5266_v5 = vsel %vm580_vm13, %v4410_v57, %v616_v63  ;;  %v4344_v7 = vld [vmem:[%s9573_s1 + $0x170] sm:$0xff]  ;;  %v5271_v8 = vsel %vm149_vm14, %v113_v59, %v185_v0  ;;  %v222_v9 = vsel %vm150_vm15, %v114_v60, %v186_v1  ;;  %v116_v21 = vld [vmem:[%s9573_s1 + $0x58] sm:$0x1] }
  0x2f   :  { %9675 = vst [vmem:[#allocation9_spill] sm:$0xff] %v5271_v8  ;;  %v472_v10 = vmul.f32 0.2, %v4375_v3  ;;  %vm436_vm1 = vcmp.ge.f32.partialorder %v4375_v3, 0.0  ;;  %v332_v11 = vmul.f32 0.2, %v4344_v7 }
  0x30   :  { %vm296_vm2 = vcmp.ge.f32.partialorder %v4344_v7, 0.0  ;;  %v793_v13 = vrot.slane %v5271_v8, 1  ;;  %v794_v16 = vrot.slane %v222_v9, 1  ;;  %v4412_v18 = vld [vmem:[%s9573_s1 + $0x390] sm:$0xff]  ;;  %v4343_v22 = vld [vmem:[%s9573_s1 + $0x168] sm:$0x1] }
  0x31   :  { %1343 = vrot.lane.b32.xlu1 %v5099_v24, %s5013_s9  ;;  %708 = vrot.lane.b32.xlu0 %v5255_v61, %s5006_s13  ;;  %v508_v19 = vsel %vm436_vm1, %v4375_v3, %v472_v10  ;;  %v115_v20 = vld [vmem:[%s9573_s1 + $0x50] sm:$0xff]  ;;  %v1139_v23 = vrot.slane %v5234_v52, 1  ;;  %s5014_s26 = smov 36   ;;  %v5295_v25 = vsel %vm296_vm2, %v4344_v7, %v332_v11  ;;  %v618_v27 = vmul.f32 0.2, %v4412_v18  ;;  %s5015_s15 = smov 40  }
  0x32   :  { %v5298_v26 = vsel %vm9580_vm0, %v793_v13, %v794_v16  ;;  %v1140_v28 = vrot.slane %v508_v19, 1  ;;  %v187_v30 = vmul.f32 0.2, %v115_v20  ;;  %vm582_vm3 = vcmp.ge.f32.partialorder %v4412_v18, 0.0  ;;  %v4377_v33 = vld [vmem:[%s9573_s1 + $0x278] sm:$0x1] }
  0x33   :  { %vm151_vm4 = vcmp.ge.f32.partialorder %v115_v20, 0.0  ;;  %v188_v31 = vmul.f32 0.2, %v116_v21  ;;  %v331_v32 = vmul.f32 0.2, %v4343_v22  ;;  %vm152_vm5 = vcmp.ge.f32.partialorder %v116_v21, 0.0 }
  0x34   :  { %vm295_vm6 = vcmp.ge.f32.partialorder %v4343_v22, 0.0  ;;  %v5310_v34 = vsel %vm582_vm3, %v4412_v18, %v618_v27  ;;  %v5313_v35 = vsel %vm9580_vm0, %v1139_v23, %v1140_v28  ;;  %v5315_v36 = vsel %vm151_vm4, %v115_v20, %v187_v30  ;;  %v4345_v56 = vld [vmem:[%s9573_s1 + $0x178] sm:$0x1]  ;;  %v4378_v9 = vld [vmem:[%s9573_s1 + $0x280] sm:$0xff]  ;;  %s5016_s22 = smov 44   ;;  %v4380_v23 = vld [vmem:[%s9573_s1 + $0x290] sm:$0xff] }
  0x35   :  { %1011 = vrot.lane.b32.xlu1 %v5264_v4, %s5009_s14  ;;  %1073 = vrot.lane.b32.xlu0 %v5266_v5, %s5010_s8  ;;  %9676 = vst [vmem:[#allocation10_spill] sm:$0xff] %v5315_v36  ;;  %v224_v40 = vsel %vm152_vm5, %v116_v21, %v188_v31  ;;  %v367_v41 = vsel %vm295_vm6, %v4343_v22, %v331_v32  ;;  %v474_v43 = vmul.f32 0.2, %v4377_v33  ;;  %vm438_vm7 = vcmp.ge.f32.partialorder %v4377_v33, 0.0  ;;  %v4413_v3 = vld [vmem:[%s9573_s1 + $0x398] sm:$0x1] }
  0x36   :  { %v905_v45 = vrot.slane %v5255_v61, 1  ;;  %v796_v46 = vrot.slane %v5315_v36, 1  ;;  %v797_v48 = vrot.slane %v224_v40, 1  ;;  %v906_v49 = vrot.slane %v367_v41, 1  ;;  %v4414_v30 = vld [vmem:[%s9573_s1 + $0x3a0] sm:$0xff]  ;;  %s5017_s10 = smov 48  }
  0x37   :  { %v510_v51 = vsel %vm438_vm7, %v4377_v33, %v474_v43  ;;  %v1142_v57 = vrot.slane %v5264_v4, 1  ;;  %v1251_v59 = vrot.slane %v5266_v5, 1  ;;  %v333_v1 = vmul.f32 0.2, %v4345_v56  ;;  %v118_v40 = vld [vmem:[%s9573_s1 + $0x68] sm:$0x1] }
  0x38   :  { %v5333_v60 = vsel %vm9580_vm0, %v796_v46, %v797_v48  ;;  %v5336_v62 = vsel %vm9580_vm0, %v905_v45, %v906_v49  ;;  %v1143_v63 = vrot.slane %v510_v51, 1  ;;  %vm297_vm9 = vcmp.ge.f32.partialorder %v4345_v56, 0.0  ;;  %v4416_v49 = vld [vmem:[%s9573_s1 + $0x3b0] sm:$0xff]  ;;  %s5018_s19 = smov 52   ;;  %s5019_s30 = smov 56  }
  0x39   :  { %1345 = vrot.lane.b32.xlu1 %v5158_v58, %s5013_s9  ;;  %1393 = vrot.lane.b32.xlu0 %v5089_v17, %s5014_s26  ;;  %v4411_v17 = vld [vmem:[%s9573_s1 + $0x388] sm:$0x1]  ;;  %v369_v7 = vsel %vm297_vm9, %v4345_v56, %v333_v1  ;;  %v619_v10 = vmul.f32 0.2, %v4413_v3  ;;  %vm583_vm10 = vcmp.ge.f32.partialorder %v4413_v3, 0.0  ;;  %v908_v11 = vrot.slane %v5295_v25, 1 }
  0x3a   :  { %v617_v44 = vmul.f32 0.2, %v4411_v17  ;;  %vm581_vm8 = vcmp.ge.f32.partialorder %v4411_v17, 0.0  ;;  %v909_v13 = vrot.slane %v369_v7, 1  ;;  %v475_v16 = vmul.f32 0.2, %v4378_v9 }
  0x3b   :  { %vm439_vm11 = vcmp.ge.f32.partialorder %v4378_v9, 0.0  ;;  %v655_v18 = vsel %vm583_vm10, %v4413_v3, %v619_v10  ;;  %v1254_v19 = vrot.slane %v5310_v34, 1  ;;  %v477_v28 = vmul.f32 0.2, %v4380_v23  ;;  %v120_v1 = vld [vmem:[%s9573_s1 + $0x78] sm:$0x1] }
  0x3c   :  { %v653_v55 = vsel %vm581_vm8, %v4411_v17, %v617_v44  ;;  %v5365_v20 = vsel %vm9580_vm0, %v908_v11, %v909_v13  ;;  %v5367_v21 = vsel %vm439_vm11, %v4378_v9, %v475_v16  ;;  %v1255_v22 = vrot.slane %v655_v18, 1  ;;  %v117_v17 = vld [vmem:[%s9573_s1 + $0x60] sm:$0xff]  ;;  %v4379_v44 = vld [vmem:[%s9573_s1 + $0x288] sm:$0x1]  ;;  %s5020_s29 = smov 60  }
  0x3d   :  { %710 = vrot.lane.b32.xlu1 %v5295_v25, %s5006_s13  ;;  %837 = vrot.lane.b32.xlu0 %v5298_v26, %s5007_s20  ;;  %v1252_v0 = vrot.slane %v653_v55, 1  ;;  %vm441_vm13 = vcmp.ge.f32.partialorder %v4380_v23, 0.0  ;;  %v620_v33 = vmul.f32 0.2, %v4414_v30  ;;  %vm584_vm14 = vcmp.ge.f32.partialorder %v4414_v30, 0.0 }
  0x3e   :  { %v5395_v32 = vsel %vm441_vm13, %v4380_v23, %v477_v28  ;;  %v189_v41 = vmul.f32 0.2, %v117_v17  ;;  %v190_v43 = vmul.f32 0.2, %v118_v40  ;;  %vm153_vm15 = vcmp.ge.f32.partialorder %v117_v17, 0.0 }
  0x3f   :  { %vm154_vm1 = vcmp.ge.f32.partialorder %v118_v40, 0.0  ;;  %v476_v51 = vmul.f32 0.2, %v4379_v44  ;;  %vm440_vm3 = vcmp.ge.f32.partialorder %v4379_v44, 0.0  ;;  %vm586_vm4 = vcmp.ge.f32.partialorder %v4416_v49, 0.0 }
  0x40   :  { %v5419_v46 = vsel %vm153_vm15, %v117_v17, %v189_v41  ;;  %v226_v48 = vsel %vm154_vm1, %v118_v40, %v190_v43  ;;  %v192_v10 = vmul.f32 0.2, %v120_v1  ;;  %vm156_vm6 = vcmp.ge.f32.partialorder %v120_v1, 0.0  ;;  %v4347_v11 = vld [vmem:[%s9573_s1 + $0x188] sm:$0x1] }
  0x41   :  { %1075 = vrot.lane.b32.xlu1 %v5310_v34, %s5010_s8  ;;  %1185 = vrot.lane.b32.xlu0 %v5313_v35, %s5011_s11  ;;  %9677 = vst [vmem:[#allocation11_spill] sm:$0xff] %v5419_v46  ;;  %v799_v56 = vrot.slane %v5419_v46, 1  ;;  %v4415_v16 = vld [vmem:[%s9573_s1 + $0x3a8] sm:$0x1]  ;;  %vm299_vm7 = vcmp.ge.f32.partialorder %v4347_v11, 0.0  ;;  %v1148_v43 = vrot.slane %v5395_v32, 1 }
  0x42   :  { %v621_v23 = vmul.f32 0.2, %v4415_v16  ;;  %vm585_vm9 = vcmp.ge.f32.partialorder %v4415_v16, 0.0 }
  0x45   :  { %1395 = vrot.lane.b32.xlu1 %v5144_v50, %s5014_s26  ;;  %1449 = vrot.lane.b32.xlu0 %v5114_v37, %s5015_s15  ;;  %v5346_v37 = vsel %vm9580_vm0, %v1142_v57, %v1143_v63  ;;  %v5349_v50 = vsel %vm9580_vm0, %v1251_v59, %v1252_v0  ;;  %v800_v57 = vrot.slane %v226_v48, 1  ;;  %v622_v59 = vmul.f32 0.2, %v4416_v49  ;;  %v119_v0 = vld [vmem:[%s9573_s1 + $0x70] sm:$0xff] }
  0x46   :  { %v512_v63 = vsel %vm440_vm3, %v4379_v44, %v476_v51  ;;  %v191_v9 = vmul.f32 0.2, %v119_v0  ;;  %vm155_vm5 = vcmp.ge.f32.partialorder %v119_v0, 0.0  ;;  %v657_v44 = vsel %vm585_vm9, %v4415_v16, %v621_v23 }
  0x47   :  { %v5445_v3 = vsel %vm586_vm4, %v4416_v49, %v622_v59  ;;  %v1146_v7 = vrot.slane %v512_v63, 1  ;;  %v1258_v63 = vrot.slane %v657_v44, 1  ;;  %v5570_v44 = vld [vmem:[%s9572_s0 + $0x48] sm:$0xff] }
  0x48   :  { %v5463_v18 = vsel %vm155_vm5, %v119_v0, %v191_v9 }
  0x49   :  { %839 = vrot.lane.b32.xlu1 %v5333_v60, %s5007_s20  ;;  %949 = vrot.lane.b32.xlu0 %v5336_v62, %s5008_s25  ;;  %9678 = vst [vmem:[#allocation12_spill] sm:$0xff] %v5463_v18  ;;  %v802_v28 = vrot.slane %v5463_v18, 1 }
  0x4d   :  { %1187 = vrot.lane.b32.xlu1 %v5346_v37, %s5011_s11  ;;  %1297 = vrot.lane.b32.xlu0 %v5349_v50, %s5012_s18 }
  0x51   :  { %1451 = vrot.lane.b32.xlu1 %v5190_v15, %s5015_s15  ;;  %1505 = vrot.lane.b32.xlu0 %v5127_v42, %s5016_s22  ;;  %v5374_v15 = vsel %vm9580_vm0, %v1254_v19, %v1255_v22  ;;  %v4346_v42 = vld [vmem:[%s9573_s1 + $0x180] sm:$0xff]  ;;  %v228_v19 = vsel %vm156_vm6, %v120_v1, %v192_v10  ;;  %v335_v22 = vmul.f32 0.2, %v4347_v11 }
  0x52   :  { %v334_v27 = vmul.f32 0.2, %v4346_v42  ;;  %vm298_vm12 = vcmp.ge.f32.partialorder %v4346_v42, 0.0  ;;  %v5501_v1 = vld [vmem:[%s9573_s1 + $0x2a0] sm:$0xff] }
  0x53   :  { %v371_v40 = vsel %vm299_vm7, %v4347_v11, %v335_v22  ;;  %v24_v10 = vld [vmem:[%s9572_s0] sm:$0xff]  ;;  %v25_v11 = vld [vmem:[%s9572_s0 + $0x8] sm:$0xff]  ;;  %v5529_v22 = vld [vmem:[%s9572_s0 + $0x18] sm:$0xff]  ;;  %vm49_vm7 = vcmp.ge.f32.partialorder %v5570_v44, 0.0 }
  0x54   :  { %v5393_v31 = vsel %vm298_vm12, %v4346_v42, %v334_v27  ;;  %v4349_v27 = vld [vmem:[%s9573_s1 + $0x198] sm:$0x1]  ;;  %v912_v49 = vrot.slane %v371_v40, 1  ;;  %vm9598_vm12 = vcmask 130048   ;;  %v5551_v40 = vld [vmem:[%s9572_s0 + $0x30] sm:$0xff]  ;;  %vm40_vm13 = vcmp.ge.f32.partialorder %v24_v10, 0.0 }
  0x55   :  { %951 = vrot.lane.b32.xlu1 %v5365_v20, %s5008_s25  ;;  %1013 = vrot.lane.b32.xlu0 %v5367_v21, %s5009_s14  ;;  %v911_v41 = vrot.slane %v5393_v31, 1  ;;  %vm301_vm10 = vcmp.ge.f32.partialorder %v4349_v27, 0.0  ;;  %vm43_vm1 = vcmp.ge.f32.partialorder %v5529_v22, 0.0  ;;  %vm46_vm4 = vcmp.ge.f32.partialorder %v5551_v40, 0.0 }
  0x57   :  { %v5518_v16 = vsel %vm9580_vm0, %v911_v41, %v912_v49  ;;  %v5584_v49 = vld [vmem:[%s9572_s0 + $0x58] sm:$0xff] }
  0x59   :  { %1299 = vrot.lane.b32.xlu1 %v5374_v15, %s5012_s18  ;;  %1347 = vrot.lane.b32.xlu0 %v5174_v6, %s5013_s9 }
  0x5d   :  { %1507 = vrot.lane.b32.xlu1 %v5211_v38, %s5016_s22  ;;  %1555 = vrot.lane.b32.xlu0 %v5152_v54, %s5017_s10  ;;  %v5407_v54 = vsel %vm584_vm14, %v4414_v30, %v620_v33  ;;  %v4348_v38 = vld [vmem:[%s9573_s1 + $0x190] sm:$0xff]  ;;  %v803_v30 = vrot.slane %v228_v19, 1  ;;  %v4417_v33 = vld [vmem:[%s9573_s1 + $0x3b8] sm:$0x1]  ;;  %vm41_vm14 = vcmp.ge.f32.partialorder %v25_v11, 0.0 }
  0x5e   :  { %v336_v45 = vmul.f32 0.2, %v4348_v38  ;;  %vm300_vm2 = vcmp.ge.f32.partialorder %v4348_v38, 0.0  ;;  %vm587_vm11 = vcmp.ge.f32.partialorder %v4417_v33, 0.0  ;;  %v1257_v59 = vrot.slane %v5407_v54, 1  ;;  %v26_v19 = vld [vmem:[%s9572_s0 + $0x10] sm:$0xff] }
  0x5f   :  { %v5485_v48 = vsel %vm9580_vm0, %v802_v28, %v803_v30  ;;  %v5541_v30 = vmul.f32 0.2, %v5501_v1  ;;  %vm42_vm15 = vcmp.ge.f32.partialorder %v26_v19, 0.0 }
  0x60   :  { %v5428_v55 = vsel %vm300_vm2, %v4348_v38, %v336_v45  ;;  %v623_v45 = vmul.f32 0.2, %v4417_v33  ;;  %v5559_v41 = vsel %vm9580_vm0, %v1257_v59, %v1258_v63 }
  0x61   :  { %712 = vrot.lane.b32.xlu1 %v5393_v31, %s5006_s13  ;;  %1015 = vrot.lane.b32.xlu0 %v5395_v32, %s5009_s14 }
  0x62   :  { %v5508_v9 = vsel %vm587_vm11, %v4417_v33, %v623_v45  ;;  %v5546_v33 = vld [vmem:[%s9572_s0 + $0x28] sm:$0xff]  ;;  %v5575_v45 = vld [vmem:[%s9572_s0 + $0x50] sm:$0xff] }
  0x63   :  { %vm45_vm3 = vcmp.ge.f32.partialorder %v5546_v33, 0.0  ;;  %vm50_vm9 = vcmp.ge.f32.partialorder %v5575_v45, 0.0  ;;  %v61_v6 = vmul.f32 0.2, %v5546_v33 }
  0x65   :  { %1077 = vrot.lane.b32.xlu1 %v5407_v54, %s5010_s8  ;;  %1349 = vrot.lane.b32.xlu0 %v5271_v8, %s5013_s9 }
  0x69   :  { %1397 = vrot.lane.b32.xlu1 %v5171_v2, %s5014_s26  ;;  %1557 = vrot.lane.b32.xlu0 %v5234_v52, %s5017_s10  ;;  %v1145_v2 = vrot.slane %v5367_v21, 1  ;;  %v5443_v52 = vsel %vm9580_vm0, %v799_v56, %v800_v57 }
  0x6b   :  { %v5458_v13 = vsel %vm9580_vm0, %v1145_v2, %v1146_v7  ;;  %v914_v7 = vrot.slane %v5428_v55, 1 }
  0x6d   :  { %1605 = vrot.lane.b32.xlu1 %v5187_v14, %s5018_s19  ;;  %714 = vrot.lane.b32.xlu0 %v5428_v55, %s5006_s13  ;;  %v4381_v14 = vld [vmem:[%s9573_s1 + $0x298] sm:$0x1] }
  0x6e   :  { %v478_v42 = vmul.f32 0.2, %v4381_v14  ;;  %vm442_vm8 = vcmp.ge.f32.partialorder %v4381_v14, 0.0 }
  0x70   :  { %v514_v38 = vsel %vm442_vm8, %v4381_v14, %v478_v42  ;;  %v5534_v42 = vld [vmem:[%s9572_s0 + $0x20] sm:$0xff]  ;;  %vm443_vm8 = vcmp.ge.f32.partialorder %v5501_v1, 0.0  ;;  %v56_v14 = vmul.f32 0.2, %v24_v10 }
  0x71   :  { %841 = vrot.lane.b32.xlu1 %v5443_v52, %s5007_s20  ;;  %1079 = vrot.lane.b32.xlu0 %v5445_v3, %s5010_s8  ;;  %v1149_v51 = vrot.slane %v514_v38, 1  ;;  %v5556_v38 = vld [vmem:[%s9572_s0 + $0x38] sm:$0xff]  ;;  %vm44_vm2 = vcmp.ge.f32.partialorder %v5534_v42, 0.0  ;;  %v60_v8 = vmul.f32 0.2, %v5534_v42 }
  0x72   :  { %vm47_vm5 = vcmp.ge.f32.partialorder %v5556_v38, 0.0  ;;  %v72_v58 = vsel %vm40_vm13, %v24_v10, %v56_v14  ;;  %v66_v10 = vmul.f32 0.2, %v5575_v45  ;;  %v67_v14 = vmul.f32 0.2, %v5584_v49 }
  0x73   :  { %89 = vst.msk [vmem:[%s9578_s6] sm:$0xff] %vm9598_vm12, %v72_v58 }
  0x75   :  { %1189 = vrot.lane.b32.xlu1 %v5458_v13, %s5011_s11  ;;  %1399 = vrot.lane.b32.xlu0 %v5255_v61, %s5014_s26  ;;  %v337_v61 = vmul.f32 0.2, %v4349_v27 }
  0x77   :  { %v5476_v17 = vpop.permute.xlu0 %700  ;;  %v373_v0 = vsel %vm301_vm10, %v4349_v27, %v337_v61  ;;  %vm51_vm10 = vcmp.ge.f32.partialorder %v5584_v49, 0.0  ;;  %v59_v61 = vmul.f32 0.2, %v5529_v22 }
  0x78   :  { %v915_v28 = vrot.slane %v373_v0, 1  ;;  %v38_v0 = vld [vmem:[%s9572_s0 + $0x70] sm:$0xff] }
  0x79   :  { %1453 = vrot.lane.b32.xlu1 %v5204_v29, %s5015_s15  ;;  %1607 = vrot.lane.b32.xlu0 %v5266_v5, %s5018_s19  ;;  %v2019_v29 = vld [vmem:[%s9575_s3] sm:$0xff]  ;;  %v2020_v5 = vld [vmem:[%s9575_s3 + $0x8] sm:$0xff]  ;;  %vm54_vm13 = vcmp.ge.f32.partialorder %v38_v0, 0.0 }
  0x7a   :  { %v4884_v2 = vpack.c.bf16 %v2020_v5, %v2019_v29  ;;  %v5597_v29 = vld [vmem:[%s9572_s0 + $0x68] sm:$0xff]  ;;  %v5608_v63 = vsel %vm9580_vm0, %v914_v7, %v915_v28  ;;  %v57_v7 = vmul.f32 0.2, %v25_v11  ;;  %v58_v28 = vmul.f32 0.2, %v26_v19 }
  0x7b   :  { %v5487_v56 = vpop.permute.xlu1 %829  ;;  %v5489_v57 = vpop.permute.xlu0 %702 }
  0x7c   :  { %9679 = vst [vmem:[#allocation13_spill] sm:$0xff] %v5489_v57  ;;  %4885 = vmatprep.subr.bf16.mxu0 %v4884_v2  ;;  %v73_v57 = vsel %vm41_vm14, %v25_v11, %v57_v7  ;;  %v69_v11 = vmul.f32 0.2, %v5597_v29  ;;  %v75_v7 = vsel %vm43_vm1, %v5529_v22, %v59_v61  ;;  %v2023_v61 = vld [vmem:[%s9575_s3 + $0x20] sm:$0xff] }
  0x7d   :  { %1661 = vrot.lane.b32.xlu1 %v5214_v39, %s5019_s30  ;;  %843 = vrot.lane.b32.xlu0 %v5485_v48, %s5007_s20  ;;  %v5521_v39 = vsel %vm9580_vm0, %v1148_v43, %v1149_v51  ;;  %v5565_v43 = vld [vmem:[%s9572_s0 + $0x40] sm:$0xff]  ;;  %vm53_vm0 = vcmp.ge.f32.partialorder %v5597_v29, 0.0  ;;  %90 = vst.msk [vmem:[%s9578_s6 + $0x8] sm:$0xff] %vm9598_vm12, %v73_v57 }
  0x7e   :  { %9680 = vst [vmem:[#allocation14_spill] sm:$0xff] %v5521_v39  ;;  %4887 = vmatpush3.bf16.msra.mxu0 %v4884_v2  ;;  %v5589_v51 = vld [vmem:[%s9572_s0 + $0x60] sm:$0xff]  ;;  %vm48_vm6 = vcmp.ge.f32.partialorder %v5565_v43, 0.0  ;;  %v5617_v2 = vld [vmem:[%s9572_s0 + $0x78] sm:$0xff]  ;;  %v64_v24 = vmul.f32 0.2, %v5565_v43 }
  0x7f   :  { %v5536_v23 = vpop.permute.xlu1 %831  ;;  %v5538_v27 = vpop.permute.xlu0 %941  ;;  %vm52_vm11 = vcmp.ge.f32.partialorder %v5589_v51, 0.0  ;;  %vm55_vm14 = vcmp.ge.f32.partialorder %v5617_v2, 0.0  ;;  %v68_v58 = vmul.f32 0.2, %v5589_v51  ;;  %v71_v57 = vmul.f32 0.2, %v5617_v2 }
  0x80   :  { %9681 = vst [vmem:[#allocation15_spill] sm:$0xff] %v5536_v23  ;;  %9682 = vst [vmem:[#allocation16_spill] sm:$0xff] %v5538_v27  ;;  %v63_v23 = vmul.f32 0.2, %v5556_v38  ;;  %v74_v27 = vsel %vm42_vm15, %v26_v19, %v58_v28  ;;  %v70_v19 = vmul.f32 0.2, %v38_v0  ;;  %v76_v28 = vsel %vm44_vm2, %v5534_v42, %v60_v8 }
  0x81   :  { %953 = vrot.lane.b32.xlu1 %v5518_v16, %s5008_s25  ;;  %1191 = vrot.lane.b32.xlu0 %v5521_v39, %s5011_s11  ;;  %91 = vst.msk [vmem:[%s9578_s6 + $0x10] sm:$0xff] %vm9598_vm12, %v74_v27  ;;  %v77_v27 = vsel %vm45_vm3, %v5546_v33, %v61_v6  ;;  %v80_v22 = vsel %vm48_vm6, %v5565_v43, %v64_v24  ;;  %92 = vst.msk [vmem:[%s9578_s6 + $0x18] sm:$0xff] %vm9598_vm12, %v75_v7 }
  0x82   :  { %93 = vst.msk [vmem:[%s9578_s6 + $0x20] sm:$0xff] %vm9598_vm12, %v76_v28  ;;  %v2021_v6 = vld [vmem:[%s9575_s3 + $0x10] sm:$0xff]  ;;  %v2022_v8 = vld [vmem:[%s9575_s3 + $0x18] sm:$0xff]  ;;  %v82_v33 = vsel %vm50_vm9, %v5575_v45, %v66_v10  ;;  %94 = vst.msk [vmem:[%s9578_s6 + $0x28] sm:$0xff] %vm9598_vm12, %v77_v27  ;;  %v86_v45 = vsel %vm54_vm13, %v38_v0, %v70_v19 }
  0x83   :  { %v5603_v5 = vpop.permute.xlu1 %943  ;;  %v5605_v59 = vpop.permute.xlu0 %1005  ;;  %97 = vst.msk [vmem:[%s9578_s6 + $0x40] sm:$0xff] %vm9598_vm12, %v80_v22  ;;  %v2024_v43 = vld [vmem:[%s9575_s3 + $0x28] sm:$0xff]  ;;  %99 = vst.msk [vmem:[%s9578_s6 + $0x50] sm:$0xff] %vm9598_vm12, %v82_v33  ;;  %v4384_v19 = vld [vmem:[%s9573_s1 + $0x2b0] sm:$0xff] }
  0x84   :  { %9683 = vst [vmem:[#allocation17_spill] sm:$0xff] %v5603_v5  ;;  %9684 = vst [vmem:[#allocation18_spill] sm:$0xff] %v5605_v59  ;;  %v62_v5 = vmul.f32 0.2, %v5551_v40  ;;  %v65_v59 = vmul.f32 0.2, %v5570_v44  ;;  %v4892_v0 = vpack.c.bf16 %v2024_v43, %v2023_v61 }
  0x85   :  { %1301 = vrot.lane.b32.xlu1 %v5559_v41, %s5012_s18  ;;  %1455 = vrot.lane.b32.xlu0 %v5298_v26, %s5015_s15  ;;  %103 = vst.msk [vmem:[%s9578_s6 + $0x70] sm:$0xff] %vm9598_vm12, %v86_v45  ;;  %v481_v7 = vmul.f32 0.2, %v4384_v19  ;;  %vm445_vm1 = vcmp.ge.f32.partialorder %v4384_v19, 0.0 }
  0x87   :  { %v5639_v26 = vpop.permute.xlu1 %704  ;;  %v5641_v39 = vpop.permute.xlu0 %1007 }
  0x89   :  { %1509 = vrot.lane.b32.xlu1 %v5226_v47, %s5016_s22  ;;  %1663 = vrot.lane.b32.xlu0 %v5313_v35, %s5019_s30  ;;  %v78_v47 = vsel %vm46_vm4, %v5551_v40, %v62_v5  ;;  %v79_v35 = vsel %vm47_vm5, %v5556_v38, %v63_v23  ;;  %v81_v23 = vsel %vm49_vm7, %v5570_v44, %v65_v59  ;;  %v9687_v5 = vrot.slane %v5445_v3, 1 }
  0x8a   :  { %v83_v40 = vsel %vm51_vm10, %v5584_v49, %v67_v14  ;;  %v84_v38 = vsel %vm52_vm11, %v5589_v51, %v68_v58  ;;  %95 = vst.msk [vmem:[%s9578_s6 + $0x30] sm:$0xff] %vm9598_vm12, %v78_v47  ;;  %96 = vst.msk [vmem:[%s9578_s6 + $0x38] sm:$0xff] %vm9598_vm12, %v79_v35  ;;  %v85_v44 = vsel %vm53_vm0, %v5597_v29, %v69_v11  ;;  %v9686_v29 = vrot.slane %v5508_v9, 1  ;;  %v2026_v9 = vld [vmem:[%s9575_s3 + $0x38] sm:$0xff]  ;;  %v4352_v11 = vld [vmem:[%s9573_s1 + $0x1b0] sm:$0xff] }
  0x8b   :  { %v5695_v42 = vpop.permute.xlu1 %1069  ;;  %v5697_v24 = vpop.permute.xlu0 %706  ;;  %98 = vst.msk [vmem:[%s9578_s6 + $0x48] sm:$0xff] %vm9598_vm12, %v81_v23  ;;  %100 = vst.msk [vmem:[%s9578_s6 + $0x58] sm:$0xff] %vm9598_vm12, %v83_v40  ;;  %v87_v49 = vsel %vm55_vm14, %v5617_v2, %v71_v57  ;;  %v4888_v51 = vpack.c.bf16 %v2022_v8, %v2021_v6  ;;  %vm9688_vm0 = vcmask 1046528   ;;  %v340_v57 = vmul.f32 0.2, %v4352_v11  ;;  %v4418_v47 = vld [vmem:[%s9573_s1 + $0x3c0] sm:$0xff] }
  0x8c   :  { %9685 = vst [vmem:[#allocation19_spill] sm:$0xff] %v5697_v24  ;;  %101 = vst.msk [vmem:[%s9578_s6 + $0x60] sm:$0xff] %vm9598_vm12, %v84_v38  ;;  %v5779_v59 = vsel %vm9688_vm0, %v9687_v5, %v9686_v29  ;;  %vm304_vm15 = vcmp.ge.f32.partialorder %v4352_v11, 0.0  ;;  %v5826_v35 = vsel %vm445_vm1, %v4384_v19, %v481_v7  ;;  %v624_v22 = vmul.f32 0.2, %v4418_v47  ;;  %v123_v23 = vld [vmem:[%s9573_s1 + $0x90] sm:$0xff] }
  0x8d   :  { %1717 = vrot.lane.b32.xlu1 %v5237_v53, %s5020_s29  ;;  %955 = vrot.lane.b32.xlu0 %v5608_v63, %s5008_s25  ;;  %102 = vst.msk [vmem:[%s9578_s6 + $0x68] sm:$0xff] %vm9598_vm12, %v85_v44  ;;  %v5772_v53 = vsel %vm443_vm8, %v5501_v1, %v5541_v30  ;;  %104 = vst.msk [vmem:[%s9578_s6 + $0x78] sm:$0xff] %vm9598_vm12, %v87_v49  ;;  %vm588_vm2 = vcmp.ge.f32.partialorder %v4418_v47, 0.0  ;;  %v195_v61 = vmul.f32 0.2, %v123_v23  ;;  %vm159_vm3 = vcmp.ge.f32.partialorder %v123_v23, 0.0 }
  0x8e   :  { %4889 = vmatprep.subr.bf16.mxu0 %v4888_v51  ;;  %v2025_v1 = vld [vmem:[%s9575_s3 + $0x30] sm:$0xff]  ;;  %v4354_v38 = vld [vmem:[%s9573_s1 + $0x1c0] sm:$0xff]  ;;  %v4383_v44 = vld [vmem:[%s9573_s1 + $0x2a8] sm:$0x1] }
  0x8f   :  { %v5785_v2 = vpop.permute.xlu1 %833  ;;  %v5787_v10 = vpop.permute.xlu0 %1071  ;;  %4891 = vmatpush3.bf16.msra.mxu0 %v4888_v51  ;;  %v4896_v30 = vpack.c.bf16 %v2026_v9, %v2025_v1  ;;  %v342_v45 = vmul.f32 0.2, %v4354_v38  ;;  %vm306_vm5 = vcmp.ge.f32.partialorder %v4354_v38, 0.0  ;;  %v5862_v29 = vsel %vm159_vm3, %v123_v23, %v195_v61  ;;  %vm9695_vm8 = vmmov %vm9688_vm0 }
  0x90   :  { %4893 = vmatprep.subr.bf16.mxu0 %v4892_v0  ;;  %9692 = vst [vmem:[#allocation23_spill] sm:$0xff] %v5862_v29  ;;  %v480_v1 = vmul.f32 0.2, %v4383_v44  ;;  %vm444_vm6 = vcmp.ge.f32.partialorder %v4383_v44, 0.0  ;;  %vm9696_vm11 = vmmov %vm9688_vm0 }
  0x91   :  { %1017 = vrot.lane.b32.xlu1 %v5772_v53, %s5009_s14  ;;  %1303 = vrot.lane.b32.xlu0 %v5779_v59, %s5012_s18  ;;  %v5871_v9 = vsel %vm306_vm5, %v4354_v38, %v342_v45  ;;  %vm9703_vm1 = vmmov %vm9695_vm8 }
  0x93   :  { %v5799_v14 = vpop.permute.xlu1 %1181  ;;  %v5801_v58 = vpop.permute.xlu0 %835  ;;  %4895 = vmatpush3.bf16.msra.mxu0 %v4892_v0  ;;  %v4420_v0 = vld [vmem:[%s9573_s1 + $0x3d0] sm:$0xff] }
  0x94   :  { %9689 = vst [vmem:[#allocation20_spill] sm:$0xff] %v5801_v58  ;;  %4897 = vmatprep.subr.bf16.mxu0 %v4896_v30  ;;  %v626_v19 = vmul.f32 0.2, %v4420_v0  ;;  %vm590_vm7 = vcmp.ge.f32.partialorder %v4420_v0, 0.0 }
  0x95   :  { %1351 = vrot.lane.b32.xlu1 %v5315_v36, %s5013_s9  ;;  %1511 = vrot.lane.b32.xlu0 %v5336_v62, %s5016_s22  ;;  %v5824_v62 = vsel %vm304_vm15, %v4352_v11, %v340_v57  ;;  %vm9702_vm15 = vmmov %vm9695_vm8 }
  0x96   :  { %v917_v36 = vrot.slane %v5824_v62, 1 }
  0x97   :  { %v5813_v28 = vpop.permute.xlu1 %945  ;;  %v5815_v27 = vpop.permute.xlu0 %1183  ;;  %4899 = vmatpush3.bf16.msra.mxu0 %v4896_v30  ;;  %v805_v30 = vrot.slane %v5862_v29, 1 }
  0x99   :  { %1559 = vrot.lane.b32.xlu1 %v5264_v4, %s5017_s10  ;;  %1719 = vrot.lane.b32.xlu0 %v5349_v50, %s5020_s29  ;;  %v124_v4 = vld [vmem:[%s9573_s1 + $0x98] sm:$0x1]  ;;  %v5842_v50 = vsel %vm588_vm2, %v4418_v47, %v624_v22  ;;  %v516_v47 = vsel %vm444_vm6, %v4383_v44, %v480_v1  ;;  %v125_v22 = vld [vmem:[%s9573_s1 + $0xa0] sm:$0xff]  ;;  %vm9704_vm2 = vmmov %vm9703_vm1 }
  0x9a   :  { %v196_v43 = vmul.f32 0.2, %v124_v4  ;;  %vm160_vm4 = vcmp.ge.f32.partialorder %v124_v4, 0.0  ;;  %v1152_v38 = vrot.slane %v516_v47, 1  ;;  %v197_v44 = vmul.f32 0.2, %v125_v22  ;;  %vm9711_vm6 = vmmov %vm9703_vm1 }
  0x9b   :  { %v5828_v6 = vpop.permute.xlu1 %1293  ;;  %v5830_v8 = vpop.permute.xlu0 %947  ;;  %vm161_vm9 = vcmp.ge.f32.partialorder %v125_v22, 0.0 }
  0x9c   :  { %9690 = vst [vmem:[#allocation21_spill] sm:$0xff] %v5830_v8  ;;  %v232_v5 = vsel %vm160_vm4, %v124_v4, %v196_v43  ;;  %v5890_v4 = vsel %vm590_vm7, %v4420_v0, %v626_v19  ;;  %vm9708_vm4 = vmmov %vm9703_vm1 }
  0x9d   :  { %716 = vrot.lane.b32.xlu1 %v5824_v62, %s5006_s13  ;;  %1019 = vrot.lane.b32.xlu0 %v5826_v35, %s5009_s14  ;;  %v806_v11 = vrot.slane %v232_v5, 1  ;;  %v4385_v5 = vld [vmem:[%s9573_s1 + $0x2b8] sm:$0x1]  ;;  %v4355_v62 = vld [vmem:[%s9573_s1 + $0x1c8] sm:$0x1] }
  0x9e   :  { %v482_v29 = vmul.f32 0.2, %v4385_v5  ;;  %vm446_vm14 = vcmp.ge.f32.partialorder %v4385_v5, 0.0  ;;  %vm307_vm3 = vcmp.ge.f32.partialorder %v4355_v62, 0.0 }
  0x9f   :  { %v5844_v33 = vpop.permute.xlu1 %1009  ;;  %v5846_v40 = vpop.permute.xlu0 %1295  ;;  %v807_v23 = vsel %vm9695_vm8, %v805_v30, %v806_v11  ;;  %v5912_v11 = vsel %vm161_vm9, %v125_v22, %v197_v44  ;;  %vm9715_vm8 = vmmov %vm9703_vm1 }
  0xa0   :  { %9699 = vst [vmem:[#allocation28_spill] sm:$0xff] %v5912_v11 }
  0xa1   :  { %1081 = vrot.lane.b32.xlu1 %v5842_v50, %s5010_s8  ;;  %1353 = vrot.lane.b32.xlu0 %v5419_v46, %s5013_s9 }
  0xa3   :  { %v5858_v49 = vpop.permute.xlu1 %1343  ;;  %v5860_v51 = vpop.permute.xlu0 %708 }
  0xa4   :  { %9691 = vst [vmem:[#allocation22_spill] sm:$0xff] %v5860_v51 }
  0xa5   :  { %1401 = vrot.lane.b32.xlu1 %v5295_v25, %s5014_s26  ;;  %1561 = vrot.lane.b32.xlu0 %v5367_v21, %s5017_s10  ;;  %v126_v25 = vld [vmem:[%s9573_s1 + $0xa8] sm:$0x1]  ;;  %v1151_v21 = vrot.slane %v5772_v53, 1 }
  0xa6   :  { %v198_v45 = vmul.f32 0.2, %v126_v25  ;;  %vm162_vm10 = vcmp.ge.f32.partialorder %v126_v25, 0.0 }
  0xa7   :  { %v5874_v57 = vpop.permute.xlu1 %1011  ;;  %v5876_v7 = vpop.permute.xlu0 %1073  ;;  %v5906_v0 = vsel %vm9696_vm11, %v1151_v21, %v1152_v38  ;;  %v808_v21 = vrot.slane %v5912_v11, 1 }
  0xa8   :  { %9693 = vst [vmem:[#allocation24_spill] sm:$0xff] %v5874_v57  ;;  %9694 = vst [vmem:[#allocation25_spill] sm:$0xff] %v5876_v7  ;;  %v234_v19 = vsel %vm162_vm10, %v126_v25, %v198_v45  ;;  %v518_v45 = vsel %vm446_vm14, %v4385_v5, %v482_v29  ;;  %v4426_v57 = vld [vmem:[%s9573_s1 + $0x400] sm:$0xff]  ;;  %v9737_v7 = vld [vmem:[#allocation16_spill] sm:$0xff] }
  0xa9   :  { %1609 = vrot.lane.b32.xlu1 %v5310_v34, %s5018_s19  ;;  %718 = vrot.lane.b32.xlu0 %v5871_v9, %s5006_s13  ;;  %v4353_v34 = vld [vmem:[%s9573_s1 + $0x1b8] sm:$0x1]  ;;  %v809_v38 = vrot.slane %v234_v19, 1 }
  0xaa   :  { %v341_v47 = vmul.f32 0.2, %v4353_v34  ;;  %vm305_vm13 = vcmp.ge.f32.partialorder %v4353_v34, 0.0 }
  0xab   :  { %v5892_v61 = vpop.permute.xlu1 %1345  ;;  %v5894_v43 = vpop.permute.xlu0 %1393  ;;  %v5933_v19 = vsel %vm9702_vm15, %v808_v21, %v809_v38 }
  0xac   :  { %v377_v44 = vsel %vm305_vm13, %v4353_v34, %v341_v47 }
  0xad   :  { %845 = vrot.lane.b32.xlu1 %v807_v23, %s5007_s20  ;;  %1083 = vrot.lane.b32.xlu0 %v5890_v4, %s5010_s8  ;;  %v4419_v23 = vld [vmem:[%s9573_s1 + $0x3c8] sm:$0x1] }
  0xae   :  { %v625_v46 = vmul.f32 0.2, %v4419_v23  ;;  %vm589_vm0 = vcmp.ge.f32.partialorder %v4419_v23, 0.0 }
  0xaf   :  { %v5908_v1 = vpop.permute.xlu1 %710  ;;  %v5910_v30 = vpop.permute.xlu0 %837 }
  0xb0   :  { %9697 = vst [vmem:[#allocation26_spill] sm:$0xff] %v5908_v1  ;;  %9698 = vst [vmem:[#allocation27_spill] sm:$0xff] %v5910_v30  ;;  %v918_v1 = vrot.slane %v377_v44, 1  ;;  %v1155_v30 = vrot.slane %v518_v45, 1  ;;  %v661_v34 = vsel %vm589_vm0, %v4419_v23, %v625_v46  ;;  %v343_v23 = vmul.f32 0.2, %v4355_v62 }
  0xb1   :  { %1193 = vrot.lane.b32.xlu1 %v5906_v0, %s5011_s11  ;;  %1403 = vrot.lane.b32.xlu0 %v5393_v31, %s5014_s26  ;;  %v1154_v31 = vrot.slane %v5826_v35, 1  ;;  %v1264_v47 = vrot.slane %v661_v34, 1  ;;  %v920_v45 = vrot.slane %v5871_v9, 1 }
  0xb2   :  { %v379_v38 = vsel %vm307_vm3, %v4355_v62, %v343_v23  ;;  %vm9728_vm3 = vmmov %vm9708_vm4 }
  0xb3   :  { %v5922_v22 = vpop.permute.xlu1 %1075  ;;  %v5924_v25 = vpop.permute.xlu0 %1185  ;;  %v5949_v5 = vsel %vm9704_vm2, %v1154_v31, %v1155_v30  ;;  %v921_v31 = vrot.slane %v379_v38, 1  ;;  %vm596_vm2 = vcmp.ge.f32.partialorder %v4426_v57, 0.0 }
  0xb4   :  { %9700 = vst [vmem:[#allocation29_spill] sm:$0xff] %v5922_v22  ;;  %9701 = vst [vmem:[#allocation30_spill] sm:$0xff] %v5924_v25  ;;  %v4389_v22 = vld [vmem:[%s9573_s1 + $0x2d8] sm:$0x1] }
  0xb5   :  { %1457 = vrot.lane.b32.xlu1 %v5333_v60, %s5015_s15  ;;  %1611 = vrot.lane.b32.xlu0 %v5407_v54, %s5018_s19  ;;  %v1263_v60 = vrot.slane %v5842_v50, 1  ;;  %v919_v54 = vsel %vm9703_vm1, %v917_v36, %v918_v1  ;;  %9705 = vst [vmem:[#allocation31_spill] sm:$0xff] %v5949_v5  ;;  %v486_v8 = vmul.f32 0.2, %v4389_v22  ;;  %vm450_vm1 = vcmp.ge.f32.partialorder %v4389_v22, 0.0 }
  0xb7   :  { %v5935_v51 = vpop.permute.xlu1 %1395  ;;  %v5937_v29 = vpop.permute.xlu0 %1449  ;;  %v5962_v36 = vsel %vm9708_vm4, %v1263_v60, %v1264_v47  ;;  %v5986_v47 = vsel %vm9711_vm6, %v920_v45, %v921_v31  ;;  %v4356_v31 = vld [vmem:[%s9573_s1 + $0x1d0] sm:$0xff]  ;;  %v522_v24 = vsel %vm450_vm1, %v4389_v22, %v486_v8  ;;  %vm9599_vm1 = vcmask 162816  }
  0xb8   :  { %9712 = vst [vmem:[#allocation36_spill] sm:$0xff] %v5986_v47  ;;  %vm308_vm9 = vcmp.ge.f32.partialorder %v4356_v31, 0.0 }
  0xb9   :  { %1665 = vrot.lane.b32.xlu1 %v5346_v37, %s5019_s30  ;;  %847 = vrot.lane.b32.xlu0 %v5933_v19, %s5007_s20  ;;  %v4421_v37 = vld [vmem:[%s9573_s1 + $0x3d8] sm:$0x1] }
  0xba   :  { %v627_v44 = vmul.f32 0.2, %v4421_v37  ;;  %vm591_vm5 = vcmp.ge.f32.partialorder %v4421_v37, 0.0 }
  0xbb   :  { %v5951_v21 = vpop.permute.xlu1 %839  ;;  %v5953_v46 = vpop.permute.xlu0 %949 }
  0xbc   :  { %9706 = vst [vmem:[#allocation32_spill] sm:$0xff] %v5951_v21  ;;  %9707 = vst [vmem:[#allocation33_spill] sm:$0xff] %v5953_v46  ;;  %v663_v62 = vsel %vm591_vm5, %v4421_v37, %v627_v44 }
  0xbd   :  { %957 = vrot.lane.b32.xlu1 %v919_v54, %s5008_s25  ;;  %1195 = vrot.lane.b32.xlu0 %v5949_v5, %s5011_s11  ;;  %v4388_v54 = vld [vmem:[%s9573_s1 + $0x2d0] sm:$0xff]  ;;  %v1267_v38 = vrot.slane %v663_v62, 1  ;;  %v344_v62 = vmul.f32 0.2, %v4356_v31 }
  0xbe   :  { %v485_v23 = vmul.f32 0.2, %v4388_v54  ;;  %vm449_vm7 = vcmp.ge.f32.partialorder %v4388_v54, 0.0 }
  0xbf   :  { %v5964_v1 = vpop.permute.xlu1 %1187  ;;  %v5966_v30 = vpop.permute.xlu0 %1297 }
  0xc0   :  { %9709 = vst [vmem:[#allocation34_spill] sm:$0xff] %v5964_v1  ;;  %9710 = vst [vmem:[#allocation35_spill] sm:$0xff] %v5966_v30  ;;  %v127_v1 = vld [vmem:[%s9573_s1 + $0xb0] sm:$0xff] }
  0xc1   :  { %1305 = vrot.lane.b32.xlu1 %v5962_v36, %s5012_s18  ;;  %1459 = vrot.lane.b32.xlu0 %v5443_v52, %s5015_s15  ;;  %v1266_v52 = vrot.slane %v5890_v4, 1  ;;  %vm163_vm14 = vcmp.ge.f32.partialorder %v127_v1, 0.0 }
  0xc3   :  { %v5973_v34 = vpop.permute.xlu1 %1451  ;;  %v5975_v60 = vpop.permute.xlu0 %1505 }
  0xc5   :  { %1513 = vrot.lane.b32.xlu1 %v5365_v20, %s5016_s22  ;;  %1667 = vrot.lane.b32.xlu0 %v5458_v13, %s5019_s30  ;;  %v5996_v20 = vsel %vm449_vm7, %v4388_v54, %v485_v23  ;;  %v5999_v13 = vsel %vm9715_vm8, %v1266_v52, %v1267_v38  ;;  %v4390_v54 = vld [vmem:[%s9573_s1 + $0x2e0] sm:$0xff]  ;;  %vm9732_vm7 = vmmov %vm9728_vm3 }
  0xc6   :  { %9716 = vst [vmem:[#allocation39_spill] sm:$0xff] %v5999_v13  ;;  %v487_v52 = vmul.f32 0.2, %v4390_v54  ;;  %vm451_vm10 = vcmp.ge.f32.partialorder %v4390_v54, 0.0 }
  0xc7   :  { %v5988_v21 = vpop.permute.xlu1 %951  ;;  %v5990_v46 = vpop.permute.xlu0 %1013 }
  0xc8   :  { %9713 = vst [vmem:[#allocation37_spill] sm:$0xff] %v5988_v21  ;;  %9714 = vst [vmem:[#allocation38_spill] sm:$0xff] %v5990_v46  ;;  %v4424_v21 = vld [vmem:[%s9573_s1 + $0x3f0] sm:$0xff]  ;;  %v121_v46 = vld [vmem:[%s9573_s1 + $0x80] sm:$0xff] }
  0xc9   :  { %1721 = vrot.lane.b32.xlu1 %v5374_v15, %s5020_s29  ;;  %959 = vrot.lane.b32.xlu0 %v5986_v47, %s5008_s25  ;;  %vm594_vm11 = vcmp.ge.f32.partialorder %v4424_v21, 0.0  ;;  %vm157_vm13 = vcmp.ge.f32.partialorder %v121_v46, 0.0 }
  0xcb   :  { %v6001_v37 = vpop.permute.xlu1 %1299  ;;  %v6003_v44 = vpop.permute.xlu0 %1347 }
  0xcc   :  { %9717 = vst [vmem:[#allocation40_spill] sm:$0xff] %v6001_v37  ;;  %9718 = vst [vmem:[#allocation41_spill] sm:$0xff] %v6003_v44 }
  0xcd   :  { %1021 = vrot.lane.b32.xlu1 %v5996_v20, %s5009_s14  ;;  %1307 = vrot.lane.b32.xlu0 %v5999_v13, %s5012_s18 }
  0xcf   :  { %v6009_v45 = vpop.permute.xlu1 %1507  ;;  %v6011_v15 = vpop.permute.xlu0 %1555 }
  0xd1   :  { %1355 = vrot.lane.b32.xlu1 %v5463_v18, %s5013_s9  ;;  %1515 = vrot.lane.b32.xlu0 %v5518_v16, %s5016_s22  ;;  %v6037_v16 = vsel %vm308_vm9, %v4356_v31, %v344_v62  ;;  %v6039_v18 = vsel %vm451_vm10, %v4390_v54, %v487_v52  ;;  %v199_v54 = vmul.f32 0.2, %v127_v1  ;;  %vm1765_vm10 = vcmask 31744  }
  0xd3   :  { %v6023_v23 = vpop.permute.xlu1 %712  ;;  %v6025_v38 = vpop.permute.xlu0 %1015 }
  0xd4   :  { %9719 = vst [vmem:[#allocation42_spill] sm:$0xff] %v6023_v23  ;;  %9720 = vst [vmem:[#allocation43_spill] sm:$0xff] %v6025_v38  ;;  %v630_v23 = vmul.f32 0.2, %v4424_v21  ;;  %v193_v38 = vmul.f32 0.2, %v121_v46 }
  0xd5   :  { %1563 = vrot.lane.b32.xlu1 %v5395_v32, %s5017_s10  ;;  %1723 = vrot.lane.b32.xlu0 %v5559_v41, %s5020_s29  ;;  %v128_v32 = vld [vmem:[%s9573_s1 + $0xb8] sm:$0x1] }
  0xd6   :  { %v6055_v41 = vsel %vm594_vm11, %v4424_v21, %v630_v23  ;;  %v6057_v31 = vsel %vm157_vm13, %v121_v46, %v193_v38  ;;  %v200_v62 = vmul.f32 0.2, %v128_v32  ;;  %vm164_vm0 = vcmp.ge.f32.partialorder %v128_v32, 0.0 }
  0xd7   :  { %v6041_v13 = vpop.permute.xlu1 %1077  ;;  %v6043_v37 = vpop.permute.xlu0 %1349  ;;  %v6073_v46 = vsel %vm163_vm14, %v127_v1, %v199_v54  ;;  %vm9597_vm11 = vcmask 64512  }
  0xd8   :  { %9721 = vst [vmem:[#allocation44_spill] sm:$0xff] %v6041_v13  ;;  %9722 = vst [vmem:[#allocation45_spill] sm:$0xff] %v6043_v37  ;;  %v4358_v37 = vld [vmem:[%s9573_s1 + $0x1e0] sm:$0xff]  ;;  %v236_v23 = vsel %vm164_vm0, %v128_v32, %v200_v62  ;;  %v811_v1 = vrot.slane %v6073_v46, 1  ;;  %v632_v62 = vmul.f32 0.2, %v4426_v57 }
  0xd9   :  { %720 = vrot.lane.b32.xlu1 %v6037_v16, %s5006_s13  ;;  %1023 = vrot.lane.b32.xlu0 %v6039_v18, %s5009_s14  ;;  %v346_v21 = vmul.f32 0.2, %v4358_v37  ;;  %9724 = vst [vmem:[#allocation47_spill] sm:$0xff] %v6073_v46  ;;  %vm310_vm15 = vcmp.ge.f32.partialorder %v4358_v37, 0.0  ;;  %v812_v32 = vrot.slane %v236_v23, 1  ;;  %vm1799_vm0 = vcmask 97280  }
  0xda   :  { %v6110_v22 = vsel %vm596_vm2, %v4426_v57, %v632_v62  ;;  %v4391_v57 = vld [vmem:[%s9573_s1 + $0x2e8] sm:$0x1]  ;;  %vm1849_vm2 = vcmask 195584  }
  0xdb   :  { %v6059_v52 = vpop.permute.xlu1 %1397  ;;  %v6061_v13 = vpop.permute.xlu0 %1557  ;;  %v6087_v54 = vsel %vm310_vm15, %v4358_v37, %v346_v21  ;;  %v1157_v37 = vrot.slane %v5996_v20, 1  ;;  %v6108_v8 = vsel %vm9728_vm3, %v811_v1, %v812_v32  ;;  %v1158_v21 = vrot.slane %v522_v24, 1  ;;  %vm9736_vm15 = vmmov %vm9728_vm3 }
  0xdc   :  { %9723 = vst [vmem:[#allocation46_spill] sm:$0xff] %v6059_v52  ;;  %v4350_v52 = vld [vmem:[%s9573_s1 + $0x1a0] sm:$0xff]  ;;  %9729 = vst [vmem:[#allocation51_spill] sm:$0xff] %v6108_v8  ;;  %v488_v25 = vmul.f32 0.2, %v4391_v57  ;;  %vm452_vm9 = vcmp.ge.f32.partialorder %v4391_v57, 0.0 }
  0xdd   :  { %1085 = vrot.lane.b32.xlu1 %v6055_v41, %s5010_s8  ;;  %1357 = vrot.lane.b32.xlu0 %v6057_v31, %s5013_s9  ;;  %vm302_vm4 = vcmp.ge.f32.partialorder %v4350_v52, 0.0  ;;  %v338_v23 = vmul.f32 0.2, %v4350_v52  ;;  %v1159_v24 = vsel %vm9732_vm7, %v1157_v37, %v1158_v21  ;;  %vm1866_vm3 = vcmask 228352  }
  0xdf   :  { %v6075_v38 = vpop.permute.xlu1 %1605  ;;  %v6077_v47 = vpop.permute.xlu0 %714  ;;  %v6127_v1 = vsel %vm302_vm4, %v4350_v52, %v338_v23  ;;  %v122_v52 = vld [vmem:[%s9573_s1 + $0x88] sm:$0x1]  ;;  %v524_v23 = vsel %vm452_vm9, %v4391_v57, %v488_v25  ;;  %v1160_v25 = vrot.slane %v6039_v18, 1  ;;  %vm9596_vm4 = vcmask 261120  }
  0xe0   :  { %9725 = vst [vmem:[#allocation48_spill] sm:$0xff] %v6077_v47  ;;  %vm158_vm14 = vcmp.ge.f32.partialorder %v122_v52, 0.0  ;;  %vm1934_vm9 = vcmask 359424  }
  0xe1   :  { %1405 = vrot.lane.b32.xlu1 %v5428_v55, %s5014_s26  ;;  %1565 = vrot.lane.b32.xlu0 %v5772_v53, %s5017_s10  ;;  %v129_v55 = vld [vmem:[%s9573_s1 + $0xc0] sm:$0xff]  ;;  %v130_v53 = vld [vmem:[%s9573_s1 + $0xc8] sm:$0x1] }
  0xe2   :  { %v201_v44 = vmul.f32 0.2, %v129_v55  ;;  %v202_v20 = vmul.f32 0.2, %v130_v53  ;;  %vm165_vm5 = vcmp.ge.f32.partialorder %v129_v55, 0.0  ;;  %vm166_vm6 = vcmp.ge.f32.partialorder %v130_v53, 0.0 }
  0xe3   :  { %v6089_v47 = vpop.permute.xlu1 %841  ;;  %v6091_v58 = vpop.permute.xlu0 %1079 }
  0xe4   :  { %9726 = vst [vmem:[#allocation49_spill] sm:$0xff] %v6089_v47  ;;  %9727 = vst [vmem:[#allocation50_spill] sm:$0xff] %v6091_v58  ;;  %v238_v30 = vsel %vm166_vm6, %v130_v53, %v202_v20 }
  0xe5   :  { %1613 = vrot.lane.b32.xlu1 %v5445_v3, %s5018_s19  ;;  %722 = vrot.lane.b32.xlu0 %v6087_v54, %s5006_s13  ;;  %v4357_v3 = vld [vmem:[%s9573_s1 + $0x1d8] sm:$0x1] }
  0xe6   :  { %v345_v32 = vmul.f32 0.2, %v4357_v3  ;;  %vm309_vm8 = vcmp.ge.f32.partialorder %v4357_v3, 0.0 }
  0xe7   :  { %v6112_v47 = vpop.permute.xlu1 %1189  ;;  %v6114_v58 = vpop.permute.xlu0 %1399 }
  0xe8   :  { %9730 = vst [vmem:[#allocation52_spill] sm:$0xff] %v6112_v47  ;;  %9731 = vst [vmem:[#allocation53_spill] sm:$0xff] %v6114_v58  ;;  %v6133_v58 = vsel %vm165_vm5, %v129_v55, %v201_v44  ;;  %v815_v55 = vrot.slane %v238_v30, 1  ;;  %v381_v53 = vsel %vm309_vm8, %v4357_v3, %v345_v32  ;;  %v1766_v3 = vsel %vm1765_vm10, %v5083_v12, %v5476_v17  ;;  %v9738_v12 = vld [vmem:[#allocation18_spill] sm:$0xff] }
  0xe9   :  { %849 = vrot.lane.b32.xlu1 %v6108_v8, %s5007_s20  ;;  %1087 = vrot.lane.b32.xlu0 %v6110_v22, %s5010_s8  ;;  %9734 = vst [vmem:[#allocation55_spill] sm:$0xff] %v6133_v58  ;;  %v4425_v8 = vld [vmem:[%s9573_s1 + $0x3f8] sm:$0x1]  ;;  %v814_v44 = vrot.slane %v6133_v58, 1  ;;  %v924_v30 = vrot.slane %v381_v53, 1  ;;  %v1161_v32 = vrot.slane %v524_v23, 1  ;;  %vm9740_vm5 = vmmov %vm9732_vm7 }
  0xea   :  { %v631_v20 = vmul.f32 0.2, %v4425_v8  ;;  %vm595_vm13 = vcmp.ge.f32.partialorder %v4425_v8, 0.0  ;;  %vm9741_vm6 = vmmov %vm9740_vm5  ;;  %vm1900_vm7 = vcmask 293888   ;;  %vm1917_vm8 = vcmask 326656  }
  0xeb   :  { %v6129_v62 = vpop.permute.xlu1 %1453  ;;  %v6131_v47 = vpop.permute.xlu0 %1607  ;;  %v6159_v57 = vsel %vm9736_vm15, %v814_v44, %v815_v55  ;;  %v1269_v44 = vrot.slane %v6055_v41, 1  ;;  %v9739_v55 = vld [vmem:[#allocation14_spill] sm:$0xff]  ;;  %v6186_v41 = vsel %vm9741_vm6, %v1160_v25, %v1161_v32  ;;  %vm9742_vm15 = vmmov %vm9740_vm5  ;;  %vm1968_vm6 = vcmask 424960  }
  0xec   :  { %9733 = vst [vmem:[#allocation54_spill] sm:$0xff] %v6129_v62  ;;  %v194_v62 = vmul.f32 0.2, %v122_v52 }
  0xed   :  { %1197 = vrot.lane.b32.xlu1 %v1159_v24, %s5011_s11  ;;  %1407 = vrot.lane.b32.xlu0 %v6127_v1, %s5014_s26  ;;  %v923_v24 = vrot.slane %v6037_v16, 1 }
  0xee   :  { %v230_v53 = vsel %vm158_vm14, %v122_v52, %v194_v62  ;;  %vm1951_vm14 = vcmask 392192  }
  0xef   :  { %v6145_v37 = vpop.permute.xlu1 %1661  ;;  %v6147_v21 = vpop.permute.xlu0 %843  ;;  %v1444_v62 = vrot.slane %v230_v53, 1 }
  0xf0   :  { %9735 = vst [vmem:[#allocation56_spill] sm:$0xff] %v6147_v21  ;;  %v1783_v21 = vsel %vm9597_vm11, %v1766_v3, %v5487_v56  ;;  %v1443_v56 = vrot.slane %v6057_v31, 1 }
  0xf1   :  { %1461 = vrot.lane.b32.xlu1 %v5485_v48, %s5015_s15  ;;  %1615 = vrot.lane.b32.xlu0 %v5842_v50, %s5018_s19  ;;  %v667_v50 = vsel %vm595_vm13, %v4425_v8, %v631_v20  ;;  %v1800_v5 = vsel %vm1799_vm0, %v1783_v21, %v9737_v7  ;;  %v6178_v8 = vsel %vm9740_vm5, %v923_v24, %v924_v30  ;;  %v4359_v7 = vld [vmem:[%s9573_s1 + $0x1e8] sm:$0x1] }
  0xf2   :  { %v1816_v17 = vsel %vm9598_vm12, %v1800_v5, %v9738_v12  ;;  %v1270_v31 = vrot.slane %v667_v50, 1  ;;  %v347_v24 = vmul.f32 0.2, %v4359_v7  ;;  %vm311_vm13 = vcmp.ge.f32.partialorder %v4359_v7, 0.0 }
  0xf3   :  { %v6163_v58 = vpop.permute.xlu1 %953  ;;  %v6165_v48 = vpop.permute.xlu0 %1191  ;;  %v1833_v5 = vsel %vm9599_vm1, %v1816_v17, %v5695_v42  ;;  %v9743_v17 = vld [vmem:[#allocation13_spill] sm:$0xff] }
  0xf4   :  { %v1850_v52 = vsel %vm1849_vm2, %v1833_v5, %v5799_v14  ;;  %v4427_v14 = vld [vmem:[%s9573_s1 + $0x408] sm:$0x1]  ;;  %v1271_v30 = vsel %vm9742_vm15, %v1269_v44, %v1270_v31  ;;  %v383_v53 = vsel %vm311_vm13, %v4359_v7, %v347_v24  ;;  %vm2002_vm15 = vcmask 490496   ;;  %v9744_v44 = vld [vmem:[#allocation6_spill] sm:$0xff]  ;;  %v9747_v24 = vld [vmem:[#allocation17_spill] sm:$0xff] }
  0xf5   :  { %1669 = vrot.lane.b32.xlu1 %v9739_v55, %s5019_s30  ;;  %851 = vrot.lane.b32.xlu0 %v6159_v57, %s5007_s20  ;;  %v1867_v20 = vsel %vm1866_vm3, %v1850_v52, %v5828_v6  ;;  %v633_v12 = vmul.f32 0.2, %v4427_v14  ;;  %vm9600_vm13 = vcmask 523264   ;;  %v9745_v55 = vld [vmem:[#allocation15_spill] sm:$0xff]  ;;  %v926_v7 = vrot.slane %v6087_v54, 1 }
  0xf6   :  { %v1884_v42 = vsel %vm9596_vm4, %v1867_v20, %v5858_v49  ;;  %v1445_v49 = vsel %vm9740_vm5, %v1443_v56, %v1444_v62  ;;  %vm1985_vm4 = vcmask 457728   ;;  %vm597_vm5 = vcmp.ge.f32.partialorder %v4427_v14, 0.0  ;;  %v4392_v20 = vld [vmem:[%s9573_s1 + $0x2f0] sm:$0xff] }
  0xf7   :  { %v6190_v21 = vpop.permute.xlu1 %1301  ;;  %v6192_v23 = vpop.permute.xlu0 %1455  ;;  %v1901_v6 = vsel %vm1900_vm7, %v1884_v42, %v5894_v43  ;;  %v927_v52 = vrot.slane %v383_v53, 1 }
  0xf8   :  { %v1918_v3 = vsel %vm1917_vm8, %v1901_v6, %v5937_v29  ;;  %v4351_v29 = vld [vmem:[%s9573_s1 + $0x1a8] sm:$0x1]  ;;  %v669_v6 = vsel %vm597_vm5, %v4427_v14, %v633_v12  ;;  %vm9748_vm5 = vcmask 1046528  }
  0xf9   :  { %961 = vrot.lane.b32.xlu1 %v6178_v8, %s5008_s25  ;;  %1199 = vrot.lane.b32.xlu0 %v6186_v41, %s5011_s11  ;;  %v1935_v50 = vsel %vm1934_vm9, %v1918_v3, %v5975_v60  ;;  %v1767_v60 = vsel %vm1765_vm10, %v9744_v44, %v9743_v17  ;;  %v1272_v3 = vrot.slane %v6110_v22, 1  ;;  %v1273_v12 = vrot.slane %v669_v6, 1 }
  0xfa   :  { %v1952_v43 = vsel %vm1951_vm14, %v1935_v50, %v6011_v15  ;;  %v1784_v15 = vsel %vm9597_vm11, %v1767_v60, %v9745_v55  ;;  %vm303_vm11 = vcmp.ge.f32.partialorder %v4351_v29, 0.0  ;;  %v489_v50 = vmul.f32 0.2, %v4392_v20 }
  0xfb   :  { %v6211_v25 = vpop.permute.xlu1 %1509  ;;  %v1664_v32 = vpop.permute.xlu0 %1663  ;;  %v1969_v56 = vsel %vm1968_vm6, %v1952_v43, %v6075_v38  ;;  %v1801_v38 = vsel %vm1799_vm0, %v1784_v15, %v9747_v24 }
  0xfc   :  { %v1986_v5 = vsel %vm1985_vm4, %v1969_v56, %v6145_v37 }
  0xfd   :  { %1309 = vrot.lane.b32.xlu1 %v1271_v30, %s5012_s18  ;;  %1463 = vrot.lane.b32.xlu0 %v1445_v49, %s5015_s15  ;;  %v339_v30 = vmul.f32 0.2, %v4351_v29  ;;  %v1817_v49 = vsel %vm9598_vm12, %v1801_v38, %v5641_v39  ;;  %vm453_vm12 = vcmp.ge.f32.partialorder %v4392_v20, 0.0 }
  0xfe   :  { %v1834_v37 = vsel %vm9599_vm1, %v1817_v49, %v5787_v10  ;;  %vm9749_vm1 = vcmask 261120   ;;  %v6269_v17 = vsel %vm453_vm12, %v4392_v20, %v489_v50  ;;  %vm9751_vm12 = vmmov %vm9748_vm5  ;;  %v4428_v20 = vld [vmem:[%s9573_s1 + $0x410] sm:$0xff]  ;;  %v4386_v49 = vld [vmem:[%s9573_s1 + $0x2c0] sm:$0xff] }
  0xff   :  { %v1718_v31 = vpop.permute.xlu1 %1717  ;;  %v6232_v62 = vpop.permute.xlu0 %955  ;;  %v1851_v14 = vsel %vm1849_vm2, %v1834_v37, %v5815_v27  ;;  %v375_v43 = vsel %vm303_vm11, %v4351_v29, %v339_v30  ;;  %vm9750_vm11 = vmmov %vm9748_vm5  ;;  %v634_v38 = vmul.f32 0.2, %v4428_v20 }
 0x100   :  { %9746 = vst [vmem:[#allocation16_spill] sm:$0xff] %v6232_v62  ;;  %v2003_v42 = vsel %vm2002_vm15, %v1986_v5, %v1718_v31  ;;  %v1868_v10 = vsel %vm1866_vm3, %v1851_v14, %v5846_v40  ;;  %v1499_v40 = vrot.slane %v6127_v1, 1  ;;  %v9780_v62 = vld [vmem:[#allocation8_spill] sm:$0xff] }
 0x101   :  { %1517 = vrot.lane.b32.xlu1 %v5608_v63, %s5016_s22  ;;  %4716 = vmatprep.mubr.msk.f32.mxu0 %vm9600_vm13, %v2003_v42  ;;  %v6257_v63 = vsel %vm9748_vm5, %v926_v7, %v927_v52 }
 0x102   :  { %1671 = vrot.lane.b32.xlu0 %v5906_v0, %s5019_s30  ;;  %v1885_v0 = vsel %vm9749_vm1, %v1868_v10, %v5892_v61  ;;  %v6279_v61 = vsel %vm9750_vm11, %v1272_v3, %v1273_v12  ;;  %vm598_vm11 = vcmp.ge.f32.partialorder %v4428_v20, 0.0  ;;  %v483_v3 = vmul.f32 0.2, %v4386_v49 }
 0x103   :  { %v6252_v53 = vpop.permute.xlu1 %1017  ;;  %v6254_v39 = vpop.permute.xlu0 %1303  ;;  %v1902_v27 = vsel %vm1900_vm7, %v1885_v0, %v5935_v51  ;;  %v6338_v37 = vsel %vm598_vm11, %v4428_v20, %v634_v38  ;;  %v4393_v0 = vld [vmem:[%s9573_s1 + $0x2f8] sm:$0x1]  ;;  %v134_v20 = vld [vmem:[%s9573_s1 + $0xe8] sm:$0x1]  ;;  %v1163_v38 = vrot.slane %v6269_v17, 1 }
 0x104   :  { %v1919_v44 = vsel %vm1917_vm8, %v1902_v27, %v5973_v34 }
 0x105   :  { %1725 = vrot.lane.b32.xlu1 %v5779_v59, %s5020_s29  ;;  %v1500_v59 = vrot.slane %v375_v43, 1  ;;  %v1936_v51 = vsel %vm1934_vm9, %v1919_v44, %v6009_v45  ;;  %v4362_v43 = vld [vmem:[%s9573_s1 + $0x200] sm:$0xff] }
 0x106   :  { %963 = vrot.lane.b32.xlu0 %v6257_v63, %s5008_s25  ;;  %v1953_v56 = vsel %vm1951_vm14, %v1936_v51, %v6061_v13  ;;  %v4360_v13 = vld [vmem:[%s9573_s1 + $0x1f0] sm:$0xff]  ;;  %vm314_vm11 = vcmp.ge.f32.partialorder %v4362_v43, 0.0 }
 0x107   :  { %v6274_v29 = vpop.permute.xlu1 %1351  ;;  %v6276_v60 = vpop.permute.xlu0 %1511  ;;  %v1970_v34 = vsel %vm1968_vm6, %v1953_v56, %v6131_v47  ;;  %v1501_v7 = vsel %vm9751_vm12, %v1499_v40, %v1500_v59  ;;  %v4394_v47 = vld [vmem:[%s9573_s1 + $0x300] sm:$0xff]  ;;  %vm312_vm1 = vcmp.ge.f32.partialorder %v4360_v13, 0.0  ;;  %vm447_vm12 = vcmp.ge.f32.partialorder %v4386_v49, 0.0 }
 0x108   :  { %v1987_v1 = vsel %vm1985_vm4, %v1970_v34, %v1664_v32  ;;  %v348_v32 = vmul.f32 0.2, %v4360_v13  ;;  %v491_v52 = vmul.f32 0.2, %v4394_v47  ;;  %vm455_vm5 = vcmp.ge.f32.partialorder %v4394_v47, 0.0 }
 0x109   :  { %1025 = vrot.lane.b32.xlu1 %v6269_v17, %s5009_s14  ;;  %v6354_v27 = vsel %vm447_vm12, %v4386_v49, %v483_v3  ;;  %v350_v59 = vmul.f32 0.2, %v4362_v43  ;;  %v490_v34 = vmul.f32 0.2, %v4393_v0 }
 0x10a   :  { %1311 = vrot.lane.b32.xlu0 %v6279_v61, %s5012_s18  ;;  %v6317_v24 = vsel %vm312_vm1, %v4360_v13, %v348_v32  ;;  %v6323_v30 = vsel %vm455_vm5, %v4394_v47, %v491_v52 }
 0x10b   :  { %v6292_v55 = vpop.permute.xlu1 %1559  ;;  %v1720_v15 = vpop.permute.xlu0 %1719  ;;  %v6374_v47 = vsel %vm314_vm11, %v4362_v43, %v350_v59  ;;  %v206_v43 = vmul.f32 0.2, %v134_v20  ;;  %v4395_v59 = vld [vmem:[%s9573_s1 + $0x308] sm:$0x1] }
 0x10c   :  { %v2004_v45 = vsel %vm2002_vm15, %v1987_v1, %v1720_v15  ;;  %v4430_v1 = vld [vmem:[%s9573_s1 + $0x420] sm:$0xff] }
 0x10d   :  { %1359 = vrot.lane.b32.xlu1 %v5912_v11, %s5013_s9  ;;  %4717 = vmatmul.mubr.msk.f32.vlgmr.msra.gmra.mrb[0].mxu0 %vm9600_vm13, %v2004_v45  ;;  %vm454_vm13 = vcmp.ge.f32.partialorder %v4393_v0, 0.0  ;;  %v636_v32 = vmul.f32 0.2, %v4430_v1  ;;  %vm600_vm12 = vcmp.ge.f32.partialorder %v4430_v1, 0.0  ;;  %v4429_v11 = vld [vmem:[%s9573_s1 + $0x418] sm:$0x1] }
 0x10e   :  { %1519 = vrot.lane.b32.xlu0 %v1501_v7, %s5016_s22  ;;  %v526_v52 = vsel %vm454_vm13, %v4393_v0, %v490_v34  ;;  %v4361_v0 = vld [vmem:[%s9573_s1 + $0x1f8] sm:$0x1] }
 0x10f   :  { %v6306_v5 = vpop.permute.xlu1 %716  ;;  %v6308_v31 = vpop.permute.xlu0 %1019  ;;  %v6394_v3 = vsel %vm600_vm12, %v4430_v1, %v636_v32 }
 0x110   :  { %9752 = vst [vmem:[#allocation18_spill] sm:$0xff] %v6306_v5  ;;  %9753 = vst [vmem:[#allocation14_spill] sm:$0xff] %v6308_v31  ;;  %v9761_v5 = vld [vmem:[#allocation7_spill] sm:$0xff]  ;;  %v9774_v31 = vld [vmem:[#allocation41_spill] sm:$0xff] }
 0x111   :  { %1567 = vrot.lane.b32.xlu1 %v5826_v35, %s5017_s10  ;;  %v131_v35 = vld [vmem:[%s9573_s1 + $0xd0] sm:$0xff] }
 0x112   :  { %1727 = vrot.lane.b32.xlu0 %v5962_v36, %s5020_s29  ;;  %v132_v36 = vld [vmem:[%s9573_s1 + $0xd8] sm:$0x1]  ;;  %v203_v12 = vmul.f32 0.2, %v131_v35  ;;  %vm167_vm1 = vcmp.ge.f32.partialorder %v131_v35, 0.0 }
 0x113   :  { %v6319_v42 = vpop.permute.xlu1 %1081  ;;  %v6321_v6 = vpop.permute.xlu0 %1353  ;;  %v204_v10 = vmul.f32 0.2, %v132_v36  ;;  %vm168_vm5 = vcmp.ge.f32.partialorder %v132_v36, 0.0 }
 0x114   :  { %v6360_v51 = vsel %vm167_vm1, %v131_v35, %v203_v12  ;;  %vm9758_vm1 = vcmask 1046528   ;;  %v1164_v35 = vrot.slane %v526_v52, 1  ;;  %v4422_v12 = vld [vmem:[%s9573_s1 + $0x3e0] sm:$0xff] }
 0x115   :  { %724 = vrot.lane.b32.xlu1 %v6317_v24, %s5006_s13  ;;  %9755 = vst [vmem:[#allocation6_spill] sm:$0xff] %v6360_v51  ;;  %v240_v56 = vsel %vm168_vm5, %v132_v36, %v204_v10  ;;  %v817_v15 = vrot.slane %v6360_v51, 1  ;;  %vm170_vm5 = vcmp.ge.f32.partialorder %v134_v20, 0.0  ;;  %vm9759_vm11 = vmmov %vm9758_vm1  ;;  %v628_v34 = vmul.f32 0.2, %v4422_v12 }
 0x116   :  { %1027 = vrot.lane.b32.xlu0 %v6323_v30, %s5009_s14  ;;  %v818_v7 = vrot.slane %v240_v56, 1  ;;  %v6410_v56 = vsel %vm9759_vm11, %v1163_v38, %v1164_v35  ;;  %vm592_vm12 = vcmp.ge.f32.partialorder %v4422_v12, 0.0  ;;  %v242_v52 = vsel %vm170_vm5, %v134_v20, %v206_v43 }
 0x117   :  { %v6340_v50 = vpop.permute.xlu1 %1401  ;;  %v6342_v14 = vpop.permute.xlu0 %1561  ;;  %vm456_vm11 = vcmp.ge.f32.partialorder %v4395_v59, 0.0  ;;  %v6425_v38 = vsel %vm592_vm12, %v4422_v12, %v628_v34  ;;  %vm9762_vm5 = vcmask 64512   ;;  %v929_v34 = vrot.slane %v6317_v24, 1 }
 0x118   :  { %v6388_v49 = vsel %vm9758_vm1, %v817_v15, %v818_v7  ;;  %v349_v7 = vmul.f32 0.2, %v4361_v0  ;;  %vm313_vm1 = vcmp.ge.f32.partialorder %v4361_v0, 0.0  ;;  %vm9765_vm12 = vcmask 1046528  }
 0x119   :  { %1089 = vrot.lane.b32.xlu1 %v6338_v37, %s5010_s8 }
 0x11a   :  { %1361 = vrot.lane.b32.xlu0 %v6073_v46, %s5013_s9  ;;  %v492_v46 = vmul.f32 0.2, %v4395_v59  ;;  %v385_v43 = vsel %vm313_vm1, %v4361_v0, %v349_v7  ;;  %v1166_v0 = vrot.slane %v6323_v30, 1  ;;  %vm9766_vm1 = vcmask 130048  }
 0x11b   :  { %v6356_v44 = vpop.permute.xlu1 %1609  ;;  %v6358_v40 = vpop.permute.xlu0 %718 }
 0x11c   :  { %9754 = vst [vmem:[#allocation13_spill] sm:$0xff] %v6358_v40  ;;  %v635_v40 = vmul.f32 0.2, %v4429_v11 }
 0x11d   :  { %1409 = vrot.lane.b32.xlu1 %v5871_v9, %s5014_s26  ;;  %v133_v9 = vld [vmem:[%s9573_s1 + $0xe0] sm:$0xff] }
 0x11e   :  { %1569 = vrot.lane.b32.xlu0 %v6354_v27, %s5017_s10  ;;  %v205_v10 = vmul.f32 0.2, %v133_v9  ;;  %vm169_vm13 = vcmp.ge.f32.partialorder %v133_v9, 0.0 }
 0x11f   :  { %v6370_v13 = vpop.permute.xlu1 %845  ;;  %v6372_v45 = vpop.permute.xlu0 %1083 }
 0x120   :  { %9756 = vst [vmem:[#allocation15_spill] sm:$0xff] %v6370_v13  ;;  %9757 = vst [vmem:[#allocation17_spill] sm:$0xff] %v6372_v45  ;;  %v6416_v32 = vsel %vm169_vm13, %v133_v9, %v205_v10  ;;  %v821_v10 = vrot.slane %v242_v52, 1  ;;  %v528_v13 = vsel %vm456_vm11, %v4395_v59, %v492_v46  ;;  %vm599_vm13 = vcmp.ge.f32.partialorder %v4429_v11, 0.0 }
 0x121   :  { %1617 = vrot.lane.b32.xlu1 %v5890_v4, %s5018_s19  ;;  %v820_v20 = vrot.slane %v6416_v32, 1  ;;  %v1768_v45 = vsel %vm1765_vm10, %v9761_v5, %v5639_v26  ;;  %v930_v46 = vrot.slane %v385_v43, 1  ;;  %v1167_v5 = vrot.slane %v528_v13, 1  ;;  %v9767_v43 = vld [vmem:[#allocation31_spill] sm:$0xff] }
 0x122   :  { %726 = vrot.lane.b32.xlu0 %v6374_v47, %s5006_s13  ;;  %v1785_v12 = vsel %vm9762_vm5, %v1768_v45, %v5785_v2  ;;  %v671_v7 = vsel %vm599_vm13, %v4429_v11, %v635_v40  ;;  %vm9769_vm5 = vcmask 162816   ;;  %v1275_v11 = vrot.slane %v6338_v37, 1  ;;  %vm9770_vm13 = vmmov %vm9765_vm12  ;;  %v9771_v40 = vld [vmem:[#allocation30_spill] sm:$0xff] }
 0x123   :  { %v6390_v36 = vpop.permute.xlu1 %1193  ;;  %v6392_v4 = vpop.permute.xlu0 %1403  ;;  %v1802_v2 = vsel %vm1799_vm0, %v1785_v12, %v5813_v28  ;;  %v6468_v28 = vsel %vm9770_vm13, %v929_v34, %v930_v46  ;;  %v4431_v46 = vld [vmem:[%s9573_s1 + $0x428] sm:$0x1]  ;;  %vm9777_vm13 = vmmov %vm9765_vm12 }
 0x124   :  { %v1818_v52 = vsel %vm9766_vm1, %v1802_v2, %v5844_v33  ;;  %v1276_v33 = vrot.slane %v671_v7, 1  ;;  %v6477_v2 = vsel %vm9765_vm12, %v1166_v0, %v1167_v5  ;;  %vm9775_vm1 = vcmask 261120   ;;  %v9776_v7 = vld [vmem:[#allocation46_spill] sm:$0xff] }
 0x125   :  { %853 = vrot.lane.b32.xlu1 %v6388_v49, %s5007_s20  ;;  %v9778_v5 = vld [vmem:[#allocation54_spill] sm:$0xff] }
 0x126   :  { %1091 = vrot.lane.b32.xlu0 %v6394_v3, %s5010_s8 }
 0x127   :  { %v6412_v1 = vpop.permute.xlu1 %1457  ;;  %v6414_v15 = vpop.permute.xlu0 %1611 }
 0x129   :  { %1201 = vrot.lane.b32.xlu1 %v6410_v56, %s5011_s11 }
 0x12a   :  { %1411 = vrot.lane.b32.xlu0 %v6037_v16, %s5014_s26  ;;  %v4387_v16 = vld [vmem:[%s9573_s1 + $0x2c8] sm:$0x1] }
 0x12b   :  { %v6427_v35 = vpop.permute.xlu1 %1665  ;;  %v6429_v9 = vpop.permute.xlu0 %847  ;;  %v484_v45 = vmul.f32 0.2, %v4387_v16  ;;  %vm448_vm11 = vcmp.ge.f32.partialorder %v4387_v16, 0.0 }
 0x12c   :  { %9760 = vst [vmem:[#allocation57_spill] sm:$0xff] %v6429_v9  ;;  %v4363_v9 = vld [vmem:[%s9573_s1 + $0x208] sm:$0x1] }
 0x12d   :  { %1465 = vrot.lane.b32.xlu1 %v5933_v19, %s5015_s15  ;;  %v6451_v19 = vsel %vm9765_vm12, %v820_v20, %v821_v10  ;;  %vm9782_vm12 = vcmask 64512  }
 0x12e   :  { %1619 = vrot.lane.b32.xlu0 %v6425_v38, %s5018_s19 }
 0x12f   :  { %v6446_v59 = vpop.permute.xlu1 %957  ;;  %v6448_v26 = vpop.permute.xlu0 %1195 }
 0x130   :  { %9763 = vst [vmem:[#allocation7_spill] sm:$0xff] %v6446_v59  ;;  %9764 = vst [vmem:[#allocation58_spill] sm:$0xff] %v6448_v26  ;;  %v9768_v59 = vld [vmem:[#allocation25_spill] sm:$0xff]  ;;  %v351_v26 = vmul.f32 0.2, %v4363_v9 }
 0x131   :  { %1673 = vrot.lane.b32.xlu1 %v9767_v43, %s5019_s30  ;;  %v1835_v20 = vsel %vm9769_vm5, %v1818_v52, %v9768_v59  ;;  %v9773_v59 = vld [vmem:[#allocation35_spill] sm:$0xff]  ;;  %v520_v43 = vsel %vm448_vm11, %v4387_v16, %v484_v45  ;;  %vm315_vm5 = vcmp.ge.f32.partialorder %v4363_v9, 0.0  ;;  %v6493_v16 = vsel %vm9777_vm13, %v1275_v11, %v1276_v33 }
 0x132   :  { %855 = vrot.lane.b32.xlu0 %v6451_v19, %s5007_s20  ;;  %v1852_v13 = vsel %vm1849_vm2, %v1835_v20, %v9771_v40  ;;  %v1655_v45 = vrot.slane %v6354_v27, 1  ;;  %vm601_vm11 = vcmp.ge.f32.partialorder %v4431_v46, 0.0  ;;  %v9781_v27 = vld [vmem:[#allocation20_spill] sm:$0xff] }
 0x133   :  { %v6472_v10 = vpop.permute.xlu1 %1305  ;;  %v6474_v12 = vpop.permute.xlu0 %1459  ;;  %v1869_v52 = vsel %vm1866_vm3, %v1852_v13, %v9773_v59  ;;  %v1656_v13 = vrot.slane %v520_v43, 1 }
 0x134   :  { %9772 = vst [vmem:[#allocation31_spill] sm:$0xff] %v6472_v10  ;;  %v1886_v34 = vsel %vm9775_vm1, %v1869_v52, %v9774_v31  ;;  %v387_v52 = vsel %vm315_vm5, %v4363_v9, %v351_v26  ;;  %v932_v9 = vrot.slane %v6374_v47, 1  ;;  %vm9785_vm1 = vmmov %vm9777_vm13  ;;  %vm9788_vm5 = vcmask 130048  }
 0x135   :  { %965 = vrot.lane.b32.xlu1 %v6468_v28, %s5008_s25  ;;  %v1903_v0 = vsel %vm1900_vm7, %v1886_v34, %v9776_v7  ;;  %v637_v34 = vmul.f32 0.2, %v4431_v46  ;;  %v9779_v7 = vld [vmem:[#allocation19_spill] sm:$0xff]  ;;  %vm9790_vm13 = vcmask 523264  }
 0x136   :  { %1203 = vrot.lane.b32.xlu0 %v6477_v2, %s5011_s11  ;;  %v1920_v31 = vsel %vm1917_vm8, %v1903_v0, %v9778_v5  ;;  %v1769_v10 = vsel %vm1765_vm10, %v9780_v62, %v9779_v7  ;;  %v1657_v0 = vsel %vm9785_vm1, %v1655_v45, %v1656_v13  ;;  %v933_v5 = vrot.slane %v387_v52, 1  ;;  %v4423_v45 = vld [vmem:[%s9573_s1 + $0x3e8] sm:$0x1]  ;;  %v9791_v13 = vld [vmem:[#allocation29_spill] sm:$0xff] }
 0x137   :  { %v6498_v20 = vpop.permute.xlu1 %1513  ;;  %v1668_v40 = vpop.permute.xlu0 %1667  ;;  %v1937_v59 = vsel %vm1934_vm9, %v1920_v31, %v6211_v25  ;;  %v1786_v33 = vsel %vm9782_vm12, %v1769_v10, %v9781_v27  ;;  %v9783_v25 = vld [vmem:[#allocation51_spill] sm:$0xff]  ;;  %v4396_v10 = vld [vmem:[%s9573_s1 + $0x310] sm:$0xff]  ;;  %v9786_v31 = vld [vmem:[#allocation21_spill] sm:$0xff]  ;;  %v673_v7 = vsel %vm601_vm11, %v4431_v46, %v637_v34  ;;  %vm9792_vm12 = vcmask 162816  }
 0x138   :  { %v1954_v11 = vsel %vm1951_vm14, %v1937_v59, %v6292_v55  ;;  %v493_v46 = vmul.f32 0.2, %v4396_v10  ;;  %v9793_v34 = vld [vmem:[#allocation34_spill] sm:$0xff]  ;;  %vm9796_vm11 = vmmov %vm9785_vm1  ;;  %vm457_vm1 = vcmp.ge.f32.partialorder %v4396_v10, 0.0 }
 0x139   :  { %1313 = vrot.lane.b32.xlu1 %v6493_v16, %s5012_s18  ;;  %v1971_v43 = vsel %vm1968_vm6, %v1954_v11, %v6356_v44  ;;  %v1803_v44 = vsel %vm1799_vm0, %v1786_v33, %v9786_v31  ;;  %v9787_v11 = vld [vmem:[#allocation24_spill] sm:$0xff]  ;;  %v1278_v33 = vrot.slane %v6394_v3, 1  ;;  %v1279_v31 = vrot.slane %v673_v7, 1 }
 0x13a   :  { %1467 = vrot.lane.b32.xlu0 %v9783_v25, %s5015_s15  ;;  %v1988_v62 = vsel %vm1985_vm4, %v1971_v43, %v6427_v35  ;;  %v1819_v27 = vsel %vm9788_vm5, %v1803_v44, %v9787_v11  ;;  %v9789_v35 = vld [vmem:[#allocation36_spill] sm:$0xff]  ;;  %v629_v11 = vmul.f32 0.2, %v4423_v45  ;;  %vm9799_vm5 = vcmask 261120  }
 0x13b   :  { %v1722_v26 = vpop.permute.xlu1 %1721  ;;  %v6518_v55 = vpop.permute.xlu0 %959  ;;  %v1836_v52 = vsel %vm9792_vm12, %v1819_v27, %v9791_v13  ;;  %v9797_v44 = vld [vmem:[#allocation40_spill] sm:$0xff]  ;;  %v9798_v27 = vld [vmem:[#allocation45_spill] sm:$0xff]  ;;  %vm9802_vm12 = vmmov %vm9796_vm11 }
 0x13c   :  { %9784 = vst [vmem:[#allocation25_spill] sm:$0xff] %v6518_v55  ;;  %v2005_v59 = vsel %vm2002_vm15, %v1988_v62, %v1722_v26  ;;  %v1853_v43 = vsel %vm1849_vm2, %v1836_v52, %v9793_v34  ;;  %v6546_v26 = vsel %vm9796_vm11, %v932_v9, %v933_v5  ;;  %v9801_v13 = vld [vmem:[#allocation53_spill] sm:$0xff]  ;;  %v6558_v9 = vsel %vm457_vm1, %v4396_v10, %v493_v46  ;;  %vm9808_vm1 = vmmov %vm9802_vm12 }
 0x13d   :  { %1521 = vrot.lane.b32.xlu1 %v9789_v35, %s5016_s22  ;;  %4719 = vmatprep.mubr.msk.f32.mxu0 %vm9790_vm13, %v2005_v59  ;;  %v1870_v59 = vsel %vm1866_vm3, %v1853_v43, %v9797_v44  ;;  %v9800_v35 = vld [vmem:[#allocation39_spill] sm:$0xff]  ;;  %vm593_vm13 = vcmp.ge.f32.partialorder %v4423_v45, 0.0  ;;  %v6567_v43 = vsel %vm9802_vm12, %v1278_v33, %v1279_v31  ;;  %v1711_v10 = vrot.slane %v6425_v38, 1  ;;  %v4365_v55 = vld [vmem:[%s9573_s1 + $0x218] sm:$0x1] }
 0x13e   :  { %1675 = vrot.lane.b32.xlu0 %v1657_v0, %s5019_s30  ;;  %v1887_v0 = vsel %vm9799_vm5, %v1870_v59, %v9798_v27  ;;  %9803 = vst [vmem:[#allocation41_spill] sm:$0xff] %v6567_v43  ;;  %v665_v59 = vsel %vm593_vm13, %v4423_v45, %v629_v11  ;;  %v9804_v11 = vld [vmem:[#allocation55_spill] sm:$0xff]  ;;  %vm9805_vm11 = vcmask 523264  }
 0x13f   :  { %v6541_v25 = vpop.permute.xlu1 %1021  ;;  %v6543_v62 = vpop.permute.xlu0 %1307  ;;  %v1904_v52 = vsel %vm1900_vm7, %v1887_v0, %v9801_v13  ;;  %v1712_v45 = vrot.slane %v665_v59, 1 }
 0x140   :  { %9794 = vst [vmem:[#allocation30_spill] sm:$0xff] %v6541_v25  ;;  %9795 = vst [vmem:[#allocation35_spill] sm:$0xff] %v6543_v62  ;;  %v1921_v5 = vsel %vm1917_vm8, %v1904_v52, %v6192_v23  ;;  %v4432_v52 = vld [vmem:[%s9573_s1 + $0x430] sm:$0xff]  ;;  %v9822_v62 = vld [vmem:[#allocation22_spill] sm:$0xff] }
 0x141   :  { %1729 = vrot.lane.b32.xlu1 %v9800_v35, %s5020_s29  ;;  %v1938_v44 = vsel %vm1934_vm9, %v1921_v5, %v6276_v60  ;;  %v1713_v35 = vsel %vm9808_vm1, %v1711_v10, %v1712_v45  ;;  %v638_v5 = vmul.f32 0.2, %v4432_v52  ;;  %vm602_vm12 = vcmp.ge.f32.partialorder %v4432_v52, 0.0 }
 0x142   :  { %967 = vrot.lane.b32.xlu0 %v6546_v26, %s5008_s25  ;;  %v1955_v27 = vsel %vm1951_vm14, %v1938_v44, %v6342_v14  ;;  %v4364_v14 = vld [vmem:[%s9573_s1 + $0x210] sm:$0xff] }
 0x143   :  { %v6562_v7 = vpop.permute.xlu1 %1355  ;;  %v6564_v34 = vpop.permute.xlu0 %1515  ;;  %v1972_v23 = vsel %vm1968_vm6, %v1955_v27, %v6414_v15  ;;  %v4398_v15 = vld [vmem:[%s9573_s1 + $0x320] sm:$0xff]  ;;  %v352_v38 = vmul.f32 0.2, %v4364_v14  ;;  %vm316_vm5 = vcmp.ge.f32.partialorder %v4364_v14, 0.0  ;;  %v6624_v10 = vsel %vm602_vm12, %v4432_v52, %v638_v5 }
 0x144   :  { %v1989_v33 = vsel %vm1985_vm4, %v1972_v23, %v1668_v40  ;;  %v495_v13 = vmul.f32 0.2, %v4398_v15  ;;  %vm459_vm13 = vcmp.ge.f32.partialorder %v4398_v15, 0.0  ;;  %v135_v23 = vld [vmem:[%s9573_s1 + $0xf0] sm:$0xff] }
 0x145   :  { %1029 = vrot.lane.b32.xlu1 %v6558_v9, %s5009_s14  ;;  %v207_v45 = vmul.f32 0.2, %v135_v23 }
 0x146   :  { %1315 = vrot.lane.b32.xlu0 %v6567_v43, %s5012_s18  ;;  %v6612_v27 = vsel %vm459_vm13, %v4398_v15, %v495_v13  ;;  %v4397_v15 = vld [vmem:[%s9573_s1 + $0x318] sm:$0x1] }
 0x147   :  { %v6581_v46 = vpop.permute.xlu1 %1563  ;;  %v1724_v60 = vpop.permute.xlu0 %1723  ;;  %vm458_vm13 = vcmp.ge.f32.partialorder %v4397_v15, 0.0 }
 0x148   :  { %v2006_v31 = vsel %vm2002_vm15, %v1989_v33, %v1724_v60 }
 0x149   :  { %1363 = vrot.lane.b32.xlu1 %v9804_v11, %s5013_s9  ;;  %4720 = vmatmul.mubr.msk.f32.gmra.mrb[2].mxu0 %vm9805_vm11, %v2006_v31  ;;  %v4366_v31 = vld [vmem:[%s9573_s1 + $0x220] sm:$0xff]  ;;  %vm171_vm11 = vcmp.ge.f32.partialorder %v135_v23, 0.0  ;;  %v494_v11 = vmul.f32 0.2, %v4397_v15 }
 0x14a   :  { %1523 = vrot.lane.b32.xlu0 %v6178_v8, %s5016_s22  ;;  %v6606_v8 = vsel %vm316_vm5, %v4364_v14, %v352_v38  ;;  %v354_v13 = vmul.f32 0.2, %v4366_v31  ;;  %v6644_v52 = vsel %vm171_vm11, %v135_v23, %v207_v45  ;;  %vm318_vm5 = vcmp.ge.f32.partialorder %v4366_v31, 0.0 }
 0x14b   :  { %v6595_v40 = vpop.permute.xlu1 %720  ;;  %v6597_v0 = vpop.permute.xlu0 %1023  ;;  %vm9815_vm11 = vcmask 1046528  }
 0x14c   :  { %9806 = vst [vmem:[#allocation46_spill] sm:$0xff] %v6595_v40  ;;  %9807 = vst [vmem:[#allocation54_spill] sm:$0xff] %v6597_v0  ;;  %v4434_v40 = vld [vmem:[%s9573_s1 + $0x440] sm:$0xff] }
 0x14d   :  { %1571 = vrot.lane.b32.xlu1 %v6039_v18, %s5017_s10  ;;  %v136_v18 = vld [vmem:[%s9573_s1 + $0xf8] sm:$0x1]  ;;  %v640_v45 = vmul.f32 0.2, %v4434_v40  ;;  %vm604_vm12 = vcmp.ge.f32.partialorder %v4434_v40, 0.0 }
 0x14e   :  { %1731 = vrot.lane.b32.xlu0 %v1713_v35, %s5020_s29  ;;  %v208_v14 = vmul.f32 0.2, %v136_v18  ;;  %vm172_vm1 = vcmp.ge.f32.partialorder %v136_v18, 0.0 }
 0x14f   :  { %v6608_v44 = vpop.permute.xlu1 %1085  ;;  %v6610_v59 = vpop.permute.xlu0 %1357 }
 0x150   :  { %9809 = vst [vmem:[#allocation19_spill] sm:$0xff] %v6608_v44  ;;  %9810 = vst [vmem:[#allocation8_spill] sm:$0xff] %v6610_v59  ;;  %v244_v5 = vsel %vm172_vm1, %v136_v18, %v208_v14  ;;  %v6658_v18 = vsel %vm318_vm5, %v4366_v31, %v354_v13  ;;  %v530_v14 = vsel %vm458_vm13, %v4397_v15, %v494_v11 }
 0x151   :  { %728 = vrot.lane.b32.xlu1 %v6606_v8, %s5006_s13  ;;  %v1170_v11 = vrot.slane %v530_v14, 1  ;;  %v6678_v13 = vsel %vm604_vm12, %v4434_v40, %v640_v45  ;;  %vm9818_vm13 = vmmov %vm9815_vm11  ;;  %v353_v14 = vmul.f32 0.2, %v4365_v55  ;;  %vm317_vm12 = vcmp.ge.f32.partialorder %v4365_v55, 0.0 }
 0x152   :  { %1031 = vrot.lane.b32.xlu0 %v6612_v27, %s5009_s14 }
 0x153   :  { %v6626_v33 = vpop.permute.xlu1 %1405  ;;  %v6628_v60 = vpop.permute.xlu0 %1565 }
 0x154   :  { %9811 = vst [vmem:[#allocation20_spill] sm:$0xff] %v6626_v33  ;;  %v9824_v33 = vld [vmem:[#allocation27_spill] sm:$0xff] }
 0x155   :  { %1093 = vrot.lane.b32.xlu1 %v6624_v10, %s5010_s8 }
 0x156   :  { %1365 = vrot.lane.b32.xlu0 %v6360_v51, %s5013_s9  ;;  %v823_v51 = vrot.slane %v6644_v52, 1 }
 0x157   :  { %v6640_v38 = vpop.permute.xlu1 %1613  ;;  %v6642_v35 = vpop.permute.xlu0 %722 }
 0x158   :  { %9812 = vst [vmem:[#allocation51_spill] sm:$0xff] %v6642_v35  ;;  %v824_v35 = vrot.slane %v244_v5, 1  ;;  %v1169_v5 = vrot.slane %v6558_v9, 1 }
 0x159   :  { %1413 = vrot.lane.b32.xlu1 %v6087_v54, %s5014_s26  ;;  %v137_v54 = vld [vmem:[%s9573_s1 + $0x100] sm:$0xff] }
 0x15a   :  { %1573 = vrot.lane.b32.xlu0 %v6269_v17, %s5017_s10  ;;  %v138_v17 = vld [vmem:[%s9573_s1 + $0x108] sm:$0x1]  ;;  %v6672_v31 = vsel %vm9815_vm11, %v823_v51, %v824_v35  ;;  %vm173_vm1 = vcmp.ge.f32.partialorder %v137_v54, 0.0  ;;  %v6691_v40 = vsel %vm9818_vm13, %v1169_v5, %v1170_v11 }
 0x15b   :  { %v6654_v0 = vpop.permute.xlu1 %849  ;;  %v6656_v23 = vpop.permute.xlu0 %1087  ;;  %vm174_vm5 = vcmp.ge.f32.partialorder %v138_v17, 0.0  ;;  %v4399_v51 = vld [vmem:[%s9573_s1 + $0x328] sm:$0x1]  ;;  %9819 = vst [vmem:[#allocation34_spill] sm:$0xff] %v6691_v40 }
 0x15c   :  { %9813 = vst [vmem:[#allocation21_spill] sm:$0xff] %v6654_v0  ;;  %9814 = vst [vmem:[#allocation24_spill] sm:$0xff] %v6656_v23  ;;  %v209_v0 = vmul.f32 0.2, %v137_v54  ;;  %v210_v23 = vmul.f32 0.2, %v138_v17 }
 0x15d   :  { %1621 = vrot.lane.b32.xlu1 %v6110_v22, %s5018_s19  ;;  %v496_v25 = vmul.f32 0.2, %v4399_v51  ;;  %vm460_vm11 = vcmp.ge.f32.partialorder %v4399_v51, 0.0 }
 0x15e   :  { %730 = vrot.lane.b32.xlu0 %v6658_v18, %s5006_s13  ;;  %v246_v44 = vsel %vm174_vm5, %v138_v17, %v210_v23  ;;  %v389_v23 = vsel %vm317_vm12, %v4365_v55, %v353_v14  ;;  %vm9825_vm5 = vcmask 64512   ;;  %v1172_v55 = vrot.slane %v6612_v27, 1  ;;  %v9827_v14 = vld [vmem:[#allocation33_spill] sm:$0xff] }
 0x15f   :  { %v6674_v15 = vpop.permute.xlu1 %1197  ;;  %v6676_v22 = vpop.permute.xlu0 %1407  ;;  %v532_v59 = vsel %vm460_vm11, %v4399_v51, %v496_v25  ;;  %vm9829_vm12 = vcmask 130048   ;;  %vm9831_vm11 = vcmask 162816  }
 0x160   :  { %9816 = vst [vmem:[#allocation36_spill] sm:$0xff] %v6674_v15  ;;  %9817 = vst [vmem:[#allocation29_spill] sm:$0xff] %v6676_v22  ;;  %v6697_v15 = vsel %vm173_vm1, %v137_v54, %v209_v0  ;;  %v4433_v22 = vld [vmem:[%s9573_s1 + $0x438] sm:$0x1]  ;;  %v827_v54 = vrot.slane %v246_v44, 1  ;;  %v936_v44 = vrot.slane %v389_v23, 1 }
 0x161   :  { %857 = vrot.lane.b32.xlu1 %v6672_v31, %s5007_s20  ;;  %v826_v0 = vrot.slane %v6697_v15, 1  ;;  %v639_v17 = vmul.f32 0.2, %v4433_v22  ;;  %vm603_vm1 = vcmp.ge.f32.partialorder %v4433_v22, 0.0  ;;  %v9830_v23 = vld [vmem:[#allocation44_spill] sm:$0xff] }
 0x162   :  { %1095 = vrot.lane.b32.xlu0 %v6678_v13, %s5010_s8 }
 0x163   :  { %v6693_v35 = vpop.permute.xlu1 %1461  ;;  %v6695_v45 = vpop.permute.xlu0 %1615 }
 0x164   :  { %9820 = vst [vmem:[#allocation40_spill] sm:$0xff] %v6693_v35  ;;  %v9823_v35 = vld [vmem:[#allocation9_spill] sm:$0xff] }
 0x165   :  { %1205 = vrot.lane.b32.xlu1 %v6691_v40, %s5011_s11  ;;  %v1770_v43 = vsel %vm1765_vm10, %v9823_v35, %v9822_v62  ;;  %v935_v40 = vrot.slane %v6606_v8, 1  ;;  %v6725_v62 = vsel %vm9818_vm13, %v826_v0, %v827_v54  ;;  %v1173_v35 = vrot.slane %v532_v59, 1  ;;  %v9833_v54 = vld [vmem:[#allocation52_spill] sm:$0xff] }
 0x166   :  { %1415 = vrot.lane.b32.xlu0 %v6317_v24, %s5014_s26  ;;  %v1787_v24 = vsel %vm9825_vm5, %v1770_v43, %v9824_v33  ;;  %v9828_v33 = vld [vmem:[#allocation38_spill] sm:$0xff]  ;;  %v1281_v0 = vrot.slane %v6624_v10, 1 }
 0x167   :  { %v1670_v5 = vpop.permute.xlu1 %1669  ;;  %v6706_v11 = vpop.permute.xlu0 %851  ;;  %v1804_v43 = vsel %vm1799_vm0, %v1787_v24, %v9827_v14 }
 0x168   :  { %9821 = vst [vmem:[#allocation45_spill] sm:$0xff] %v6706_v11  ;;  %v1820_v11 = vsel %vm9829_vm12, %v1804_v43, %v9828_v33 }
 0x169   :  { %1469 = vrot.lane.b32.xlu1 %v6159_v57, %s5015_s15  ;;  %v675_v57 = vsel %vm603_vm1, %v4433_v22, %v639_v17  ;;  %vm9832_vm1 = vmmov %vm9818_vm13  ;;  %vm9835_vm13 = vcmask 261120  }
 0x16a   :  { %1623 = vrot.lane.b32.xlu0 %v6338_v37, %s5018_s19  ;;  %v4367_v37 = vld [vmem:[%s9573_s1 + $0x228] sm:$0x1]  ;;  %v6742_v59 = vsel %vm9832_vm1, %v935_v40, %v936_v44  ;;  %v1282_v22 = vrot.slane %v675_v57, 1  ;;  %vm9834_vm5 = vmmov %vm9832_vm1 }
 0x16b   :  { %v6720_v25 = vpop.permute.xlu1 %961  ;;  %v6722_v51 = vpop.permute.xlu0 %1199  ;;  %v6751_v14 = vsel %vm9834_vm5, %v1172_v55, %v1173_v35  ;;  %v355_v43 = vmul.f32 0.2, %v4367_v37  ;;  %vm319_vm12 = vcmp.ge.f32.partialorder %v4367_v37, 0.0  ;;  %v4435_v40 = vld [vmem:[%s9573_s1 + $0x448] sm:$0x1]  ;;  %vm9840_vm5 = vcmask 64512  }
 0x16c   :  { %9826 = vst [vmem:[#allocation39_spill] sm:$0xff] %v6720_v25  ;;  %v1837_v25 = vsel %vm9831_vm11, %v1820_v11, %v9830_v23  ;;  %vm9836_vm11 = vmmov %vm9832_vm1  ;;  %v641_v23 = vmul.f32 0.2, %v4435_v40  ;;  %vm605_vm1 = vcmp.ge.f32.partialorder %v4435_v40, 0.0 }
 0x16d   :  { %1677 = vrot.lane.b32.xlu1 %v6186_v41, %s5019_s30  ;;  %v1854_v17 = vsel %vm1849_vm2, %v1837_v25, %v9833_v54  ;;  %v391_v57 = vsel %vm319_vm12, %v4367_v37, %v355_v43  ;;  %v938_v37 = vrot.slane %v6658_v18, 1  ;;  %v9839_v43 = vld [vmem:[#allocation32_spill] sm:$0xff]  ;;  %vm9844_vm12 = vcmask 130048  }
 0x16e   :  { %859 = vrot.lane.b32.xlu0 %v6725_v62, %s5007_s20  ;;  %v1871_v11 = vsel %vm1866_vm3, %v1854_v17, %v6190_v21  ;;  %v6767_v21 = vsel %vm9836_vm11, %v1281_v0, %v1282_v22  ;;  %v9838_v22 = vld [vmem:[#allocation10_spill] sm:$0xff]  ;;  %vm9846_vm11 = vcmask 162816  }
 0x16f   :  { %v6746_v41 = vpop.permute.xlu1 %1309  ;;  %v6748_v24 = vpop.permute.xlu0 %1463  ;;  %v1888_v33 = vsel %vm9835_vm13, %v1871_v11, %v6274_v29  ;;  %v4400_v11 = vld [vmem:[%s9573_s1 + $0x330] sm:$0xff]  ;;  %vm9842_vm13 = vcmask 523264  }
 0x170   :  { %v1905_v44 = vsel %vm1900_vm7, %v1888_v33, %v6340_v50 }
 0x171   :  { %969 = vrot.lane.b32.xlu1 %v6742_v59, %s5008_s25  ;;  %v1922_v29 = vsel %vm1917_vm8, %v1905_v44, %v6412_v1  ;;  %v9837_v1 = vld [vmem:[#allocation26_spill] sm:$0xff]  ;;  %v677_v44 = vsel %vm605_vm1, %v4435_v40, %v641_v23  ;;  %vm9847_vm1 = vcmask 1046528  }
 0x172   :  { %1207 = vrot.lane.b32.xlu0 %v6751_v14, %s5011_s11  ;;  %v1939_v25 = vsel %vm1934_vm9, %v1922_v29, %v6498_v20  ;;  %v1771_v20 = vsel %vm1765_vm10, %v9838_v22, %v9837_v1  ;;  %v9841_v29 = vld [vmem:[#allocation37_spill] sm:$0xff]  ;;  %v9845_v1 = vld [vmem:[#allocation50_spill] sm:$0xff] }
 0x173   :  { %v6771_v55 = vpop.permute.xlu1 %1517  ;;  %v1956_v50 = vsel %vm1951_vm14, %v1939_v25, %v6581_v46  ;;  %v939_v46 = vrot.slane %v391_v57, 1 }
 0x174   :  { %v1672_v35 = vpop.permute.xlu0 %1671  ;;  %v1973_v0 = vsel %vm1968_vm6, %v1956_v50, %v6640_v38  ;;  %v1788_v38 = vsel %vm9840_vm5, %v1771_v20, %v9839_v43  ;;  %v1284_v50 = vrot.slane %v6678_v13, 1  ;;  %vm461_vm5 = vcmp.ge.f32.partialorder %v4400_v11, 0.0 }
 0x175   :  { %1317 = vrot.lane.b32.xlu1 %v6767_v21, %s5012_s18  ;;  %v1990_v54 = vsel %vm1985_vm4, %v1973_v0, %v1670_v5  ;;  %v1805_v25 = vsel %vm1799_vm0, %v1788_v38, %v9841_v29  ;;  %v9843_v5 = vld [vmem:[#allocation43_spill] sm:$0xff]  ;;  %v497_v0 = vmul.f32 0.2, %v4400_v11  ;;  %v6811_v22 = vsel %vm9847_vm1, %v938_v37, %v939_v46 }
 0x176   :  { %1471 = vrot.lane.b32.xlu0 %v6388_v49, %s5015_s15  ;;  %v1821_v57 = vsel %vm9844_vm12, %v1805_v25, %v9843_v5  ;;  %vm9849_vm12 = vmmov %vm9847_vm1  ;;  %v4401_v5 = vld [vmem:[%s9573_s1 + $0x338] sm:$0x1] }
 0x177   :  { %v1726_v17 = vpop.permute.xlu1 %1725  ;;  %v1838_v40 = vsel %vm9846_vm11, %v1821_v57, %v9845_v1  ;;  %v6825_v37 = vsel %vm461_vm5, %v4400_v11, %v497_v0  ;;  %vm9850_vm11 = vcmask 523264   ;;  %v498_v1 = vmul.f32 0.2, %v4401_v5 }
 0x178   :  { %v2007_v33 = vsel %vm2002_vm15, %v1990_v54, %v1726_v17  ;;  %v6794_v49 = vpop.permute.xlu0 %963  ;;  %v1855_v20 = vsel %vm1849_vm2, %v1838_v40, %v6165_v48 }
 0x179   :  { %1525 = vrot.lane.b32.xlu1 %v6257_v63, %s5016_s22  ;;  %4722 = vmatprep.mubr.msk.f32.mxu0 %vm9842_vm13, %v2007_v33  ;;  %v1285_v63 = vrot.slane %v677_v44, 1  ;;  %v1872_v17 = vsel %vm1866_vm3, %v1855_v20, %v6254_v39  ;;  %vm9848_vm13 = vcmask 261120   ;;  %v4436_v44 = vld [vmem:[%s9573_s1 + $0x450] sm:$0xff] }
 0x17a   :  { %1679 = vrot.lane.b32.xlu0 %v6410_v56, %s5019_s30  ;;  %v1889_v56 = vsel %vm9848_vm13, %v1872_v17, %v6321_v6  ;;  %vm606_vm5 = vcmp.ge.f32.partialorder %v4436_v44, 0.0  ;;  %vm462_vm13 = vcmp.ge.f32.partialorder %v4401_v5, 0.0  ;;  %v1175_v17 = vrot.slane %v6825_v37, 1 }
 0x17b   :  { %v6808_v23 = vpop.permute.xlu1 %1025  ;;  %v1906_v46 = vsel %vm1900_vm7, %v1889_v56, %v6392_v4  ;;  %v6832_v43 = vsel %vm9849_vm12, %v1284_v50, %v1285_v63  ;;  %v534_v63 = vsel %vm462_vm13, %v4401_v5, %v498_v1 }
 0x17c   :  { %v6815_v54 = vpop.permute.xlu0 %1311  ;;  %v1923_v39 = vsel %vm1917_vm8, %v1906_v46, %v6474_v12  ;;  %v4402_v12 = vld [vmem:[%s9573_s1 + $0x340] sm:$0xff]  ;;  %v1176_v46 = vrot.slane %v534_v63, 1 }
 0x17d   :  { %1733 = vrot.lane.b32.xlu1 %v6279_v61, %s5020_s29  ;;  %v1940_v6 = vsel %vm1934_vm9, %v1923_v39, %v6564_v34  ;;  %vm463_vm1 = vcmp.ge.f32.partialorder %v4402_v12, 0.0 }
 0x17e   :  { %971 = vrot.lane.b32.xlu0 %v6811_v22, %s5008_s25  ;;  %v1957_v11 = vsel %vm1951_vm14, %v1940_v6, %v6628_v60  ;;  %v4403_v6 = vld [vmem:[%s9573_s1 + $0x348] sm:$0x1] }
 0x17f   :  { %v6829_v48 = vpop.permute.xlu1 %1359  ;;  %v1974_v4 = vsel %vm1968_vm6, %v1957_v11, %v6695_v45  ;;  %v499_v45 = vmul.f32 0.2, %v4402_v12 }
 0x180   :  { %v6836_v61 = vpop.permute.xlu0 %1519  ;;  %v1991_v34 = vsel %vm1985_vm4, %v1974_v4, %v1672_v35  ;;  %v642_v35 = vmul.f32 0.2, %v4436_v44 }
 0x181   :  { %1033 = vrot.lane.b32.xlu1 %v6825_v37, %s5009_s14 }
 0x182   :  { %1319 = vrot.lane.b32.xlu0 %v6832_v43, %s5012_s18  ;;  %v6878_v50 = vsel %vm606_vm5, %v4436_v44, %v642_v35 }
 0x183   :  { %v6848_v38 = vpop.permute.xlu1 %1567  ;;  %v1287_v1 = vrot.slane %v6878_v50, 1 }
 0x184   :  { %v1728_v33 = vpop.permute.xlu0 %1727 }
 0x185   :  { %v2008_v60 = vsel %vm2002_vm15, %v1991_v34, %v1728_v33  ;;  %1367 = vrot.lane.b32.xlu1 %v6416_v32, %s5013_s9  ;;  %v500_v34 = vmul.f32 0.2, %v4403_v6 }
 0x186   :  { %1527 = vrot.lane.b32.xlu0 %v6468_v28, %s5016_s22  ;;  %4723 = vmatmul.mubr.msk.f32.gmra.mrb[4].mxu0 %vm9850_vm11, %v2008_v60  ;;  %v6874_v28 = vsel %vm463_vm1, %v4402_v12, %v499_v45  ;;  %vm9851_vm11 = vcmask 1046528   ;;  %vm464_vm1 = vcmp.ge.f32.partialorder %v4403_v6, 0.0 }
 0x187   :  { %v6863_v29 = vpop.permute.xlu1 %724  ;;  %v6917_v12 = vsel %vm9851_vm11, %v1175_v17, %v1176_v46  ;;  %v1178_v35 = vrot.slane %v6874_v28, 1  ;;  %v4439_v17 = vld [vmem:[%s9573_s1 + $0x468] sm:$0x1]  ;;  %vm9852_vm13 = vmmov %vm9851_vm11 }
 0x188   :  { %v6865_v25 = vpop.permute.xlu0 %1027 }
 0x189   :  { %1575 = vrot.lane.b32.xlu1 %v6323_v30, %s5017_s10 }
 0x18a   :  { %1735 = vrot.lane.b32.xlu0 %v6493_v16, %s5020_s29  ;;  %v4438_v16 = vld [vmem:[%s9573_s1 + $0x460] sm:$0xff] }
 0x18b   :  { %v6876_v57 = vpop.permute.xlu1 %1089  ;;  %v644_v20 = vmul.f32 0.2, %v4438_v16  ;;  %vm608_vm12 = vcmp.ge.f32.partialorder %v4438_v16, 0.0 }
 0x18c   :  { %v6880_v0 = vpop.permute.xlu0 %1361 }
 0x18d   :  { %1035 = vrot.lane.b32.xlu1 %v6874_v28, %s5009_s14  ;;  %v6912_v11 = vsel %vm608_vm12, %v4438_v16, %v644_v20  ;;  %vm9853_vm12 = vmmov %vm9851_vm11  ;;  %vm609_vm11 = vcmp.ge.f32.partialorder %v4439_v17, 0.0 }
 0x18e   :  { %1097 = vrot.lane.b32.xlu0 %v6878_v50, %s5010_s8 }
 0x18f   :  { %v6886_v30 = vpop.permute.xlu1 %1409 }
 0x190   :  { %v6891_v40 = vpop.permute.xlu0 %1569 }
 0x191   :  { %1369 = vrot.lane.b32.xlu1 %v6644_v52, %s5013_s9 }
 0x192   :  { %1417 = vrot.lane.b32.xlu0 %v6374_v47, %s5014_s26  ;;  %v4437_v47 = vld [vmem:[%s9573_s1 + $0x458] sm:$0x1] }
 0x193   :  { %v6898_v56 = vpop.permute.xlu1 %1617  ;;  %v643_v44 = vmul.f32 0.2, %v4437_v47  ;;  %vm607_vm5 = vcmp.ge.f32.partialorder %v4437_v47, 0.0 }
 0x194   :  { %v6900_v39 = vpop.permute.xlu0 %726 }
 0x195   :  { %1577 = vrot.lane.b32.xlu1 %v6558_v9, %s5017_s10  ;;  %v536_v9 = vsel %vm464_vm1, %v4403_v6, %v500_v34  ;;  %v679_v45 = vsel %vm607_vm5, %v4437_v47, %v643_v44  ;;  %v645_v6 = vmul.f32 0.2, %v4439_v17  ;;  %v9854_v34 = vld [vmem:[#allocation42_spill] sm:$0xff]  ;;  %v9855_v44 = vld [vmem:[#allocation11_spill] sm:$0xff]  ;;  %vm9857_vm1 = vcmask 64512  }
 0x196   :  { %1625 = vrot.lane.b32.xlu0 %v6394_v3, %s5018_s19  ;;  %v1179_v5 = vrot.slane %v536_v9, 1  ;;  %v1288_v63 = vrot.slane %v679_v45, 1  ;;  %vm9858_vm5 = vcmask 130048  }
 0x197   :  { %v6914_v4 = vpop.permute.xlu1 %853 }
 0x198   :  { %v6919_v33 = vpop.permute.xlu0 %1091  ;;  %v6950_v46 = vsel %vm9853_vm12, %v1287_v1, %v1288_v63  ;;  %vm9861_vm12 = vcmask 261120  }
 0x199   :  { %1099 = vrot.lane.b32.xlu1 %v6912_v11, %s5010_s8 }
 0x19a   :  { %1209 = vrot.lane.b32.xlu0 %v6917_v12, %s5011_s11 }
 0x19b   :  { %v6925_v3 = vpop.permute.xlu1 %1201 }
 0x19c   :  { %v6927_v60 = vpop.permute.xlu0 %1411 }
 0x19d   :  { %1419 = vrot.lane.b32.xlu1 %v6606_v8, %s5014_s26 }
 0x19e   :  { %1473 = vrot.lane.b32.xlu0 %v6451_v19, %s5015_s15  ;;  %v6947_v19 = vsel %vm9852_vm13, %v1178_v35, %v1179_v5  ;;  %v681_v35 = vsel %vm609_vm11, %v4439_v17, %v645_v6  ;;  %vm9859_vm13 = vcmask 162816   ;;  %vm9865_vm11 = vcmask 1046528  }
 0x19f   :  { %v6935_v16 = vpop.permute.xlu1 %1465  ;;  %v1291_v17 = vrot.slane %v681_v35, 1  ;;  %v9864_v35 = vld [vmem:[#allocation41_spill] sm:$0xff] }
 0x1a0   :  { %v6937_v20 = vpop.permute.xlu0 %1619 }
 0x1a1   :  { %1627 = vrot.lane.b32.xlu1 %v6624_v10, %s5018_s19  ;;  %v1772_v10 = vsel %vm1765_vm10, %v9855_v44, %v9854_v34  ;;  %v1290_v44 = vrot.slane %v6912_v11, 1 }
 0x1a2   :  { %1681 = vrot.lane.b32.xlu0 %v6477_v2, %s5019_s30  ;;  %v9856_v2 = vld [vmem:[#allocation49_spill] sm:$0xff] }
 0x1a3   :  { %v1674_v8 = vpop.permute.xlu1 %1673  ;;  %v1789_v9 = vsel %vm9857_vm1, %v1772_v10, %v9856_v2  ;;  %v9860_v10 = vld [vmem:[#allocation31_spill] sm:$0xff] }
 0x1a4   :  { %v6952_v47 = vpop.permute.xlu0 %855  ;;  %v1806_v5 = vsel %vm1799_vm0, %v1789_v9, %v6163_v58  ;;  %v9863_v9 = vld [vmem:[#allocation20_spill] sm:$0xff] }
 0x1a5   :  { %1211 = vrot.lane.b32.xlu1 %v6947_v19, %s5011_s11  ;;  %v1822_v63 = vsel %vm9858_vm5, %v1806_v5, %v6252_v53  ;;  %v9866_v5 = vld [vmem:[#allocation40_spill] sm:$0xff] }
 0x1a6   :  { %1321 = vrot.lane.b32.xlu0 %v6950_v46, %s5012_s18  ;;  %v1839_v34 = vsel %vm9859_vm13, %v1822_v63, %v6319_v42  ;;  %v9862_v42 = vld [vmem:[#allocation34_spill] sm:$0xff]  ;;  %vm9871_vm13 = vcmask 523264  }
 0x1a7   :  { %v6963_v45 = vpop.permute.xlu1 %965  ;;  %v1856_v58 = vsel %vm1849_vm2, %v1839_v34, %v6390_v36  ;;  %v6995_v36 = vsel %vm9865_vm11, %v1290_v44, %v1291_v17  ;;  %v9867_v17 = vld [vmem:[#allocation48_spill] sm:$0xff]  ;;  %vm9875_vm11 = vcmask 162816  }
 0x1a8   :  { %v6967_v1 = vpop.permute.xlu0 %1203  ;;  %v1873_v53 = vsel %vm1866_vm3, %v1856_v58, %v9860_v10  ;;  %v139_v10 = vld [vmem:[%s9573_s1 + $0x110] sm:$0xff] }
 0x1a9   :  { %1475 = vrot.lane.b32.xlu1 %v6672_v31, %s5015_s15  ;;  %v1890_v31 = vsel %vm9861_vm12, %v1873_v53, %v6562_v7  ;;  %vm175_vm5 = vcmp.ge.f32.partialorder %v139_v10, 0.0  ;;  %vm9873_vm12 = vcmask 130048  }
 0x1aa   :  { %1529 = vrot.lane.b32.xlu0 %v6546_v26, %s5016_s22  ;;  %v1907_v26 = vsel %vm1900_vm7, %v1890_v31, %v9863_v9  ;;  %v9868_v31 = vld [vmem:[#allocation12_spill] sm:$0xff] }
 0x1ab   :  { %v6980_v6 = vpop.permute.xlu1 %1313  ;;  %v1924_v63 = vsel %vm1917_vm8, %v1907_v26, %v9866_v5  ;;  %v211_v26 = vmul.f32 0.2, %v139_v10 }
 0x1ac   :  { %v6984_v2 = vpop.permute.xlu0 %1467  ;;  %v1941_v7 = vsel %vm1934_vm9, %v1924_v63, %v6771_v55  ;;  %v1773_v55 = vsel %vm1765_vm10, %v9868_v31, %v9867_v17 }
 0x1ad   :  { %1683 = vrot.lane.b32.xlu1 %v9862_v42, %s5019_s30  ;;  %v1958_v53 = vsel %vm1951_vm14, %v1941_v7, %v6848_v38 }
 0x1ae   :  { %1737 = vrot.lane.b32.xlu0 %v9864_v35, %s5020_s29  ;;  %v1975_v44 = vsel %vm1968_vm6, %v1958_v53, %v6898_v56  ;;  %v9869_v35 = vld [vmem:[#allocation56_spill] sm:$0xff]  ;;  %v9872_v53 = vld [vmem:[#allocation14_spill] sm:$0xff] }
 0x1af   :  { %v6999_v34 = vpop.permute.xlu1 %1521  ;;  %v1992_v42 = vsel %vm1985_vm4, %v1975_v44, %v1674_v8  ;;  %v1790_v38 = vsel %vm9857_vm1, %v1773_v55, %v9869_v35  ;;  %v9870_v56 = vld [vmem:[#allocation16_spill] sm:$0xff]  ;;  %v9874_v44 = vld [vmem:[#allocation17_spill] sm:$0xff]  ;;  %v247_v55 = vsel %vm175_vm5, %v139_v10, %v211_v26  ;;  %vm9879_vm1 = vcmask 261120  }
 0x1b0   :  { %v1676_v58 = vpop.permute.xlu0 %1675  ;;  %v1807_v7 = vsel %vm1799_vm0, %v1790_v38, %v9870_v56  ;;  %v9877_v38 = vld [vmem:[#allocation35_spill] sm:$0xff]  ;;  %v9878_v10 = vld [vmem:[#allocation8_spill] sm:$0xff]  ;;  %v9880_v56 = vld [vmem:[#allocation29_spill] sm:$0xff] }
 0x1b1   :  { %1323 = vrot.lane.b32.xlu1 %v6995_v36, %s5012_s18  ;;  %v1823_v8 = vsel %vm9873_vm12, %v1807_v7, %v9872_v53  ;;  %vm9881_vm12 = vcmask 523264  }
 0x1b2   :  { %1371 = vrot.lane.b32.xlu0 %v6697_v15, %s5013_s9  ;;  %v1840_v17 = vsel %vm9875_vm11, %v1823_v8, %v9874_v44 }
 0x1b3   :  { %v1730_v9 = vpop.permute.xlu1 %1729 }
 0x1b4   :  { %v2009_v5 = vsel %vm2002_vm15, %v1992_v42, %v1730_v9  ;;  %v7021_v63 = vpop.permute.xlu0 %967  ;;  %v9876_v42 = vld [vmem:[#allocation58_spill] sm:$0xff] }
 0x1b5   :  { %1531 = vrot.lane.b32.xlu1 %v6742_v59, %s5016_s22  ;;  %4725 = vmatprep.mubr.msk.f32.mxu0 %vm9871_vm13, %v2009_v5  ;;  %v1857_v9 = vsel %vm1849_vm2, %v1840_v17, %v9876_v42  ;;  %v4368_v59 = vld [vmem:[%s9573_s1 + $0x230] sm:$0xff] }
 0x1b6   :  { %1579 = vrot.lane.b32.xlu0 %v6612_v27, %s5017_s10  ;;  %v1874_v5 = vsel %vm1866_vm3, %v1857_v9, %v9877_v38  ;;  %v140_v27 = vld [vmem:[%s9573_s1 + $0x118] sm:$0x1]  ;;  %v356_v8 = vmul.f32 0.2, %v4368_v59  ;;  %vm320_vm5 = vcmp.ge.f32.partialorder %v4368_v59, 0.0 }
 0x1b7   :  { %v7034_v31 = vpop.permute.xlu1 %1029  ;;  %v1891_v26 = vsel %vm9879_vm1, %v1874_v5, %v9878_v10  ;;  %vm176_vm13 = vcmp.ge.f32.partialorder %v140_v27, 0.0  ;;  %vm9882_vm1 = vcmask 1046528  }
 0x1b8   :  { %v7038_v35 = vpop.permute.xlu0 %1315  ;;  %v1908_v7 = vsel %vm1900_vm7, %v1891_v26, %v9880_v56  ;;  %v392_v5 = vsel %vm320_vm5, %v4368_v59, %v356_v8  ;;  %vm9883_vm5 = vmmov %vm9882_vm1 }
 0x1b9   :  { %1739 = vrot.lane.b32.xlu1 %v6767_v21, %s5020_s29  ;;  %v1925_v44 = vsel %vm1917_vm8, %v1908_v7, %v6748_v24  ;;  %v212_v21 = vmul.f32 0.2, %v140_v27  ;;  %v1502_v8 = vrot.slane %v392_v5, 1 }
 0x1ba   :  { %1373 = vrot.lane.b32.xlu0 %v247_v55, %s5013_s9  ;;  %v1942_v42 = vsel %vm1934_vm9, %v1925_v44, %v6836_v61 }
 0x1bb   :  { %v7055_v53 = vpop.permute.xlu1 %1363  ;;  %v1959_v9 = vsel %vm1951_vm14, %v1942_v42, %v6891_v40  ;;  %v248_v61 = vsel %vm176_vm13, %v140_v27, %v212_v21 }
 0x1bc   :  { %v7059_v17 = vpop.permute.xlu0 %1523  ;;  %v1976_v24 = vsel %vm1968_vm6, %v1959_v9, %v6937_v20  ;;  %v1447_v20 = vrot.slane %v248_v61, 1  ;;  %v4441_v61 = vld [vmem:[%s9573_s1 + $0x478] sm:$0x1] }
 0x1bd   :  { %1421 = vrot.lane.b32.xlu1 %v6658_v18, %s5014_s26  ;;  %v1993_v10 = vsel %vm1985_vm4, %v1976_v24, %v1676_v58  ;;  %v4369_v18 = vld [vmem:[%s9573_s1 + $0x238] sm:$0x1] }
 0x1be   :  { %1581 = vrot.lane.b32.xlu0 %v6825_v37, %s5017_s10  ;;  %v1446_v37 = vrot.slane %v247_v55, 1  ;;  %v357_v59 = vmul.f32 0.2, %v4369_v18  ;;  %vm321_vm11 = vcmp.ge.f32.partialorder %v4369_v18, 0.0  ;;  %v4405_v24 = vld [vmem:[%s9573_s1 + $0x358] sm:$0x1] }
 0x1bf   :  { %v7071_v38 = vpop.permute.xlu1 %1571 }
 0x1c0   :  { %v1732_v26 = vpop.permute.xlu0 %1731  ;;  %v1448_v27 = vsel %vm9882_vm1, %v1446_v37, %v1447_v20  ;;  %v393_v55 = vsel %vm321_vm11, %v4369_v18, %v357_v59  ;;  %v647_v20 = vmul.f32 0.2, %v4441_v61  ;;  %vm611_vm1 = vcmp.ge.f32.partialorder %v4441_v61, 0.0 }
 0x1c1   :  { %v2010_v56 = vsel %vm2002_vm15, %v1993_v10, %v1732_v26  ;;  %1629 = vrot.lane.b32.xlu1 %v6678_v13, %s5018_s19  ;;  %v502_v10 = vmul.f32 0.2, %v4405_v24 }
 0x1c2   :  { %1423 = vrot.lane.b32.xlu0 %v392_v5, %s5014_s26  ;;  %4726 = vmatmul.mubr.msk.f32.gmra.mrb[6].mxu0 %vm9881_vm12, %v2010_v56  ;;  %v4440_v5 = vld [vmem:[%s9573_s1 + $0x470] sm:$0xff]  ;;  %vm466_vm12 = vcmp.ge.f32.partialorder %v4405_v24, 0.0 }
 0x1c3   :  { %v7082_v40 = vpop.permute.xlu1 %728  ;;  %v646_v56 = vmul.f32 0.2, %v4440_v5  ;;  %vm610_vm11 = vcmp.ge.f32.partialorder %v4440_v5, 0.0  ;;  %v538_v37 = vsel %vm466_vm12, %v4405_v24, %v502_v10 }
 0x1c4   :  { %v7084_v58 = vpop.permute.xlu0 %1031 }
 0x1c5   :  { %1477 = vrot.lane.b32.xlu1 %v6725_v62, %s5015_s15  ;;  %v1503_v62 = vrot.slane %v393_v55, 1 }
 0x1c6   :  { %1631 = vrot.lane.b32.xlu0 %v6878_v50, %s5018_s19 }
 0x1c7   :  { %v7090_v13 = vpop.permute.xlu1 %1093  ;;  %v1504_v42 = vsel %vm9883_vm5, %v1502_v8, %v1503_v62  ;;  %v683_v8 = vsel %vm611_vm1, %v4441_v61, %v647_v20  ;;  %vm2350_vm5 = vcmask 91136   ;;  %v9890_v20 = vld [vmem:[#allocation15_spill] sm:$0xff]  ;;  %vm9894_vm1 = vcmask 130048  }
 0x1c8   :  { %v7093_v7 = vpop.permute.xlu0 %1365  ;;  %v1715_v24 = vrot.slane %v683_v8, 1  ;;  %v9892_v8 = vld [vmem:[#allocation7_spill] sm:$0xff] }
 0x1c9   :  { %1685 = vrot.lane.b32.xlu1 %v6751_v14, %s5019_s30  ;;  %v4404_v14 = vld [vmem:[%s9573_s1 + $0x350] sm:$0xff] }
 0x1ca   :  { %1479 = vrot.lane.b32.xlu0 %v1448_v27, %s5015_s15  ;;  %vm465_vm13 = vcmp.ge.f32.partialorder %v4404_v14, 0.0 }
 0x1cb   :  { %v7098_v44 = vpop.permute.xlu1 %1413 }
 0x1cc   :  { %v7100_v21 = vpop.permute.xlu0 %1573 }
 0x1cd   :  { %1533 = vrot.lane.b32.xlu1 %v6811_v22, %s5016_s22  ;;  %v501_v22 = vmul.f32 0.2, %v4404_v14 }
 0x1ce   :  { %1687 = vrot.lane.b32.xlu0 %v6917_v12, %s5019_s30 }
 0x1cf   :  { %v7106_v50 = vpop.permute.xlu1 %1621 }
 0x1d0   :  { %v7112_v9 = vpop.permute.xlu0 %730 }
 0x1d1   :  { %1741 = vrot.lane.b32.xlu1 %v6832_v43, %s5020_s29  ;;  %v7134_v43 = vsel %vm465_vm13, %v4404_v14, %v501_v22  ;;  %vm9884_vm13 = vcmask 1046528  }
 0x1d2   :  { %1535 = vrot.lane.b32.xlu0 %v1504_v42, %s5016_s22  ;;  %v1658_v27 = vrot.slane %v7134_v43, 1  ;;  %v5021_v42 = vmov 0.0   ;;  %vm9889_vm12 = vmmov %vm9884_vm13 }
 0x1d3   :  { %v7120_v12 = vpop.permute.xlu1 %857  ;;  %2362 = vst.msk [vmem:[#allocation2 + $0x60] sm:$0xff] %vm1799_vm0, %v5021_v42  ;;  %2349 = vst.msk [vmem:[#allocation2] sm:$0xff] %vm1799_vm0, %v5021_v42 }
 0x1d4   :  { %v7125_v26 = vpop.permute.xlu0 %1095  ;;  %2363 = vst.msk [vmem:[#allocation2 + $0x68] sm:$0x3] %vm2350_vm5, %v5021_v42  ;;  %2351 = vst.msk [vmem:[#allocation2 + $0x8] sm:$0x3] %vm2350_vm5, %v5021_v42 }
 0x1d5   :  { %1583 = vrot.lane.b32.xlu1 %v6874_v28, %s5017_s10  ;;  %v682_v28 = vsel %vm610_vm11, %v4440_v5, %v646_v56  ;;  %2352 = vst.msk [vmem:[#allocation2 + $0x10] sm:$0xff] %vm1799_vm0, %v5021_v42  ;;  %2354 = vst.msk [vmem:[#allocation2 + $0x20] sm:$0xff] %vm1799_vm0, %v5021_v42  ;;  %v9888_v56 = vld [vmem:[#allocation23_spill] sm:$0xff]  ;;  %vm9891_vm11 = vcmask 64512  }
 0x1d6   :  { %1743 = vrot.lane.b32.xlu0 %v6950_v46, %s5020_s29  ;;  %v1659_v46 = vrot.slane %v538_v37, 1  ;;  %2353 = vst.msk [vmem:[#allocation2 + $0x18] sm:$0x3] %vm2350_vm5, %v5021_v42  ;;  %2355 = vst.msk [vmem:[#allocation2 + $0x28] sm:$0x3] %vm2350_vm5, %v5021_v42 }
 0x1d7   :  { %v7136_v18 = vpop.permute.xlu1 %1205  ;;  %2356 = vst.msk [vmem:[#allocation2 + $0x30] sm:$0xff] %vm1799_vm0, %v5021_v42  ;;  %2358 = vst.msk [vmem:[#allocation2 + $0x40] sm:$0xff] %vm1799_vm0, %v5021_v42 }
 0x1d8   :  { %v7138_v59 = vpop.permute.xlu0 %1415  ;;  %2357 = vst.msk [vmem:[#allocation2 + $0x38] sm:$0x3] %vm2350_vm5, %v5021_v42  ;;  %2359 = vst.msk [vmem:[#allocation2 + $0x48] sm:$0x3] %vm2350_vm5, %v5021_v42  ;;  %v1660_v14 = vsel %vm9884_vm13, %v1658_v27, %v1659_v46  ;;  %v2227_v46 = vld [vmem:[%s9574_s2 + $0x30] sm:$0xff]  ;;  %vm9898_vm13 = vcmask 261120  }
 0x1d9   :  { %1585 = vrot.lane.b32.xlu1 %v7134_v43, %s5017_s10  ;;  %2360 = vst.msk [vmem:[#allocation2 + $0x50] sm:$0xff] %vm1799_vm0, %v5021_v42  ;;  %2364 = vst.msk [vmem:[#allocation2 + $0x70] sm:$0xff] %vm1799_vm0, %v5021_v42  ;;  %v9887_v43 = vld [vmem:[#allocation18_spill] sm:$0xff] }
 0x1da   :  { %1633 = vrot.lane.b32.xlu0 %v6912_v11, %s5018_s19  ;;  %2361 = vst.msk [vmem:[#allocation2 + $0x58] sm:$0x3] %vm2350_vm5, %v5021_v42  ;;  %2365 = vst.msk [vmem:[#allocation2 + $0x78] sm:$0x3] %vm2350_vm5, %v5021_v42  ;;  %v1714_v11 = vrot.slane %v682_v28, 1  ;;  %v1774_v37 = vsel %vm1765_vm10, %v9888_v56, %v9887_v43  ;;  %v9893_v43 = vld [vmem:[#allocation30_spill] sm:$0xff] }
 0x1db   :  { %v7145_v55 = vpop.permute.xlu1 %1469  ;;  %2366 = vst.msk [vmem:[#allocation2 + $0x80] sm:$0xff] %vm1799_vm0, %v5021_v42  ;;  %2368 = vst.msk [vmem:[#allocation2 + $0x90] sm:$0xff] %vm1799_vm0, %v5021_v42  ;;  %v1791_v27 = vsel %vm9891_vm11, %v1774_v37, %v9890_v20  ;;  %v9897_v37 = vld [vmem:[#allocation36_spill] sm:$0xff] }
 0x1dc   :  { %v7147_v62 = vpop.permute.xlu0 %1623  ;;  %2367 = vst.msk [vmem:[#allocation2 + $0x88] sm:$0x3] %vm2350_vm5, %v5021_v42  ;;  %2369 = vst.msk [vmem:[#allocation2 + $0x98] sm:$0x3] %vm2350_vm5, %v5021_v42 }
 0x1dd   :  { %2370 = vst.msk [vmem:[#allocation2 + $0xa0] sm:$0xff] %vm1799_vm0, %v5021_v42  ;;  %2372 = vst.msk [vmem:[#allocation2 + $0xb0] sm:$0xff] %vm1799_vm0, %v5021_v42  ;;  %1635 = vrot.lane.b32.xlu1 %v682_v28, %s5018_s19 }
 0x1de   :  { %2371 = vst.msk [vmem:[#allocation2 + $0xa8] sm:$0x3] %vm2350_vm5, %v5021_v42  ;;  %2373 = vst.msk [vmem:[#allocation2 + $0xb8] sm:$0x3] %vm2350_vm5, %v5021_v42  ;;  %1689 = vrot.lane.b32.xlu0 %v6947_v19, %s5019_s30  ;;  %v1716_v19 = vsel %vm9889_vm12, %v1714_v11, %v1715_v24  ;;  %v2228_v24 = vld [vmem:[%s9574_s2 + $0x38] sm:$0xff] }
 0x1df   :  { %2374 = vst.msk [vmem:[#allocation2 + $0xc0] sm:$0xff] %vm1799_vm0, %v5021_v42  ;;  %2376 = vst.msk [vmem:[#allocation2 + $0xd0] sm:$0xff] %vm1799_vm0, %v5021_v42  ;;  %v1678_v22 = vpop.permute.xlu1 %1677 }
 0x1e0   :  { %2375 = vst.msk [vmem:[#allocation2 + $0xc8] sm:$0x3] %vm2350_vm5, %v5021_v42  ;;  %2377 = vst.msk [vmem:[#allocation2 + $0xd8] sm:$0x3] %vm2350_vm5, %v5021_v42  ;;  %v7193_v5 = vpop.permute.xlu0 %859  ;;  %v7195_v10 = vpop.f32.mrb[0].mxu0 }
 0x1e1   :  { %2378 = vst.msk [vmem:[#allocation2 + $0xe0] sm:$0xff] %vm1799_vm0, %v5021_v42  ;;  %2380 = vst.msk [vmem:[#allocation2 + $0xf0] sm:$0xff] %vm1799_vm0, %v5021_v42  ;;  %1691 = vrot.lane.b32.xlu1 %v1660_v14, %s5019_s30  ;;  %v7198_v61 = vpop.f32.mrb[1].mxu0 }
 0x1e2   :  { %2379 = vst.msk [vmem:[#allocation2 + $0xe8] sm:$0x3] %vm2350_vm5, %v5021_v42  ;;  %2381 = vst.msk [vmem:[#allocation2 + $0xf8] sm:$0x3] %vm2350_vm5, %v5021_v42  ;;  %1745 = vrot.lane.b32.xlu0 %v6995_v36, %s5020_s29  ;;  %v9895_v36 = vld [vmem:[#allocation19_spill] sm:$0xff] }
 0x1e3   :  { %2382 = vst.msk [vmem:[#allocation2 + $0x100] sm:$0xff] %vm1799_vm0, %v5021_v42  ;;  %2384 = vst.msk [vmem:[#allocation2 + $0x110] sm:$0xff] %vm1799_vm0, %v5021_v42  ;;  %v7208_v28 = vpop.permute.xlu1 %969 }
 0x1e4   :  { %2383 = vst.msk [vmem:[#allocation2 + $0x108] sm:$0x3] %vm2350_vm5, %v5021_v42  ;;  %2385 = vst.msk [vmem:[#allocation2 + $0x118] sm:$0x3] %vm2350_vm5, %v5021_v42  ;;  %v7215_v14 = vpop.permute.xlu0 %1207 }
 0x1e5   :  { %2386 = vst.msk [vmem:[#allocation2 + $0x120] sm:$0xff] %vm1799_vm0, %v5021_v42  ;;  %2388 = vst.msk [vmem:[#allocation2 + $0x130] sm:$0xff] %vm1799_vm0, %v5021_v42  ;;  %1747 = vrot.lane.b32.xlu1 %v1716_v19, %s5020_s29 }
 0x1e6   :  { %2387 = vst.msk [vmem:[#allocation2 + $0x128] sm:$0x3] %vm2350_vm5, %v5021_v42  ;;  %2389 = vst.msk [vmem:[#allocation2 + $0x138] sm:$0x3] %vm2350_vm5, %v5021_v42  ;;  %v1808_v42 = vsel %vm1799_vm0, %v1791_v27, %v9892_v8  ;;  %vm9896_vm5 = vcmask 162816   ;;  %2265 = vrot.lane.b32.xlu0 %v2227_v46, %s5007_s20  ;;  %v2226_v8 = vld [vmem:[%s9574_s2 + $0x28] sm:$0xff] }
 0x1e7   :  { %9885 = vst [vmem:[#allocation53_spill] sm:$0xff] %v7195_v10  ;;  %9886 = vst [vmem:[#allocation22_spill] sm:$0xff] %v7198_v61  ;;  %v1824_v56 = vsel %vm9894_vm1, %v1808_v42, %v9893_v43  ;;  %v7228_v27 = vpop.permute.xlu1 %1317 }
 0x1e8   :  { %v1841_v11 = vsel %vm9896_vm5, %v1824_v56, %v9895_v36  ;;  %v7235_v42 = vpop.permute.xlu0 %1471  ;;  %v2229_v56 = vld [vmem:[%s9574_s2 + $0x40] sm:$0xff]  ;;  %vm9902_vm12 = vmmov %vm9891_vm11  ;;  %vm9904_vm11 = vcmask 523264  }
 0x1e9   :  { %v1858_v20 = vsel %vm1849_vm2, %v1841_v11, %v9897_v37  ;;  %2267 = vrot.lane.b32.xlu1 %v2228_v24, %s5007_s20 }
 0x1ea   :  { %v1875_v19 = vsel %vm1866_vm3, %v1858_v20, %v6746_v41  ;;  %2263 = vrot.lane.b32.xlu0 %v2226_v8, %s5007_s20  ;;  %v9899_v20 = vld [vmem:[#allocation13_spill] sm:$0xff]  ;;  %v9900_v8 = vld [vmem:[#allocation28_spill] sm:$0xff] }
 0x1eb   :  { %v1892_v46 = vsel %vm9898_vm13, %v1875_v19, %v6829_v48  ;;  %v7248_v41 = vpop.permute.xlu1 %1525  ;;  %v2230_v48 = vld [vmem:[%s9574_s2 + $0x48] sm:$0xff]  ;;  %v1775_v19 = vsel %vm1765_vm10, %v9900_v8, %v9899_v20  ;;  %v9906_v20 = vld [vmem:[#allocation24_spill] sm:$0xff] }
 0x1ec   :  { %v1909_v43 = vsel %vm1900_vm7, %v1892_v46, %v6886_v30  ;;  %v1680_v24 = vpop.permute.xlu0 %1679 }
 0x1ed   :  { %v1926_v36 = vsel %vm1917_vm8, %v1909_v43, %v6935_v16  ;;  %2269 = vrot.lane.b32.xlu1 %v2229_v56, %s5007_s20  ;;  %v2231_v16 = vld [vmem:[%s9574_s2 + $0x50] sm:$0xff]  ;;  %v9901_v43 = vld [vmem:[#allocation57_spill] sm:$0xff] }
 0x1ee   :  { %v1943_v11 = vsel %vm1934_vm9, %v1926_v36, %v6999_v34  ;;  %2271 = vrot.lane.b32.xlu0 %v2230_v48, %s5007_s20  ;;  %v9903_v48 = vld [vmem:[#allocation25_spill] sm:$0xff] }
 0x1ef   :  { %v1960_v30 = vsel %vm1951_vm14, %v1943_v11, %v7071_v38  ;;  %v1734_v46 = vpop.permute.xlu1 %1733  ;;  %v2232_v38 = vld [vmem:[%s9574_s2 + $0x58] sm:$0xff] }
 0x1f0   :  { %v1977_v37 = vsel %vm1968_vm6, %v1960_v30, %v7106_v50  ;;  %v1792_v50 = vsel %vm9902_vm12, %v1775_v19, %v9901_v43  ;;  %v7274_v36 = vpop.permute.xlu0 %971  ;;  %vm9907_vm12 = vmmov %vm9904_vm11 }
 0x1f1   :  { %v1994_v34 = vsel %vm1985_vm4, %v1977_v37, %v1678_v22  ;;  %v1809_v11 = vsel %vm1799_vm0, %v1792_v50, %v9903_v48  ;;  %2273 = vrot.lane.b32.xlu1 %v2231_v16, %s5007_s20  ;;  %v9905_v22 = vld [vmem:[#allocation54_spill] sm:$0xff]  ;;  %v2234_v16 = vld [vmem:[%s9574_s2 + $0x68] sm:$0xff]  ;;  %v2235_v50 = vld [vmem:[%s9574_s2 + $0x70] sm:$0xff] }
 0x1f2   :  { %v2011_v56 = vsel %vm2002_vm15, %v1994_v34, %v1734_v46  ;;  %v1825_v30 = vsel %vm9894_vm1, %v1809_v11, %v9905_v22  ;;  %2275 = vrot.lane.b32.xlu0 %v2232_v38, %s5007_s20  ;;  %v2233_v37 = vld [vmem:[%s9574_s2 + $0x60] sm:$0xff] }
 0x1f3   :  { %4728 = vmatprep.mubr.msk.f32.mxu0 %vm9904_vm11, %v2011_v56  ;;  %v1842_v8 = vsel %vm9896_vm5, %v1825_v30, %v9906_v20  ;;  %v7288_v19 = vpop.permute.xlu1 %1033  ;;  %vm9913_vm11 = vcmask 64512  }
 0x1f4   :  { %v1859_v34 = vsel %vm1849_vm2, %v1842_v8, %v6722_v51  ;;  %v7295_v46 = vpop.permute.xlu0 %1319 }
 0x1f5   :  { %v1876_v38 = vsel %vm1866_vm3, %v1859_v34, %v6815_v54  ;;  %2277 = vrot.lane.b32.xlu1 %v2233_v37, %s5007_s20  ;;  %v2236_v54 = vld [vmem:[%s9574_s2 + $0x78] sm:$0xff]  ;;  %v2222_v37 = vld [vmem:[%s9574_s2 + $0x8] sm:$0xff]  ;;  %v2225_v34 = vld [vmem:[%s9574_s2 + $0x20] sm:$0xff] }
 0x1f6   :  { %v1893_v43 = vsel %vm9898_vm13, %v1876_v38, %v6880_v0  ;;  %2279 = vrot.lane.b32.xlu0 %v2234_v16, %s5007_s20  ;;  %v2224_v16 = vld [vmem:[%s9574_s2 + $0x18] sm:$0xff] }
 0x1f7   :  { %v1910_v56 = vsel %vm1900_vm7, %v1893_v43, %v6927_v60  ;;  %v7308_v51 = vpop.permute.xlu1 %1367  ;;  %v2221_v60 = vld [vmem:[%s9574_s2] sm:$0xff] }
 0x1f8   :  { %v1927_v48 = vsel %vm1917_vm8, %v1910_v56, %v6984_v2  ;;  %v7315_v11 = vpop.permute.xlu0 %1527 }
 0x1f9   :  { %v1944_v0 = vsel %vm1934_vm9, %v1927_v48, %v7059_v17  ;;  %2281 = vrot.lane.b32.xlu1 %v2235_v50, %s5007_s20 }
 0x1fa   :  { %v1961_v22 = vsel %vm1951_vm14, %v1944_v0, %v7100_v21  ;;  %2283 = vrot.lane.b32.xlu0 %v2236_v54, %s5007_s20  ;;  %v2223_v21 = vld [vmem:[%s9574_s2 + $0x10] sm:$0xff] }
 0x1fb   :  { %v1978_v30 = vsel %vm1968_vm6, %v1961_v22, %v7147_v62  ;;  %v1576_v2 = vpop.permute.xlu1 %1575 }
 0x1fc   :  { %v1995_v17 = vsel %vm1985_vm4, %v1978_v30, %v1680_v24  ;;  %v1736_v20 = vpop.permute.xlu0 %1735  ;;  %v9911_v30 = vld [vmem:[#allocation47_spill] sm:$0xff] }
 0x1fd   :  { %v2012_v8 = vsel %vm2002_vm15, %v1995_v17, %v1736_v20  ;;  %2253 = vrot.lane.b32.xlu1 %v2221_v60, %s5007_s20  ;;  %v9910_v60 = vld [vmem:[#allocation46_spill] sm:$0xff]  ;;  %v9912_v20 = vld [vmem:[#allocation21_spill] sm:$0xff] }
 0x1fe   :  { %2255 = vrot.lane.b32.xlu0 %v2222_v37, %s5007_s20  ;;  %4729 = vmatmul.mubr.msk.f32.gmra.mrb[8].mxu0 %vm9907_vm12, %v2012_v8  ;;  %v1776_v37 = vsel %vm1765_vm10, %v9911_v30, %v9910_v60  ;;  %vm9919_vm12 = vmmov %vm9913_vm11 }
 0x1ff   :  { %v7339_v62 = vpop.permute.xlu1 %1035  ;;  %v1793_v8 = vsel %vm9913_vm11, %v1776_v37, %v9912_v20  ;;  %vm9920_vm11 = vmmov %vm9894_vm1 }
 0x200   :  { %9908 = vst [vmem:[#allocation9_spill] sm:$0xff] %v7339_v62  ;;  %v7344_v24 = vpop.permute.xlu0 %1097 }
 0x201   :  { %2257 = vrot.lane.b32.xlu1 %v2223_v21, %s5007_s20 }
 0x202   :  { %2259 = vrot.lane.b32.xlu0 %v2224_v16, %s5007_s20  ;;  %v9914_v16 = vld [vmem:[#allocation39_spill] sm:$0xff] }
 0x203   :  { %v7351_v38 = vpop.permute.xlu1 %1369 }
 0x204   :  { %v7353_v43 = vpop.permute.xlu0 %1417 }
 0x205   :  { %2261 = vrot.lane.b32.xlu1 %v2225_v34, %s5007_s20  ;;  %v1810_v34 = vsel %vm1799_vm0, %v1793_v8, %v9914_v16 }
 0x206   :  { %v1826_v10 = vsel %vm9894_vm1, %v1810_v34, %v6808_v23  ;;  %vm9921_vm1 = vmmov %vm9896_vm5 }
 0x207   :  { %v1578_v50 = vpop.permute.xlu1 %1577  ;;  %v1843_v61 = vsel %vm9896_vm5, %v1826_v10, %v6876_v57  ;;  %vm9922_vm5 = vcmask 523264  }
 0x208   :  { %v1626_v56 = vpop.permute.xlu0 %1625  ;;  %v1860_v62 = vsel %vm1849_vm2, %v1843_v61, %v6925_v3 }
 0x209   :  { %v1877_v30 = vsel %vm1866_vm3, %v1860_v62, %v6980_v6  ;;  %v9916_v6 = vld [vmem:[#allocation51_spill] sm:$0xff] }
 0x20a   :  { %v1894_v37 = vsel %vm9898_vm13, %v1877_v30, %v7055_v53  ;;  %v9917_v62 = vld [vmem:[#allocation55_spill] sm:$0xff] }
 0x20b   :  { %v7356_v54 = vpop.permute.xlu1 %1099  ;;  %v1911_v20 = vsel %vm1900_vm7, %v1894_v37, %v7098_v44  ;;  %v1777_v53 = vsel %vm1765_vm10, %v9917_v62, %v9916_v6  ;;  %v9918_v44 = vld [vmem:[#allocation45_spill] sm:$0xff] }
 0x20c   :  { %9909 = vst [vmem:[#allocation27_spill] sm:$0xff] %v7356_v54  ;;  %v7358_v48 = vpop.permute.xlu0 %1209  ;;  %v1928_v57 = vsel %vm1917_vm8, %v1911_v20, %v7145_v55  ;;  %v1794_v34 = vsel %vm9919_vm12, %v1777_v53, %v9918_v44  ;;  %vm9923_vm12 = vmmov %vm9922_vm5 }
 0x20d   :  { %v1945_v3 = vsel %vm1934_vm9, %v1928_v57, %v7248_v41  ;;  %v1811_v37 = vsel %vm1799_vm0, %v1794_v34, %v6794_v49 }
 0x20e   :  { %v1962_v16 = vsel %vm1951_vm14, %v1945_v3, %v1576_v2  ;;  %v1827_v57 = vsel %vm9920_vm11, %v1811_v37, %v6865_v25  ;;  %vm9925_vm11 = vcmask 64512  }
 0x20f   :  { %v7360_v0 = vpop.permute.xlu1 %1419  ;;  %v1979_v30 = vsel %vm1968_vm6, %v1962_v16, %v1626_v56  ;;  %v1844_v2 = vsel %vm9921_vm1, %v1827_v57, %v6919_v33  ;;  %vm9926_vm1 = vcmask 130048  }
 0x210   :  { %v7362_v22 = vpop.permute.xlu0 %1473  ;;  %v1861_v56 = vsel %vm1849_vm2, %v1844_v2, %v6967_v1 }
 0x211   :  { %v1878_v49 = vsel %vm1866_vm3, %v1861_v56, %v7038_v35  ;;  %v1779_v56 = vsel %vm1765_vm10, %v6416_v32, %v6900_v39 }
 0x212   :  { %v1895_v25 = vsel %vm9898_vm13, %v1878_v49, %v7093_v7  ;;  %vm9928_vm13 = vmmov %vm9925_vm11 }
 0x213   :  { %v1628_v17 = vpop.permute.xlu1 %1627  ;;  %v1912_v6 = vsel %vm1900_vm7, %v1895_v25, %v7138_v59 }
 0x214   :  { %v1682_v21 = vpop.permute.xlu0 %1681  ;;  %v1929_v33 = vsel %vm1917_vm8, %v1912_v6, %v7235_v42 }
 0x215   :  { %v1996_v20 = vsel %vm1985_vm4, %v1979_v30, %v1682_v21  ;;  %v1946_v1 = vsel %vm1934_vm9, %v1929_v33, %v7315_v11  ;;  %v9924_v11 = vld [vmem:[#allocation6_spill] sm:$0xff] }
 0x216   :  { %v1963_v53 = vsel %vm1951_vm14, %v1946_v1, %v1578_v50  ;;  %v1778_v50 = vsel %vm1765_vm10, %v9924_v11, %v6863_v29 }
 0x217   :  { %v7375_v54 = vpop.permute.xlu1 %1211  ;;  %v1980_v35 = vsel %vm1968_vm6, %v1963_v53, %v1628_v17  ;;  %v1795_v17 = vsel %vm9925_vm11, %v1778_v50, %v6914_v4  ;;  %v1796_v4 = vsel %vm9928_vm13, %v1779_v56, %v6952_v47  ;;  %vm9930_vm11 = vmmov %vm9926_vm1  ;;  %vm9933_vm13 = vcmask 523264  }
 0x218   :  { %v7379_v60 = vpop.permute.xlu0 %1321 }
 0x21b   :  { %v7387_v23 = vpop.permute.xlu1 %1475 }
 0x21c   :  { %v1530_v10 = vpop.permute.xlu0 %1529  ;;  %v7391_v8 = vpop.f32.mrb[2].mxu0 }
 0x21d   :  { %9915 = vst [vmem:[#allocation33_spill] sm:$0xff] %v7391_v8  ;;  %v7395_v61 = vpop.f32.mrb[3].mxu0 }
 0x21f   :  { %v1684_v55 = vpop.permute.xlu1 %1683 }
 0x220   :  { %v1738_v41 = vpop.permute.xlu0 %1737  ;;  %v1997_v16 = vsel %vm1985_vm4, %v1980_v35, %v1684_v55 }
 0x221   :  { %v2013_v8 = vsel %vm2002_vm15, %v1996_v20, %v1738_v41  ;;  %v1812_v20 = vsel %vm1799_vm0, %v1795_v17, %v6963_v45 }
 0x222   :  { %4731 = vmatprep.mubr.msk.f32.mxu0 %vm9922_vm5, %v2013_v8  ;;  %v1828_v57 = vsel %vm9926_vm1, %v1812_v20, %v7034_v31  ;;  %vm9927_vm5 = vcmask 162816   ;;  %v1813_v31 = vsel %vm1799_vm0, %v1796_v4, %v7021_v63  ;;  %v9940_v20 = vld [vmem:[#allocation27_spill] sm:$0xff] }
 0x223   :  { %v7415_v3 = vpop.permute.xlu1 %1323  ;;  %v1845_v2 = vsel %vm9927_vm5, %v1828_v57, %v7090_v13  ;;  %v1829_v32 = vsel %vm9930_vm11, %v1813_v31, %v7084_v58  ;;  %vm9931_vm1 = vmmov %vm9927_vm5 }
 0x224   :  { %v7419_v21 = vpop.permute.xlu0 %1371  ;;  %v1862_v29 = vsel %vm1849_vm2, %v1845_v2, %v7136_v18  ;;  %v1846_v18 = vsel %vm9931_vm1, %v1829_v32, %v7125_v26  ;;  %vm9935_vm1 = vmmov %vm9933_vm13 }
 0x225   :  { %v1879_v45 = vsel %vm1866_vm3, %v1862_v29, %v7228_v27  ;;  %v1863_v6 = vsel %vm1849_vm2, %v1846_v18, %v7215_v14 }
 0x227   :  { %v1532_v8 = vpop.permute.xlu1 %1531 }
 0x228   :  { %v1580_v62 = vpop.permute.xlu0 %1579 }
 0x22b   :  { %v1740_v44 = vpop.permute.xlu1 %1739 }
 0x22c   :  { %v2014_v7 = vsel %vm2002_vm15, %v1997_v16, %v1740_v44  ;;  %v7433_v34 = vpop.permute.xlu0 %1373 }
 0x22d   :  { %4732 = vmatmul.mubr.msk.f32.gmra.mrb[10].mxu0 %vm9923_vm12, %v2014_v7  ;;  %vm9929_vm12 = vcmask 261120  }
 0x22e   :  { %v1896_v13 = vsel %vm9929_vm12, %v1879_v45, %v7308_v51  ;;  %v1880_v51 = vsel %vm1866_vm3, %v1863_v6, %v7295_v46  ;;  %vm9932_vm5 = vmmov %vm9929_vm12  ;;  %vm9934_vm12 = vcmask 64512  }
 0x22f   :  { %v7436_v59 = vpop.permute.xlu1 %1421  ;;  %v1913_v39 = vsel %vm1900_vm7, %v1896_v13, %v7353_v43  ;;  %v1897_v43 = vsel %vm9932_vm5, %v1880_v51, %v7351_v38  ;;  %vm9936_vm5 = vmmov %vm9934_vm12 }
 0x230   :  { %v1582_v42 = vpop.permute.xlu0 %1581  ;;  %v1930_v47 = vsel %vm1917_vm8, %v1913_v39, %v7362_v22  ;;  %v1914_v22 = vsel %vm1900_vm7, %v1897_v43, %v7360_v0 }
 0x231   :  { %v1947_v63 = vsel %vm1934_vm9, %v1930_v47, %v1530_v10  ;;  %v1931_v14 = vsel %vm1917_vm8, %v1914_v22, %v7387_v23 }
 0x232   :  { %v1964_v58 = vsel %vm1951_vm14, %v1947_v63, %v1580_v62  ;;  %v1948_v46 = vsel %vm1934_vm9, %v1931_v14, %v1532_v8  ;;  %v1780_v62 = vsel %vm1765_vm10, %v6644_v52, %v7082_v40 }
 0x233   :  { %v1630_v30 = vpop.permute.xlu1 %1629  ;;  %v1965_v38 = vsel %vm1951_vm14, %v1948_v46, %v1582_v42  ;;  %v1797_v44 = vsel %vm9934_vm12, %v1780_v62, %v7120_v12  ;;  %v1781_v42 = vsel %vm1765_vm10, %v6697_v15, %v7112_v9  ;;  %v9938_v15 = vld [vmem:[#allocation9_spill] sm:$0xff]  ;;  %vm9939_vm12 = vmmov %vm9930_vm11 }
 0x234   :  { %v7438_v37 = vpop.permute.xlu0 %1423  ;;  %v1981_v26 = vsel %vm1968_vm6, %v1964_v58, %v1630_v30  ;;  %v1814_v8 = vsel %vm1799_vm0, %v1797_v44, %v7208_v28  ;;  %v1798_v40 = vsel %vm9936_vm5, %v1781_v42, %v7193_v5  ;;  %v9952_v42 = vld [vmem:[#allocation33_spill] sm:$0xff] }
 0x235   :  { %v1830_v52 = vsel %vm9930_vm11, %v1814_v8, %v7288_v19  ;;  %v1815_v28 = vsel %vm1799_vm0, %v1798_v40, %v7274_v36 }
 0x236   :  { %v1831_v9 = vsel %vm9939_vm12, %v1815_v28, %v9938_v15 }
 0x237   :  { %v1478_v55 = vpop.permute.xlu1 %1477 }
 0x238   :  { %v1632_v41 = vpop.permute.xlu0 %1631 }
 0x239   :  { %v1982_v0 = vsel %vm1968_vm6, %v1965_v38, %v1632_v41 }
 0x23b   :  { %v1686_v49 = vpop.permute.xlu1 %1685 }
 0x23c   :  { %v1480_v25 = vpop.permute.xlu0 %1479  ;;  %v1998_v1 = vsel %vm1985_vm4, %v1981_v26, %v1686_v49 }
 0x23f   :  { %v1534_v27 = vpop.permute.xlu1 %1533 }
 0x240   :  { %v1688_v33 = vpop.permute.xlu0 %1687 }
 0x241   :  { %v1999_v23 = vsel %vm1985_vm4, %v1982_v0, %v1688_v33  ;;  %v9949_v0 = vld [vmem:[#allocation53_spill] sm:$0xff] }
 0x243   :  { %v1742_v53 = vpop.permute.xlu1 %1741 }
 0x244   :  { %v2015_v10 = vsel %vm2002_vm15, %v1998_v1, %v1742_v53  ;;  %v1536_v35 = vpop.permute.xlu0 %1535 }
 0x245   :  { %4734 = vmatprep.mubr.msk.f32.mxu0 %vm9933_vm13, %v2015_v10  ;;  %vm9937_vm13 = vcmask 162816  }
 0x246   :  { %v1847_v12 = vsel %vm9937_vm13, %v1830_v52, %v7344_v24  ;;  %vm9941_vm11 = vmmov %vm9937_vm13 }
 0x247   :  { %v1584_v16 = vpop.permute.xlu1 %1583  ;;  %v1864_v50 = vsel %vm1849_vm2, %v1847_v12, %v7358_v48  ;;  %v1848_v5 = vsel %vm9941_vm11, %v1831_v9, %v9940_v20  ;;  %v2867_v20 = vld [vmem:[%s9576_s4] sm:$0xff] }
 0x248   :  { %v1744_v7 = vpop.permute.xlu0 %1743  ;;  %v1881_v19 = vsel %vm1866_vm3, %v1864_v50, %v7379_v60  ;;  %v1865_v41 = vsel %vm1849_vm2, %v1848_v5, %v7375_v54  ;;  %v2868_v5 = vld [vmem:[%s9576_s4 + $0x8] sm:$0xff] }
 0x249   :  { %v2016_v30 = vsel %vm2002_vm15, %v1999_v23, %v1744_v7  ;;  %v1882_v57 = vsel %vm1866_vm3, %v1865_v41, %v7415_v3  ;;  %vm9944_vm3 = vcmask 523264   ;;  %v2869_v41 = vld [vmem:[%s9576_s4 + $0x10] sm:$0xff] }
 0x24a   :  { %4735 = vmatmul.mubr.msk.f32.gmra.mrb[12].mxu0 %vm9935_vm1, %v2016_v30  ;;  %vm9942_vm1 = vcmask 261120  }
 0x24b   :  { %v1586_v11 = vpop.permute.xlu1 %1585  ;;  %v1898_v24 = vsel %vm9942_vm1, %v1881_v19, %v7419_v21  ;;  %vm9943_vm5 = vmmov %vm9942_vm1 }
 0x24c   :  { %v1634_v17 = vpop.permute.xlu0 %1633  ;;  %v1915_v36 = vsel %vm1900_vm7, %v1898_v24, %v7436_v59  ;;  %v1899_v60 = vsel %vm9943_vm5, %v1882_v57, %v7433_v34  ;;  %v4900_v24 = vpack.c.bf16 %v2868_v5, %v2867_v20 }
 0x24d   :  { %v1932_v2 = vsel %vm1917_vm8, %v1915_v36, %v1478_v55  ;;  %v1916_v21 = vsel %vm1900_vm7, %v1899_v60, %v7438_v37  ;;  %v2870_v36 = vld [vmem:[%s9576_s4 + $0x18] sm:$0xff] }
 0x24e   :  { %v1949_v29 = vsel %vm1934_vm9, %v1932_v2, %v1534_v27  ;;  %v1933_v49 = vsel %vm1917_vm8, %v1916_v21, %v1480_v25  ;;  %vm9945_vm8 = vmmov %vm9944_vm3  ;;  %4948 = vmatprep.subr.bf16.mxu1 %v4900_v24  ;;  %4901 = vmatprep.subr.bf16.mxu0 %v4900_v24  ;;  %v2872_v21 = vld [vmem:[%s9576_s4 + $0x28] sm:$0xff] }
 0x24f   :  { %v1636_v48 = vpop.permute.xlu1 %1635  ;;  %v1966_v54 = vsel %vm1951_vm14, %v1949_v29, %v1584_v16  ;;  %v1950_v3 = vsel %vm1934_vm9, %v1933_v49, %v1536_v35  ;;  %vm9946_vm9 = vcmask 64512   ;;  %v9947_v35 = vld [vmem:[#allocation22_spill] sm:$0xff]  ;;  %4951 = vmatpush3.bf16.msra.mxu1 %v4900_v24  ;;  %4903 = vmatpush3.bf16.msra.mxu0 %v4900_v24 }
 0x250   :  { %v1690_v56 = vpop.permute.xlu0 %1689  ;;  %v1983_v59 = vsel %vm1968_vm6, %v1966_v54, %v1634_v17  ;;  %v1967_v31 = vsel %vm1951_vm14, %v1950_v3, %v1586_v11  ;;  %v2871_v29 = vld [vmem:[%s9576_s4 + $0x20] sm:$0xff] }
 0x251   :  { %v2000_v55 = vsel %vm1985_vm4, %v1983_v59, %v1690_v56  ;;  %v1984_v13 = vsel %vm1968_vm6, %v1967_v31, %v1636_v48  ;;  %v4904_v48 = vpack.c.bf16 %v2870_v36, %v2869_v41  ;;  %v4908_v54 = vpack.c.bf16 %v2872_v21, %v2871_v29 }
 0x253   :  { %v1692_v4 = vpop.permute.xlu1 %1691  ;;  %4949 = vmatprep.subr.bf16.mxu1 %v4904_v48  ;;  %4905 = vmatprep.subr.bf16.mxu0 %v4904_v48 }
 0x254   :  { %v1746_v45 = vpop.permute.xlu0 %1745  ;;  %v2001_v37 = vsel %vm1985_vm4, %v1984_v13, %v1692_v4  ;;  %vm9948_vm4 = vmmov %vm9946_vm9  ;;  %4952 = vmatpush3.bf16.msra.mxu1 %v4904_v48  ;;  %4907 = vmatpush3.bf16.msra.mxu0 %v4904_v48 }
 0x255   :  { %v2017_v34 = vsel %vm2002_vm15, %v2000_v55, %v1746_v45  ;;  %vm9950_vm6 = vmmov %vm9948_vm4  ;;  %4950 = vmatprep.subr.bf16.mxu1 %v4908_v54  ;;  %4909 = vmatprep.subr.bf16.mxu0 %v4908_v54 }
 0x256   :  { %4737 = vmatprep.mubr.msk.f32.mxu0 %vm9944_vm3, %v2017_v34  ;;  %vm9953_vm13 = vmmov %vm9948_vm4 }
 0x257   :  { %v1748_v32 = vpop.permute.xlu1 %1747  ;;  %vm9954_vm12 = vmmov %vm9948_vm4 }
 0x258   :  { %v2018_v25 = vsel %vm2002_vm15, %v2001_v37, %v1748_v32  ;;  %v2266_v39 = vpop.permute.xlu0 %2265  ;;  %vm9951_vm15 = vmmov %vm9948_vm4  ;;  %4953 = vmatpush3.bf16.msra.mxu1 %v4908_v54  ;;  %4911 = vmatpush3.bf16.msra.mxu0 %v4908_v54 }
 0x259   :  { %v4724_v18 = vpop.f32.mrb[4].mxu0  ;;  %4738 = vmatmul.mubr.msk.f32.gmra.mrb[14].mxu0 %vm9945_vm8, %v2018_v25  ;;  %vm9955_vm11 = vmmov %vm9948_vm4 }
 0x25a   :  { %v2162_v47 = vpop.f32.mrb[5].mxu0  ;;  %vm9956_vm1 = vmmov %vm9948_vm4 }
 0x25b   :  { %v2268_v27 = vpop.permute.xlu1 %2267  ;;  %vm9957_vm5 = vmmov %vm9956_vm1 }
 0x25c   :  { %v2264_v6 = vpop.permute.xlu0 %2263  ;;  %vm9958_vm3 = vmmov %vm9956_vm1 }
 0x25d   :  { %v2306_v63 = vsel %vm9946_vm9, %v4724_v18, %v2264_v6  ;;  %vm9959_vm8 = vmmov %vm9956_vm1 }
 0x25e   :  { %v2322_v33 = vmax.f32 %v2306_v63, 0.0  ;;  %vm9960_vm9 = vmmov %vm9956_vm1 }
 0x25f   :  { %v7547_v51 = vpop.permute.xlu1 %2269 }
 0x260   :  { %2338 = vst.msk [vmem:[#allocation3 + $0x28] sm:$0xff] %vm1799_vm0, %v2322_v33  ;;  %2396 = vst.msk [vmem:[#allocation2 + $0x61] sm:$0xff] %vm1799_vm0, %v2322_v33  ;;  %v7551_v58 = vpop.permute.xlu0 %2271 }
 0x263   :  { %v7553_v43 = vpop.permute.xlu1 %2273 }
 0x264   :  { %v7555_v26 = vpop.permute.xlu0 %2275 }
 0x267   :  { %v7557_v22 = vpop.permute.xlu1 %2277  ;;  %v7622_v49 = vld [vmem:[#allocation2 + $0x68] sm:$0x3]  ;;  %v2419_v59 = vld [vmem:[#allocation2 + $0x60] sm:$0xff] }
 0x268   :  { %v7559_v1 = vpop.permute.xlu0 %2279  ;;  %v7633_v3 = vrot.slane %v2419_v59, 7 }
 0x26b   :  { %v7561_v53 = vpop.permute.xlu1 %2281 }
 0x26c   :  { %v7563_v14 = vpop.permute.xlu0 %2283 }
 0x26f   :  { %v2254_v10 = vpop.permute.xlu1 %2253 }
 0x270   :  { %v2301_v46 = vsel %vm9948_vm4, %v9947_v35, %v2254_v10  ;;  %v2256_v38 = vpop.permute.xlu0 %2255  ;;  %vm9961_vm4 = vmmov %vm9956_vm1 }
 0x271   :  { %v2317_v62 = vmax.f32 %v2301_v46, 0.0  ;;  %v2302_v16 = vsel %vm9950_vm6, %v9949_v0, %v2256_v38  ;;  %vm9962_vm6 = vmmov %vm9956_vm1 }
 0x272   :  { %v2318_v44 = vmax.f32 %v2302_v16, 0.0 }
 0x273   :  { %2333 = vst.msk [vmem:[#allocation3] sm:$0xff] %vm1799_vm0, %v2317_v62  ;;  %2391 = vst.msk [vmem:[#allocation2 + $0x11] sm:$0xff] %vm1799_vm0, %v2317_v62  ;;  %v2258_v23 = vpop.permute.xlu1 %2257 }
 0x274   :  { %2334 = vst.msk [vmem:[#allocation3 + $0x8] sm:$0xff] %vm1799_vm0, %v2318_v44  ;;  %2392 = vst.msk [vmem:[#allocation2 + $0x21] sm:$0xff] %vm1799_vm0, %v2318_v44  ;;  %v2303_v7 = vsel %vm9951_vm15, %v7395_v61, %v2258_v23  ;;  %v2260_v8 = vpop.permute.xlu0 %2259  ;;  %vm9963_vm15 = vcmask 1046528  }
 0x275   :  { %v2319_v30 = vmax.f32 %v2303_v7, 0.0  ;;  %v2304_v52 = vsel %vm9953_vm13, %v9952_v42, %v2260_v8  ;;  %vm9965_vm13 = vmmov %vm9963_vm15 }
 0x276   :  { %v2320_v40 = vmax.f32 %v2304_v52, 0.0 }
 0x277   :  { %2335 = vst.msk [vmem:[#allocation3 + $0x10] sm:$0xff] %vm1799_vm0, %v2319_v30  ;;  %2393 = vst.msk [vmem:[#allocation2 + $0x31] sm:$0xff] %vm1799_vm0, %v2319_v30  ;;  %v2262_v12 = vpop.permute.xlu1 %2261 }
 0x278   :  { %2336 = vst.msk [vmem:[#allocation3 + $0x18] sm:$0xff] %vm1799_vm0, %v2320_v40  ;;  %2394 = vst.msk [vmem:[#allocation2 + $0x41] sm:$0xff] %vm1799_vm0, %v2320_v40  ;;  %v2305_v11 = vsel %vm9954_vm12, %v2162_v47, %v2262_v12  ;;  %v7661_v47 = vld [vmem:[#allocation2 + $0xa8] sm:$0x3] }
 0x279   :  { %v2321_v28 = vmax.f32 %v2305_v11, 0.0  ;;  %vm9967_vm12 = vmmov %vm9956_vm1 }
 0x27b   :  { %2337 = vst.msk [vmem:[#allocation3 + $0x20] sm:$0xff] %vm1799_vm0, %v2321_v28  ;;  %2395 = vst.msk [vmem:[#allocation2 + $0x51] sm:$0xff] %vm1799_vm0, %v2321_v28 }
 0x295   :  { %v4727_v61 = vpop.f32.mrb[6].mxu0 }
 0x296   :  { %v2308_v50 = vsel %vm9955_vm11, %v4727_v61, %v2268_v27  ;;  %v2172_v17 = vpop.f32.mrb[7].mxu0  ;;  %v7663_v27 = vld [vmem:[#allocation2 + $0xa0] sm:$0xff]  ;;  %vm9968_vm11 = vmmov %vm9956_vm1 }
 0x297   :  { %v2324_v15 = vmax.f32 %v2308_v50, 0.0  ;;  %v2307_v9 = vsel %vm9956_vm1, %v2172_v17, %v2266_v39  ;;  %v9606_v63 = vrot.slane %v7663_v27, 7  ;;  %vm3052_vm1 = vcmask 1040384  }
 0x298   :  { %v2323_v19 = vmax.f32 %v2307_v9, 0.0 }
 0x299   :  { %2340 = vst.msk [vmem:[#allocation3 + $0x38] sm:$0xff] %vm1799_vm0, %v2324_v15  ;;  %2398 = vst.msk [vmem:[#allocation2 + $0x81] sm:$0xff] %vm1799_vm0, %v2324_v15 }
 0x29a   :  { %2339 = vst.msk [vmem:[#allocation3 + $0x30] sm:$0xff] %vm1799_vm0, %v2323_v19  ;;  %2397 = vst.msk [vmem:[#allocation2 + $0x71] sm:$0xff] %vm1799_vm0, %v2323_v19 }
 0x2a0   :  { %v7602_v57 = vld [vmem:[#allocation2 + $0x80] sm:$0xff]  ;;  %v7725_v11 = vld [vmem:[#allocation2 + $0x88] sm:$0x3] }
 0x2a1   :  { %v7605_v2 = vrot.slane %v7602_v57, 7  ;;  %v7607_v56 = vld [vmem:[#allocation2 + $0x70] sm:$0xff]  ;;  %v7627_v4 = vld [vmem:[#allocation2 + $0x78] sm:$0x3] }
 0x2a2   :  { %v7610_v60 = vrot.slane %v7607_v56, 7 }
 0x2a3   :  { %2493 = vrot.lane.b32.xlu1 %v7605_v2, %s5008_s25 }
 0x2a4   :  { %2491 = vrot.lane.b32.xlu0 %v7610_v60, %s5008_s25 }
 0x2a7   :  { %2571 = vrot.lane.b32.xlu1 %v7622_v49, %s5011_s11 }
 0x2a8   :  { %2569 = vrot.lane.b32.xlu0 %v2419_v59, %s5011_s11 }
 0x2ab   :  { %2575 = vrot.lane.b32.xlu1 %v7627_v4, %s5011_s11 }
 0x2ac   :  { %2573 = vrot.lane.b32.xlu0 %v7607_v56, %s5011_s11 }
 0x2af   :  { %2657 = vrot.lane.b32.xlu1 %v7610_v60, %s5014_s26 }
 0x2b0   :  { %2655 = vrot.lane.b32.xlu0 %v7633_v3, %s5014_s26 }
 0x2d1   :  { %v4730_v55 = vpop.f32.mrb[8].mxu0 }
 0x2d2   :  { %v2310_v45 = vsel %vm9957_vm5, %v4730_v55, %v7551_v58  ;;  %v2182_v31 = vpop.f32.mrb[9].mxu0  ;;  %vm9971_vm5 = vmmov %vm9965_vm13 }
 0x2d3   :  { %v2326_v34 = vmax.f32 %v2310_v45, 0.0  ;;  %v2309_v13 = vsel %vm9958_vm3, %v2182_v31, %v7547_v51  ;;  %vm9972_vm3 = vmmov %vm9971_vm5 }
 0x2d4   :  { %v2325_v37 = vmax.f32 %v2309_v13, 0.0 }
 0x2d5   :  { %2342 = vst.msk [vmem:[#allocation3 + $0x48] sm:$0xff] %vm1799_vm0, %v2326_v34  ;;  %2400 = vst.msk [vmem:[#allocation2 + $0xc1] sm:$0xff] %vm1799_vm0, %v2326_v34 }
 0x2d6   :  { %2341 = vst.msk [vmem:[#allocation3 + $0x40] sm:$0xff] %vm1799_vm0, %v2325_v37  ;;  %2399 = vst.msk [vmem:[#allocation2 + $0xb1] sm:$0xff] %vm1799_vm0, %v2325_v37 }
 0x2dc   :  { %v7647_v32 = vld [vmem:[#allocation2 + $0xc0] sm:$0xff] }
 0x2dd   :  { %v7650_v25 = vrot.slane %v7647_v32, 7  ;;  %v7652_v39 = vld [vmem:[#allocation2 + $0xb0] sm:$0xff]  ;;  %v7669_v6 = vld [vmem:[#allocation2 + $0xb8] sm:$0x3] }
 0x2de   :  { %v7655_v18 = vrot.slane %v7652_v39, 7 }
 0x2df   :  { %2497 = vrot.lane.b32.xlu1 %v7650_v25, %s5008_s25 }
 0x2e0   :  { %2495 = vrot.lane.b32.xlu0 %v7655_v18, %s5008_s25 }
 0x2e3   :  { %2579 = vrot.lane.b32.xlu1 %v7661_v47, %s5011_s11 }
 0x2e4   :  { %2577 = vrot.lane.b32.xlu0 %v7663_v27, %s5011_s11 }
 0x2e7   :  { %2583 = vrot.lane.b32.xlu1 %v7669_v6, %s5011_s11 }
 0x2e8   :  { %2581 = vrot.lane.b32.xlu0 %v7652_v39, %s5011_s11 }
 0x2eb   :  { %2661 = vrot.lane.b32.xlu1 %v7655_v18, %s5014_s26 }
 0x2ec   :  { %2659 = vrot.lane.b32.xlu0 %v9606_v63, %s5014_s26 }
 0x300   :  { %v4733_v33 = vpop.f32.mrb[10].mxu0 }
 0x301   :  { %v2312_v51 = vsel %vm9959_vm8, %v4733_v33, %v7555_v26  ;;  %v2192_v58 = vpop.f32.mrb[11].mxu0  ;;  %vm9974_vm8 = vmmov %vm9972_vm3 }
 0x302   :  { %v2328_v10 = vmax.f32 %v2312_v51, 0.0  ;;  %v2311_v35 = vsel %vm9960_vm9, %v2192_v58, %v7553_v43  ;;  %v7703_v43 = vld [vmem:[#allocation2 + $0xc8] sm:$0x3]  ;;  %vm9975_vm9 = vmmov %vm9972_vm3 }
 0x303   :  { %v2327_v46 = vmax.f32 %v2311_v35, 0.0 }
 0x304   :  { %2344 = vst.msk [vmem:[#allocation3 + $0x58] sm:$0xff] %vm1799_vm0, %v2328_v10  ;;  %2402 = vst.msk [vmem:[#allocation2 + $0xe1] sm:$0xff] %vm1799_vm0, %v2328_v10 }
 0x305   :  { %2343 = vst.msk [vmem:[#allocation3 + $0x50] sm:$0xff] %vm1799_vm0, %v2327_v46  ;;  %2401 = vst.msk [vmem:[#allocation2 + $0xd1] sm:$0xff] %vm1799_vm0, %v2327_v46 }
 0x30b   :  { %v7689_v38 = vld [vmem:[#allocation2 + $0xe0] sm:$0xff] }
 0x30c   :  { %v7692_v62 = vrot.slane %v7689_v38, 7  ;;  %v7694_v26 = vld [vmem:[#allocation2 + $0xd0] sm:$0xff]  ;;  %v7709_v44 = vld [vmem:[#allocation2 + $0xd8] sm:$0x3] }
 0x30d   :  { %v7697_v0 = vrot.slane %v7694_v26, 7 }
 0x30e   :  { %2501 = vrot.lane.b32.xlu1 %v7692_v62, %s5008_s25 }
 0x30f   :  { %2499 = vrot.lane.b32.xlu0 %v7697_v0, %s5008_s25 }
 0x312   :  { %2587 = vrot.lane.b32.xlu1 %v7703_v43, %s5011_s11 }
 0x313   :  { %2585 = vrot.lane.b32.xlu0 %v7647_v32, %s5011_s11 }
 0x315   :  { %v2494_v16 = vpop.permute.xlu1 %2493 }
 0x316   :  { %v2492_v23 = vpop.permute.xlu0 %2491  ;;  %2591 = vrot.lane.b32.xlu1 %v7709_v44, %s5011_s11  ;;  %v2705_v50 = vsel %vm1799_vm0, %v7602_v57, %v2494_v16  ;;  %v2706_v17 = vsel %vm1799_vm0, %v7725_v11, %v2494_v16  ;;  %v7785_v16 = vld [vmem:[#allocation2 + $0xe8] sm:$0x3] }
 0x317   :  { %2589 = vrot.lane.b32.xlu0 %v7694_v26, %s5011_s11  ;;  %v2703_v9 = vsel %vm1799_vm0, %v7607_v56, %v2492_v23  ;;  %v2704_v20 = vsel %vm1799_vm0, %v7627_v4, %v2492_v23 }
 0x319   :  { %v7715_v7 = vpop.permute.xlu1 %2571 }
 0x31a   :  { %v2570_v8 = vpop.permute.xlu0 %2569  ;;  %2665 = vrot.lane.b32.xlu1 %v7697_v0, %s5014_s26  ;;  %v2736_v48 = vsel %vm1849_vm2, %v2704_v20, %v7715_v7  ;;  %v7854_v20 = vld [vmem:[#allocation2 + $0x28] sm:$0x3] }
 0x31b   :  { %2663 = vrot.lane.b32.xlu0 %v7650_v25, %s5014_s26  ;;  %v2735_v5 = vsel %vm1849_vm2, %v2703_v9, %v2570_v8  ;;  %v4475_v9 = vld [vmem:[%s9576_s4 + $0x38] sm:$0xff] }
 0x31d   :  { %v7721_v30 = vpop.permute.xlu1 %2575  ;;  %v4736_v42 = vpop.f32.mrb[12].mxu0 }
 0x31e   :  { %v2314_v52 = vsel %vm9961_vm4, %v4736_v42, %v7559_v1  ;;  %v2574_v40 = vpop.permute.xlu0 %2573  ;;  %v2202_v12 = vpop.f32.mrb[13].mxu0  ;;  %v2738_v1 = vsel %vm1849_vm2, %v2706_v17, %v7721_v30  ;;  %vm9977_vm4 = vmmov %vm9972_vm3 }
 0x31f   :  { %v2330_v28 = vmax.f32 %v2314_v52, 0.0  ;;  %v2313_v61 = vsel %vm9962_vm6, %v2202_v12, %v7557_v22  ;;  %v2737_v19 = vsel %vm1849_vm2, %v2705_v50, %v2574_v40  ;;  %vm9978_vm6 = vmmov %vm9972_vm3 }
 0x320   :  { %v2329_v15 = vmax.f32 %v2313_v61, 0.0  ;;  %v7831_v61 = vld [vmem:[#allocation2 + $0x18] sm:$0x3] }
 0x321   :  { %2346 = vst.msk [vmem:[#allocation3 + $0x68] sm:$0xff] %vm1799_vm0, %v2330_v28  ;;  %2404 = vst.msk [vmem:[#allocation2 + $0x101] sm:$0xff] %vm1799_vm0, %v2330_v28  ;;  %v2658_v22 = vpop.permute.xlu1 %2657  ;;  %v7829_v28 = vld [vmem:[#allocation2 + $0x10] sm:$0xff]  ;;  %v3053_v17 = vrot.slane %v7831_v61, 7 }
 0x322   :  { %2345 = vst.msk [vmem:[#allocation3 + $0x60] sm:$0xff] %vm1799_vm0, %v2329_v15  ;;  %2403 = vst.msk [vmem:[#allocation2 + $0xf1] sm:$0xff] %vm1799_vm0, %v2329_v15  ;;  %v7746_v24 = vsel %vm1900_vm7, %v2737_v19, %v2658_v22  ;;  %v2770_v41 = vsel %vm1900_vm7, %v2738_v1, %v2658_v22  ;;  %v2656_v36 = vpop.permute.xlu0 %2655  ;;  %v7836_v50 = vrot.slane %v7829_v28, 7  ;;  %v4474_v15 = vld [vmem:[%s9576_s4 + $0x30] sm:$0xff]  ;;  %v7852_v22 = vld [vmem:[#allocation2 + $0x20] sm:$0xff] }
 0x323   :  { %v7752_v56 = vsel %vm1900_vm7, %v2735_v5, %v2656_v36  ;;  %v2840_v29 = vrot.slane %v7746_v24, 1  ;;  %v2841_v21 = vrot.slane %v2770_v41, 1  ;;  %v2768_v54 = vsel %vm1900_vm7, %v2736_v48, %v2656_v36  ;;  %v2407_v5 = vld [vmem:[#allocation2] sm:$0xff]  ;;  %v4477_v36 = vld [vmem:[%s9576_s4 + $0x48] sm:$0xff] }
 0x324   :  { %v2837_v59 = vrot.slane %v7752_v56, 1  ;;  %v2838_v55 = vrot.slane %v2768_v54, 1  ;;  %v3054_v1 = vsel %vm3052_vm1, %v7836_v50, %v3053_v17  ;;  %v4912_v19 = vpack.c.bf16 %v4475_v9, %v4474_v15  ;;  %v4476_v41 = vld [vmem:[%s9576_s4 + $0x40] sm:$0xff] }
 0x325   :  { %v7763_v31 = vsel %vm9965_vm13, %v2840_v29, %v2841_v21  ;;  %v7865_v48 = vrot.slane %v7852_v22, 7  ;;  %v3055_v29 = vrot.slane %v7854_v20, 7  ;;  %v4916_v21 = vpack.c.bf16 %v4477_v36, %v4476_v41  ;;  %v7890_v41 = vld [vmem:[#allocation2 + $0x30] sm:$0xff]  ;;  %v7892_v36 = vld [vmem:[#allocation2 + $0x38] sm:$0x3]  ;;  %vm9981_vm13 = vmmov %vm9972_vm3 }
 0x326   :  { %v7758_v45 = vsel %vm9963_vm15, %v2837_v59, %v2838_v55  ;;  %9966 = vst [vmem:[#allocation44_spill] sm:$0xff] %v7763_v31  ;;  %4913 = vmatprep.subr.bf16.mxu1 %v4912_v19  ;;  %v2408_v59 = vld [vmem:[#allocation2 + $0x8] sm:$0x3]  ;;  %v4478_v55 = vld [vmem:[%s9576_s4 + $0x50] sm:$0xff]  ;;  %vm9979_vm15 = vmmov %vm9972_vm3 }
 0x327   :  { %9964 = vst [vmem:[#allocation38_spill] sm:$0xff] %v7758_v45  ;;  %4761 = vmatprep.mubr.msk.f32.mxu1 %vm1951_vm14, %v7758_v45 }
 0x328   :  { %v7765_v34 = vld [vmem:[#allocation2 + $0x100] sm:$0xff]  ;;  %4762 = vmatmul.mubr.msk.f32.vlgmr.msra.gmra.mrb[0].mxu1 %vm1951_vm14, %v7763_v31  ;;  %v7819_v40 = vld [vmem:[#allocation2 + $0x108] sm:$0x3] }
 0x329   :  { %v7770_v13 = vrot.slane %v7765_v34, 7  ;;  %v7772_v37 = vld [vmem:[#allocation2 + $0xf0] sm:$0xff]  ;;  %4915 = vmatpush3.bf16.msra.mxu1 %v4912_v19 }
 0x32a   :  { %v7775_v33 = vrot.slane %v7772_v37, 7  ;;  %4917 = vmatprep.subr.bf16.mxu1 %v4916_v21 }
 0x32b   :  { %2505 = vrot.lane.b32.xlu1 %v7770_v13, %s5008_s25 }
 0x32c   :  { %2503 = vrot.lane.b32.xlu0 %v7775_v33, %s5008_s25  ;;  %v4739_v51 = vpop.f32.mrb[14].mxu0 }
 0x32d   :  { %v2316_v58 = vsel %vm9967_vm12, %v4739_v51, %v7563_v14  ;;  %v2212_v10 = vpop.f32.mrb[15].mxu0  ;;  %v7795_v14 = vld [vmem:[#allocation2 + $0xf8] sm:$0x3]  ;;  %4919 = vmatpush3.bf16.msra.mxu1 %v4916_v21  ;;  %vm3249_vm12 = vcmask 1045504  }
 0x32e   :  { %v2332_v35 = vmax.f32 %v2316_v58, 0.0  ;;  %v2315_v46 = vsel %vm9968_vm11, %v2212_v10, %v7561_v53  ;;  %v4479_v51 = vld [vmem:[%s9576_s4 + $0x58] sm:$0xff]  ;;  %v3056_v10 = vsel %vm3052_vm1, %v7865_v48, %v3055_v29  ;;  %vm9983_vm11 = vmmov %vm9972_vm3 }
 0x32f   :  { %v2331_v23 = vmax.f32 %v2315_v46, 0.0  ;;  %2595 = vrot.lane.b32.xlu1 %v7785_v16, %s5011_s11  ;;  %v2641_v46 = vrot.slane %v2407_v5, 7 }
 0x330   :  { %2348 = vst.msk [vmem:[#allocation3 + $0x78] sm:$0xff] %vm1799_vm0, %v2332_v35  ;;  %2406 = vst.msk [vmem:[#allocation2 + $0x121] sm:$0xff] %vm1799_vm0, %v2332_v35  ;;  %2593 = vrot.lane.b32.xlu0 %v7689_v38, %s5011_s11  ;;  %v4920_v35 = vpack.c.bf16 %v4479_v51, %v4478_v55 }
 0x331   :  { %2347 = vst.msk [vmem:[#allocation3 + $0x70] sm:$0xff] %vm1799_vm0, %v2331_v23  ;;  %2405 = vst.msk [vmem:[#allocation2 + $0x111] sm:$0xff] %vm1799_vm0, %v2331_v23  ;;  %v3133_v23 = vrot.slane %v2408_v59, 7 }
 0x332   :  { %4921 = vmatprep.subr.bf16.mxu1 %v4920_v35 }
 0x333   :  { %2599 = vrot.lane.b32.xlu1 %v7795_v14, %s5011_s11  ;;  %4923 = vmatpush3.bf16.msra.mxu1 %v4920_v35  ;;  %v3134_v9 = vsel %vm3052_vm1, %v2641_v46, %v3133_v23 }
 0x334   :  { %2597 = vrot.lane.b32.xlu0 %v7772_v37, %s5011_s11 }
 0x337   :  { %2669 = vrot.lane.b32.xlu1 %v7775_v33, %s5014_s26  ;;  %v7803_v53 = vld [vmem:[#allocation2 + $0x120] sm:$0xff] }
 0x338   :  { %2667 = vrot.lane.b32.xlu0 %v7692_v62, %s5014_s26  ;;  %v7808_v8 = vrot.slane %v7803_v53, 7  ;;  %v7810_v42 = vld [vmem:[#allocation2 + $0x110] sm:$0xff]  ;;  %v7825_v12 = vld [vmem:[#allocation2 + $0x118] sm:$0x3] }
 0x339   :  { %v7813_v52 = vrot.slane %v7810_v42, 7 }
 0x33b   :  { %2509 = vrot.lane.b32.xlu1 %v7808_v8, %s5008_s25 }
 0x33c   :  { %2507 = vrot.lane.b32.xlu0 %v7813_v52, %s5008_s25 }
 0x33f   :  { %2603 = vrot.lane.b32.xlu1 %v7819_v40, %s5011_s11 }
 0x340   :  { %2601 = vrot.lane.b32.xlu0 %v7765_v34, %s5011_s11 }
 0x343   :  { %2607 = vrot.lane.b32.xlu1 %v7825_v12, %s5011_s11 }
 0x344   :  { %2605 = vrot.lane.b32.xlu0 %v7810_v42, %s5011_s11 }
 0x347   :  { %2673 = vrot.lane.b32.xlu1 %v7813_v52, %s5014_s26 }
 0x348   :  { %2671 = vrot.lane.b32.xlu0 %v7770_v13, %s5014_s26 }
 0x34b   :  { %3085 = vrot.lane.b32.xlu1 %v3054_v1, %s5008_s25 }
 0x34c   :  { %2479 = vrot.lane.b32.xlu0 %v7836_v50, %s5008_s25 }
 0x34f   :  { %2545 = vrot.lane.b32.xlu1 %v2407_v5, %s5011_s11 }
 0x350   :  { %2481 = vrot.lane.b32.xlu0 %v7865_v48, %s5008_s25 }
 0x351   :  { %v2498_v54 = vpop.permute.xlu1 %2497 }
 0x352   :  { %v2496_v58 = vpop.permute.xlu0 %2495  ;;  %v2709_v29 = vsel %vm1799_vm0, %v7647_v32, %v2498_v54  ;;  %v2710_v21 = vsel %vm1799_vm0, %v7703_v43, %v2498_v54 }
 0x353   :  { %3087 = vrot.lane.b32.xlu1 %v3056_v10, %s5008_s25  ;;  %v2707_v55 = vsel %vm1799_vm0, %v7652_v39, %v2496_v58  ;;  %v2708_v32 = vsel %vm1799_vm0, %v7669_v6, %v2496_v58 }
 0x354   :  { %2547 = vrot.lane.b32.xlu0 %v2408_v59, %s5011_s11  ;;  %v2465_v59 = vrot.slane %v7890_v41, 7 }
 0x355   :  { %v7881_v17 = vpop.permute.xlu1 %2579 }
 0x356   :  { %v2578_v15 = vpop.permute.xlu0 %2577  ;;  %v2740_v39 = vsel %vm1849_vm2, %v2708_v32, %v7881_v17  ;;  %v7953_v32 = vld [vmem:[#allocation2 + $0x50] sm:$0xff] }
 0x357   :  { %2551 = vrot.lane.b32.xlu1 %v7831_v61, %s5011_s11  ;;  %v2739_v54 = vsel %vm1849_vm2, %v2707_v55, %v2578_v15 }
 0x358   :  { %2549 = vrot.lane.b32.xlu0 %v7829_v28, %s5011_s11 }
 0x359   :  { %v7888_v19 = vpop.permute.xlu1 %2583 }
 0x35a   :  { %v2582_v5 = vpop.permute.xlu0 %2581  ;;  %v2742_v51 = vsel %vm1849_vm2, %v2710_v21, %v7888_v19 }
 0x35b   :  { %3137 = vrot.lane.b32.xlu1 %v3134_v9, %s5014_s26  ;;  %v2741_v35 = vsel %vm1849_vm2, %v2709_v29, %v2582_v5  ;;  %v3057_v9 = vrot.slane %v7892_v36, 7 }
 0x35c   :  { %2643 = vrot.lane.b32.xlu0 %v2641_v46, %s5014_s26 }
 0x35d   :  { %v2662_v23 = vpop.permute.xlu1 %2661 }
 0x35e   :  { %v7911_v46 = vsel %vm1900_vm7, %v2741_v35, %v2662_v23  ;;  %v2774_v63 = vsel %vm1900_vm7, %v2742_v51, %v2662_v23  ;;  %v2660_v31 = vpop.permute.xlu0 %2659  ;;  %v3058_v51 = vsel %vm3052_vm1, %v2465_v59, %v3057_v9  ;;  %v7928_v23 = vld [vmem:[#allocation2 + $0x40] sm:$0xff] }
 0x35f   :  { %9969 = vst [vmem:[#allocation52_spill] sm:$0xff] %v7911_v46  ;;  %v7917_v21 = vsel %vm1900_vm7, %v2739_v54, %v2660_v31  ;;  %3139 = vrot.lane.b32.xlu1 %v3054_v1, %s5014_s26  ;;  %v2846_v5 = vrot.slane %v7911_v46, 1  ;;  %v2847_v29 = vrot.slane %v2774_v63, 1  ;;  %v2772_v58 = vsel %vm1900_vm7, %v2740_v39, %v2660_v31  ;;  %v7930_v1 = vld [vmem:[#allocation2 + $0x48] sm:$0x3] }
 0x360   :  { %9970 = vst [vmem:[#allocation26_spill] sm:$0xff] %v7917_v21  ;;  %v2843_v15 = vrot.slane %v7917_v21, 1  ;;  %2645 = vrot.lane.b32.xlu0 %v7836_v50, %s5014_s26  ;;  %v2844_v55 = vrot.slane %v2772_v58, 1  ;;  %v2466_v31 = vrot.slane %v7928_v23, 7  ;;  %v3059_v50 = vrot.slane %v7930_v1, 7 }
 0x361   :  { %v7934_v63 = vsel %vm9972_vm3, %v2846_v5, %v2847_v29  ;;  %v7955_v54 = vld [vmem:[#allocation2 + $0x58] sm:$0x3]  ;;  %v2467_v39 = vrot.slane %v7953_v32, 7  ;;  %v3063_v58 = vrot.slane %v7622_v49, 7 }
 0x362   :  { %v2845_v35 = vsel %vm9971_vm5, %v2843_v15, %v2844_v55  ;;  %9973 = vst [vmem:[#allocation10_spill] sm:$0xff] %v7934_v63  ;;  %v3060_v9 = vsel %vm3052_vm1, %v2466_v31, %v3059_v50  ;;  %v3061_v5 = vrot.slane %v7955_v54, 7 }
 0x363   :  { %3089 = vrot.lane.b32.xlu1 %v3058_v51, %s5008_s25  ;;  %4764 = vmatprep.mubr.msk.f32.mxu1 %vm1951_vm14, %v2845_v35 }
 0x364   :  { %2483 = vrot.lane.b32.xlu0 %v2465_v59, %s5008_s25  ;;  %4765 = vmatmul.mubr.msk.f32.gmra.mrb[2].mxu1 %vm1951_vm14, %v7934_v63  ;;  %v3062_v29 = vsel %vm3052_vm1, %v2467_v39, %v3061_v5 }
 0x367   :  { %2553 = vrot.lane.b32.xlu1 %v7852_v22, %s5011_s11 }
 0x368   :  { %2485 = vrot.lane.b32.xlu0 %v2466_v31, %s5008_s25 }
 0x36b   :  { %3091 = vrot.lane.b32.xlu1 %v3060_v9, %s5008_s25 }
 0x36c   :  { %2555 = vrot.lane.b32.xlu0 %v7854_v20, %s5011_s11 }
 0x36f   :  { %2559 = vrot.lane.b32.xlu1 %v7892_v36, %s5011_s11 }
 0x370   :  { %2557 = vrot.lane.b32.xlu0 %v7890_v41, %s5011_s11 }
 0x373   :  { %3141 = vrot.lane.b32.xlu1 %v3056_v10, %s5014_s26  ;;  %v4496_v10 = vld [vmem:[%s9576_s4 + $0x60] sm:$0xff] }
 0x374   :  { %2647 = vrot.lane.b32.xlu0 %v7865_v48, %s5014_s26  ;;  %v4497_v48 = vld [vmem:[%s9576_s4 + $0x68] sm:$0xff] }
 0x375   :  { %v7973_v15 = vpack.c.bf16 %v4497_v48, %v4496_v10 }
 0x377   :  { %3143 = vrot.lane.b32.xlu1 %v3058_v51, %s5014_s26  ;;  %4925 = vmatprep.subr.bf16.mxu0 %v7973_v15  ;;  %v3064_v51 = vsel %vm3052_vm1, %v7633_v3, %v3063_v58 }
 0x378   :  { %2649 = vrot.lane.b32.xlu0 %v2465_v59, %s5014_s26 }
 0x37b   :  { %3093 = vrot.lane.b32.xlu1 %v3062_v29, %s5008_s25 }
 0x37c   :  { %2487 = vrot.lane.b32.xlu0 %v2467_v39, %s5008_s25 }
 0x37f   :  { %2561 = vrot.lane.b32.xlu1 %v7928_v23, %s5011_s11 }
 0x380   :  { %v2502_v59 = vpop.permute.xlu1 %2501  ;;  %2489 = vrot.lane.b32.xlu0 %v7633_v3, %s5008_s25 }
 0x381   :  { %v2500_v55 = vpop.permute.xlu0 %2499  ;;  %v2713_v3 = vsel %vm1799_vm0, %v7689_v38, %v2502_v59  ;;  %v2714_v10 = vsel %vm1799_vm0, %v7785_v16, %v2502_v59 }
 0x382   :  { %v2711_v48 = vsel %vm1799_vm0, %v7694_v26, %v2500_v55  ;;  %v2712_v21 = vsel %vm1799_vm0, %v7709_v44, %v2500_v55  ;;  %v3065_v26 = vrot.slane %v7627_v4, 7 }
 0x383   :  { %3095 = vrot.lane.b32.xlu1 %v3064_v51, %s5008_s25 }
 0x384   :  { %v7983_v35 = vpop.permute.xlu1 %2587  ;;  %2563 = vrot.lane.b32.xlu0 %v7930_v1, %s5011_s11 }
 0x385   :  { %v2586_v49 = vpop.permute.xlu0 %2585 }
 0x386   :  { %v2743_v38 = vsel %vm1849_vm2, %v2711_v48, %v2586_v49 }
 0x387   :  { %2567 = vrot.lane.b32.xlu1 %v7955_v54, %s5011_s11 }
 0x388   :  { %v7989_v50 = vpop.permute.xlu1 %2591  ;;  %2565 = vrot.lane.b32.xlu0 %v7953_v32, %s5011_s11 }
 0x389   :  { %v2590_v5 = vpop.permute.xlu0 %2589  ;;  %v2746_v58 = vsel %vm1849_vm2, %v2714_v10, %v7989_v50  ;;  %v2744_v10 = vsel %vm1849_vm2, %v2712_v21, %v7983_v35 }
 0x38a   :  { %v2745_v63 = vsel %vm1849_vm2, %v2713_v3, %v2590_v5 }
 0x38b   :  { %3145 = vrot.lane.b32.xlu1 %v3060_v9, %s5014_s26 }
 0x38c   :  { %v2666_v46 = vpop.permute.xlu1 %2665  ;;  %2651 = vrot.lane.b32.xlu0 %v2466_v31, %s5014_s26  ;;  %v3067_v31 = vrot.slane %v7725_v11, 7 }
 0x38d   :  { %v8008_v59 = vsel %vm1900_vm7, %v2745_v63, %v2666_v46  ;;  %v2778_v9 = vsel %vm1900_vm7, %v2746_v58, %v2666_v46  ;;  %v2664_v45 = vpop.permute.xlu0 %2663 }
 0x38e   :  { %v8015_v5 = vsel %vm1900_vm7, %v2743_v38, %v2664_v45  ;;  %v2852_v55 = vrot.slane %v8008_v59, 1  ;;  %v2853_v3 = vrot.slane %v2778_v9, 1  ;;  %v2776_v49 = vsel %vm1900_vm7, %v2744_v10, %v2664_v45 }
 0x38f   :  { %v2849_v63 = vrot.slane %v8015_v5, 1  ;;  %3147 = vrot.lane.b32.xlu1 %v3062_v29, %s5014_s26  ;;  %v2850_v46 = vrot.slane %v2776_v49, 1  ;;  %v8028_v21 = vsel %vm3052_vm1, %v7605_v2, %v3067_v31  ;;  %v3066_v45 = vsel %vm3052_vm1, %v7610_v60, %v3065_v26  ;;  %v4519_v29 = vld [vmem:[%s9576_s4 + $0x98] sm:$0xff] }
 0x390   :  { %2653 = vrot.lane.b32.xlu0 %v2467_v39, %s5014_s26  ;;  %v8033_v48 = vsel %vm9975_vm9, %v2852_v55, %v2853_v3  ;;  %v4518_v39 = vld [vmem:[%s9576_s4 + $0x90] sm:$0xff]  ;;  %v3071_v38 = vrot.slane %v7703_v43, 7  ;;  %v3069_v9 = vrot.slane %v7669_v6, 7  ;;  %v3135_v60 = vrot.slane %v7661_v47, 7 }
 0x391   :  { %v8024_v4 = vsel %vm9974_vm8, %v2849_v63, %v2850_v46  ;;  %v8048_v58 = vpack.c.bf16 %v4519_v29, %v4518_v39  ;;  %v9976_v6 = vrot.slane %v7663_v27, 7  ;;  %v3075_v55 = vrot.slane %v7785_v16, 7 }
 0x392   :  { %4767 = vmatprep.mubr.msk.f32.mxu1 %vm1951_vm14, %v8024_v4  ;;  %v3072_v26 = vsel %vm3052_vm1, %v7650_v25, %v3071_v38  ;;  %v3070_v10 = vsel %vm3052_vm1, %v7655_v18, %v3069_v9  ;;  %v3073_v47 = vrot.slane %v7709_v44, 7  ;;  %v3079_v49 = vrot.slane %v7819_v40, 7 }
 0x393   :  { %3099 = vrot.lane.b32.xlu1 %v8028_v21, %s5008_s25  ;;  %4768 = vmatmul.mubr.msk.f32.gmra.mrb[4].mxu1 %vm1951_vm14, %v8033_v48  ;;  %v3136_v31 = vsel %vm3052_vm1, %v9976_v6, %v3135_v60  ;;  %v3076_v18 = vsel %vm3052_vm1, %v7692_v62, %v3075_v55  ;;  %v3077_v46 = vrot.slane %v7795_v14, 7 }
 0x394   :  { %3097 = vrot.lane.b32.xlu0 %v3066_v45, %s5008_s25  ;;  %4937 = vmatprep.subr.bf16.mxu1 %v8048_v58  ;;  %v3074_v27 = vsel %vm3052_vm1, %v7697_v0, %v3073_v47  ;;  %v3080_v9 = vsel %vm3052_vm1, %v7770_v13, %v3079_v49 }
 0x395   :  { %v3078_v13 = vsel %vm3052_vm1, %v7775_v33, %v3077_v46 }
 0x397   :  { %3151 = vrot.lane.b32.xlu1 %v3066_v45, %s5014_s26 }
 0x398   :  { %3149 = vrot.lane.b32.xlu0 %v3064_v51, %s5014_s26 }
 0x39b   :  { %3103 = vrot.lane.b32.xlu1 %v3072_v26, %s5008_s25 }
 0x39c   :  { %3101 = vrot.lane.b32.xlu0 %v3070_v10, %s5008_s25 }
 0x39d   :  { %v2506_v43 = vpop.permute.xlu1 %2505 }
 0x39e   :  { %v2504_v51 = vpop.permute.xlu0 %2503  ;;  %v2717_v45 = vsel %vm1799_vm0, %v7765_v34, %v2506_v43  ;;  %v2718_v62 = vsel %vm1799_vm0, %v7819_v40, %v2506_v43 }
 0x39f   :  { %3155 = vrot.lane.b32.xlu1 %v3070_v10, %s5014_s26  ;;  %v2715_v0 = vsel %vm1799_vm0, %v7772_v37, %v2504_v51  ;;  %v2716_v34 = vsel %vm1799_vm0, %v7795_v14, %v2504_v51  ;;  %v8109_v14 = vld [vmem:[#allocation2 + $0x128] sm:$0x3] }
 0x3a0   :  { %3153 = vrot.lane.b32.xlu0 %v3136_v31, %s5014_s26 }
 0x3a1   :  { %v8069_v25 = vpop.permute.xlu1 %2595 }
 0x3a2   :  { %v2594_v3 = vpop.permute.xlu0 %2593  ;;  %v2748_v43 = vsel %vm1849_vm2, %v2716_v34, %v8069_v25 }
 0x3a3   :  { %3107 = vrot.lane.b32.xlu1 %v3076_v18, %s5008_s25  ;;  %v2747_v60 = vsel %vm1849_vm2, %v2715_v0, %v2594_v3 }
 0x3a4   :  { %3105 = vrot.lane.b32.xlu0 %v3074_v27, %s5008_s25 }
 0x3a5   :  { %v8078_v44 = vpop.permute.xlu1 %2599 }
 0x3a6   :  { %v2598_v63 = vpop.permute.xlu0 %2597  ;;  %v2750_v39 = vsel %vm1849_vm2, %v2718_v62, %v8078_v44 }
 0x3a7   :  { %3159 = vrot.lane.b32.xlu1 %v3074_v27, %s5014_s26  ;;  %v2749_v29 = vsel %vm1849_vm2, %v2717_v45, %v2598_v63  ;;  %v3083_v63 = vrot.slane %v8109_v14, 7  ;;  %v3081_v45 = vrot.slane %v7825_v12, 7 }
 0x3a8   :  { %3157 = vrot.lane.b32.xlu0 %v3072_v26, %s5014_s26 }
 0x3a9   :  { %v2670_v38 = vpop.permute.xlu1 %2669 }
 0x3aa   :  { %v8098_v10 = vsel %vm1900_vm7, %v2749_v29, %v2670_v38  ;;  %v2782_v26 = vsel %vm1900_vm7, %v2750_v39, %v2670_v38  ;;  %v2668_v37 = vpop.permute.xlu0 %2667  ;;  %v8133_v39 = vsel %vm3052_vm1, %v7808_v8, %v3083_v63  ;;  %v3082_v29 = vsel %vm3052_vm1, %v7813_v52, %v3081_v45 }
 0x3ab   :  { %v8104_v6 = vsel %vm1900_vm7, %v2747_v60, %v2668_v37  ;;  %3111 = vrot.lane.b32.xlu1 %v3080_v9, %s5008_s25  ;;  %v2858_v31 = vrot.slane %v8098_v10, 1  ;;  %v2859_v55 = vrot.slane %v2782_v26, 1  ;;  %v2780_v51 = vsel %vm1900_vm7, %v2748_v43, %v2668_v37 }
 0x3ac   :  { %v2855_v47 = vrot.slane %v8104_v6, 1  ;;  %3109 = vrot.lane.b32.xlu0 %v3078_v13, %s5008_s25  ;;  %v2856_v3 = vrot.slane %v2780_v51, 1 }
 0x3ad   :  { %v2510_v27 = vpop.permute.xlu1 %2509  ;;  %v8124_v46 = vsel %vm9978_vm6, %v2858_v31, %v2859_v55 }
 0x3ae   :  { %v2508_v49 = vpop.permute.xlu0 %2507  ;;  %v8118_v33 = vsel %vm9977_vm4, %v2855_v47, %v2856_v3  ;;  %v2721_v60 = vsel %vm1799_vm0, %v7803_v53, %v2510_v27  ;;  %v2722_v26 = vsel %vm1799_vm0, %v8109_v14, %v2510_v27  ;;  %v8163_v27 = vld [vmem:[#allocation2 + $0x98] sm:$0x3] }
 0x3af   :  { %3163 = vrot.lane.b32.xlu1 %v3078_v13, %s5014_s26  ;;  %4770 = vmatprep.mubr.msk.f32.mxu1 %vm1951_vm14, %v8118_v33  ;;  %v2719_v52 = vsel %vm1799_vm0, %v7810_v42, %v2508_v49  ;;  %v2720_v55 = vsel %vm1799_vm0, %v7825_v12, %v2508_v49 }
 0x3b0   :  { %3161 = vrot.lane.b32.xlu0 %v3076_v18, %s5014_s26  ;;  %4771 = vmatmul.mubr.msk.f32.gmra.mrb[6].mxu1 %vm1951_vm14, %v8124_v46  ;;  %v8142_v18 = vld [vmem:[#allocation2 + $0x90] sm:$0xff] }
 0x3b1   :  { %v8129_v62 = vpop.permute.xlu1 %2603  ;;  %v3484_v37 = vrot.slane %v8142_v18, 7 }
 0x3b2   :  { %v2602_v0 = vpop.permute.xlu0 %2601  ;;  %v2752_v42 = vsel %vm1849_vm2, %v2720_v55, %v8129_v62 }
 0x3b3   :  { %3115 = vrot.lane.b32.xlu1 %v8133_v39, %s5008_s25  ;;  %v2751_v51 = vsel %vm1849_vm2, %v2719_v52, %v2602_v0 }
 0x3b4   :  { %3113 = vrot.lane.b32.xlu0 %v3082_v29, %s5008_s25 }
 0x3b5   :  { %v8140_v38 = vpop.permute.xlu1 %2607 }
 0x3b6   :  { %v2606_v34 = vpop.permute.xlu0 %2605  ;;  %v2754_v43 = vsel %vm1849_vm2, %v2722_v26, %v8140_v38 }
 0x3b7   :  { %3167 = vrot.lane.b32.xlu1 %v3082_v29, %s5014_s26  ;;  %v2753_v13 = vsel %vm1849_vm2, %v2721_v60, %v2606_v34  ;;  %v3690_v60 = vrot.slane %v8163_v27, 7 }
 0x3b8   :  { %3165 = vrot.lane.b32.xlu0 %v3080_v9, %s5014_s26 }
 0x3b9   :  { %v2674_v31 = vpop.permute.xlu1 %2673 }
 0x3ba   :  { %v8160_v47 = vsel %vm1900_vm7, %v2753_v13, %v2674_v31  ;;  %v2786_v9 = vsel %vm1900_vm7, %v2754_v43, %v2674_v31  ;;  %v2672_v3 = vpop.permute.xlu0 %2671  ;;  %v3691_v13 = vsel %vm3052_vm1, %v3484_v37, %v3690_v60  ;;  %v8192_v31 = vld [vmem:[#allocation2 + $0x130] sm:$0xff] }
 0x3bb   :  { %v8168_v63 = vsel %vm1900_vm7, %v2751_v51, %v2672_v3  ;;  %3492 = vrot.lane.b32.xlu1 %v7602_v57, %s5011_s11  ;;  %v2864_v12 = vrot.slane %v8160_v47, 1  ;;  %v2865_v49 = vrot.slane %v2786_v9, 1  ;;  %v2784_v45 = vsel %vm1900_vm7, %v2752_v42, %v2672_v3  ;;  %v8198_v3 = vld [vmem:[#allocation2 + $0x138] sm:$0x3] }
 0x3bc   :  { %v2861_v0 = vrot.slane %v8168_v63, 1  ;;  %3486 = vrot.lane.b32.xlu0 %v3484_v37, %s5008_s25  ;;  %v2862_v29 = vrot.slane %v2784_v45, 1  ;;  %v3692_v42 = vrot.slane %v8198_v3, 7 }
 0x3bd   :  { %v3086_v34 = vpop.permute.xlu1 %3085  ;;  %v8185_v57 = vsel %vm9981_vm13, %v2864_v12, %v2865_v49 }
 0x3be   :  { %v2480_v26 = vpop.permute.xlu0 %2479  ;;  %v8178_v52 = vsel %vm9979_vm15, %v2861_v0, %v2862_v29  ;;  %9982 = vst [vmem:[#allocation37_spill] sm:$0xff] %v8185_v57 }
 0x3bf   :  { %9980 = vst [vmem:[#allocation32_spill] sm:$0xff] %v8178_v52  ;;  %3504 = vrot.lane.b32.xlu1 %v7605_v2, %s5014_s26  ;;  %4773 = vmatprep.mubr.msk.f32.mxu1 %vm1951_vm14, %v8178_v52  ;;  %v3485_v2 = vrot.slane %v8192_v31, 7  ;;  %v2691_v49 = vsel %vm1799_vm0, %v7829_v28, %v2480_v26 }
 0x3c0   :  { %3494 = vrot.lane.b32.xlu0 %v7725_v11, %s5011_s11  ;;  %4774 = vmatmul.mubr.msk.f32.gmra.mrb[8].mxu1 %vm1951_vm14, %v8185_v57 }
 0x3c1   :  { %v2546_v43 = vpop.permute.xlu1 %2545  ;;  %v3693_v29 = vsel %vm3052_vm1, %v3485_v2, %v3692_v42  ;;  %vm9984_vm1 = vmmov %vm9972_vm3 }
 0x3c2   :  { %v2482_v55 = vpop.permute.xlu0 %2481  ;;  %v2723_v60 = vsel %vm1849_vm2, %v2691_v49, %v2546_v43  ;;  %vm9985_vm5 = vmmov %vm9984_vm1 }
 0x3c3   :  { %3700 = vrot.lane.b32.xlu1 %v8028_v21, %s5014_s26  ;;  %v3185_v21 = vsel %vm1799_vm0, %v7831_v61, %v3086_v34  ;;  %v2694_v57 = vsel %vm1799_vm0, %v7854_v20, %v2482_v55  ;;  %v2693_v42 = vsel %vm1799_vm0, %v7852_v22, %v2482_v55  ;;  %v4499_v22 = vld [vmem:[%s9576_s4 + $0x78] sm:$0xff]  ;;  %v4521_v55 = vld [vmem:[%s9576_s4 + $0xa8] sm:$0xff]  ;;  %vm9986_vm3 = vmmov %vm9984_vm1 }
 0x3c4   :  { %3694 = vrot.lane.b32.xlu0 %v3691_v13, %s5008_s25  ;;  %vm9987_vm8 = vmmov %vm9984_vm1 }
 0x3c5   :  { %v3088_v51 = vpop.permute.xlu1 %3087  ;;  %vm9988_vm9 = vmmov %vm9984_vm1 }
 0x3c6   :  { %v2548_v9 = vpop.permute.xlu0 %2547  ;;  %vm9993_vm4 = vmmov %vm9984_vm1 }
 0x3c7   :  { %3496 = vrot.lane.b32.xlu1 %v7803_v53, %s5011_s11  ;;  %v2692_v53 = vsel %vm1799_vm0, %v7831_v61, %v2480_v26  ;;  %v3201_v45 = vsel %vm1849_vm2, %v3185_v21, %v2548_v9  ;;  %v3186_v26 = vsel %vm1799_vm0, %v7854_v20, %v3088_v51  ;;  %vm9997_vm6 = vmmov %vm9984_vm1 }
 0x3c8   :  { %3488 = vrot.lane.b32.xlu0 %v3485_v2, %s5008_s25 }
 0x3c9   :  { %v2552_v37 = vpop.permute.xlu1 %2551 }
 0x3ca   :  { %v2550_v12 = vpop.permute.xlu0 %2549  ;;  %v2726_v21 = vsel %vm1849_vm2, %v2694_v57, %v2552_v37  ;;  %v3202_v49 = vsel %vm1849_vm2, %v3186_v26, %v2552_v37  ;;  %v4520_v57 = vld [vmem:[%s9576_s4 + $0xa0] sm:$0xff] }
 0x3cb   :  { %3506 = vrot.lane.b32.xlu1 %v7808_v8, %s5014_s26  ;;  %v2724_v8 = vsel %vm1849_vm2, %v2692_v53, %v2548_v9  ;;  %v4940_v26 = vpack.c.bf16 %v4521_v55, %v4520_v57 }
 0x3cc   :  { %3498 = vrot.lane.b32.xlu0 %v8109_v14, %s5011_s11 }
 0x3cd   :  { %v3138_v0 = vpop.permute.xlu1 %3137 }
 0x3ce   :  { %v3217_v34 = vsel %vm1900_vm7, %v3201_v45, %v3138_v0  ;;  %v2644_v13 = vpop.permute.xlu0 %2643  ;;  %v2725_v45 = vsel %vm1849_vm2, %v2693_v42, %v2550_v12  ;;  %v4501_v42 = vld [vmem:[%s9576_s4 + $0x88] sm:$0xff] }
 0x3cf   :  { %v3251_v28 = vrot.slane %v3217_v34, 2  ;;  %v2755_v52 = vsel %vm1900_vm7, %v2723_v60, %v2644_v13  ;;  %v2756_v61 = vsel %vm1900_vm7, %v2724_v8, %v2644_v13  ;;  %3702 = vrot.lane.b32.xlu1 %v8133_v39, %s5014_s26  ;;  %v4498_v39 = vld [vmem:[%s9576_s4 + $0x70] sm:$0xff] }
 0x3d0   :  { %v2819_v43 = vrot.slane %v2755_v52, 1  ;;  %v2820_v2 = vrot.slane %v2756_v61, 1  ;;  %v3250_v9 = vrot.slane %v2755_v52, 2  ;;  %3696 = vrot.lane.b32.xlu0 %v3693_v29, %s5008_s25  ;;  %v4500_v61 = vld [vmem:[%s9576_s4 + $0x80] sm:$0xff] }
 0x3d1   :  { %v3140_v53 = vpop.permute.xlu1 %3139 }
 0x3d2   :  { %v3218_v20 = vsel %vm1900_vm7, %v3202_v49, %v3140_v53  ;;  %v2646_v51 = vpop.permute.xlu0 %2645  ;;  %v2821_v52 = vsel %vm9983_vm11, %v2819_v43, %v2820_v2  ;;  %v3252_v0 = vsel %vm3249_vm12, %v3250_v9, %v3251_v28  ;;  %v4928_v28 = vpack.c.bf16 %v4499_v22, %v4498_v39  ;;  %v4523_v49 = vld [vmem:[%s9576_s4 + $0xb8] sm:$0xff] }
 0x3d3   :  { %v3254_v37 = vrot.slane %v3218_v20, 2  ;;  %v2757_v12 = vsel %vm1900_vm7, %v2725_v45, %v2646_v51  ;;  %v2758_v29 = vsel %vm1900_vm7, %v2726_v21, %v2646_v51  ;;  %4752 = vmatprep.mubr.msk.f32.mxu0 %vm1951_vm14, %v2821_v52  ;;  %4788 = vmatprep.mubr.msk.f32.mxu1 %vm1951_vm14, %v3252_v0  ;;  %v4522_v21 = vld [vmem:[%s9576_s4 + $0xb0] sm:$0xff]  ;;  %v4932_v39 = vpack.c.bf16 %v4501_v42, %v4500_v61  ;;  %s5022_s4 = smov [#allocation3]  }
 0x3d4   :  { %v2822_v60 = vrot.slane %v2757_v12, 1  ;;  %v2823_v8 = vrot.slane %v2758_v29, 1  ;;  %v3253_v34 = vrot.slane %v2757_v12, 2  ;;  %v4944_v45 = vpack.c.bf16 %v4523_v49, %v4522_v21  ;;  %s4315_s29 = sshll.u32 %s5022_s4, 4  ;;  %s4316_s29 = int_to_ptr.vmem [resolvable:$true] %s4315_s29 }
 0x3d5   :  { %v3090_v13 = vpop.permute.xlu1 %3089  ;;  %s4982_s6 = scalar_lea.vmem %s4316_s29, 2048  ;;  %p4987_p1 = scmp.lt.s32.totalorder %s4316_s29, %s4316_s29 }
 0x3d6   :  { %v8256_v43 = vsel %vm9984_vm1, %v2822_v60, %v2823_v8  ;;  %v8259_v2 = vsel %vm3249_vm12, %v3253_v34, %v3254_v37  ;;  %v2484_v9 = vpop.permute.xlu0 %2483  ;;  %p4983_p0 = scmp.ne.s32.totalorder %s4316_s29, %s4982_s6  ;;  %p4988_p2 = scmp.lt.s32.totalorder %s4982_s6, %s4982_s6 }
 0x3d7   :  { %4753 = vmatmul.mubr.msk.f32.vlgmr.msra.gmra.mrb[16].mxu0 %vm1951_vm14, %v8256_v43  ;;  %4789 = vmatmul.mubr.msk.f32.vlgmr.msra.gmra.mrb[10].mxu1 %vm1951_vm14, %v8259_v2  ;;  %v2696_v57 = vsel %vm1799_vm0, %v7892_v36, %v2484_v9 }
 0x3d8   :  { %4927 = vmatpush3.bf16.msra.mxu0 %v7973_v15  ;;  %4939 = vmatpush3.bf16.msra.mxu1 %v8048_v58  ;;  %v3187_v15 = vsel %vm1799_vm0, %v7892_v36, %v3090_v13  ;;  %v2695_v58 = vsel %vm1799_vm0, %v7890_v41, %v2484_v9  ;;  %p4989_p3 = por %p4988_p2, %p4987_p1 }
 0x3d9   :  { %v2554_v53 = vpop.permute.xlu1 %2553  ;;  %4929 = vmatprep.subr.bf16.mxu0 %v4928_v28  ;;  %4941 = vmatprep.subr.bf16.mxu1 %v4940_v26 }
 0x3da   :  { %v2486_v20 = vpop.permute.xlu0 %2485  ;;  %v2727_v12 = vsel %vm1849_vm2, %v2695_v58, %v2554_v53  ;;  %p4990_p4 = pnand %p4989_p3, %p4983_p0 }
 0x3db   :  { %v2698_v34 = vsel %vm1799_vm0, %v7930_v1, %v2486_v20  ;;  %v2697_v42 = vsel %vm1799_vm0, %v7928_v23, %v2486_v20 }
 0x3dc   :  { %4931 = vmatpush3.bf16.msra.mxu0 %v4928_v28  ;;  %4943 = vmatpush3.bf16.msra.mxu1 %v4940_v26 }
 0x3dd   :  { %v3092_v51 = vpop.permute.xlu1 %3091  ;;  %4933 = vmatprep.subr.bf16.mxu0 %v4932_v39  ;;  %4945 = vmatprep.subr.bf16.mxu1 %v4944_v45 }
 0x3de   :  { %v2556_v52 = vpop.permute.xlu0 %2555  ;;  %v3188_v36 = vsel %vm1799_vm0, %v7930_v1, %v3092_v51 }
 0x3df   :  { %v3203_v55 = vsel %vm1849_vm2, %v3187_v15, %v2556_v52  ;;  %v2728_v29 = vsel %vm1849_vm2, %v2696_v57, %v2556_v52 }
 0x3e0   :  { %4935 = vmatpush3.bf16.msra.mxu0 %v4932_v39  ;;  %4947 = vmatpush3.bf16.msra.mxu1 %v4944_v45 }
 0x3e1   :  { %v2560_v0 = vpop.permute.xlu1 %2559 }
 0x3e2   :  { %v2558_v22 = vpop.permute.xlu0 %2557  ;;  %v2730_v21 = vsel %vm1849_vm2, %v2698_v34, %v2560_v0  ;;  %v3204_v49 = vsel %vm1849_vm2, %v3188_v36, %v2560_v0 }
 0x3e3   :  { %v2729_v39 = vsel %vm1849_vm2, %v2697_v42, %v2558_v22 }
 0x3e5   :  { %v3142_v37 = vpop.permute.xlu1 %3141 }
 0x3e6   :  { %v3219_v60 = vsel %vm1900_vm7, %v3203_v55, %v3142_v37  ;;  %v2648_v8 = vpop.permute.xlu0 %2647 }
 0x3e7   :  { %v3257_v13 = vrot.slane %v3219_v60, 2  ;;  %v2759_v28 = vsel %vm1900_vm7, %v2727_v12, %v2648_v8  ;;  %v2760_v41 = vsel %vm1900_vm7, %v2728_v29, %v2648_v8 }
 0x3e8   :  { %v2825_v61 = vrot.slane %v2759_v28, 1  ;;  %v2826_v26 = vrot.slane %v2760_v41, 1  ;;  %v3256_v9 = vrot.slane %v2759_v28, 2 }
 0x3e9   :  { %v3144_v53 = vpop.permute.xlu1 %3143 }
 0x3ea   :  { %v3220_v45 = vsel %vm1900_vm7, %v3204_v49, %v3144_v53  ;;  %v2650_v52 = vpop.permute.xlu0 %2649  ;;  %v8299_v15 = vsel %vm9985_vm5, %v2825_v61, %v2826_v26  ;;  %v8302_v1 = vsel %vm3249_vm12, %v3256_v9, %v3257_v13 }
 0x3eb   :  { %v3260_v51 = vrot.slane %v3220_v45, 2  ;;  %v2761_v58 = vsel %vm1900_vm7, %v2729_v39, %v2650_v52  ;;  %v2762_v23 = vsel %vm1900_vm7, %v2730_v21, %v2650_v52  ;;  %4755 = vmatprep.mubr.msk.f32.mxu0 %vm1951_vm14, %v8299_v15  ;;  %4791 = vmatprep.mubr.msk.f32.mxu1 %vm1951_vm14, %v8302_v1  ;;  %v4974_v52 = vld [vmem:[#allocation2 + $0x68] sm:$0x3] }
 0x3ec   :  { %v2828_v20 = vrot.slane %v2761_v58, 1  ;;  %v2829_v0 = vrot.slane %v2762_v23, 1  ;;  %v3259_v22 = vrot.slane %v2761_v58, 2 }
 0x3ed   :  { %v3094_v57 = vpop.permute.xlu1 %3093 }
 0x3ee   :  { %v2488_v55 = vpop.permute.xlu0 %2487  ;;  %v8311_v37 = vsel %vm9986_vm3, %v2828_v20, %v2829_v0  ;;  %v8314_v12 = vsel %vm3249_vm12, %v3259_v22, %v3260_v51  ;;  %v3189_v41 = vsel %vm1799_vm0, %v7955_v54, %v3094_v57  ;;  %v4975_v57 = vld [vmem:[#allocation2 + $0x60] sm:$0xff] }
 0x3ef   :  { %4756 = vmatmul.mubr.msk.f32.gmra.mrb[18].mxu0 %vm1951_vm14, %v8311_v37  ;;  %4792 = vmatmul.mubr.msk.f32.gmra.mrb[12].mxu1 %vm1951_vm14, %v8314_v12  ;;  %v2699_v61 = vsel %vm1799_vm0, %v7953_v32, %v2488_v55  ;;  %v2700_v26 = vsel %vm1799_vm0, %v7955_v54, %v2488_v55 }
 0x3f1   :  { %v2562_v29 = vpop.permute.xlu1 %2561 }
 0x3f2   :  { %v2490_v60 = vpop.permute.xlu0 %2489  ;;  %v2731_v49 = vsel %vm1849_vm2, %v2699_v61, %v2562_v29 }
 0x3f3   :  { %v2702_v51 = vsel %vm1799_vm0, %v4974_v52, %v2490_v60  ;;  %v2701_v55 = vsel %vm1799_vm0, %v4975_v57, %v2490_v60 }
 0x3f5   :  { %v3096_v8 = vpop.permute.xlu1 %3095 }
 0x3f6   :  { %v2564_v34 = vpop.permute.xlu0 %2563  ;;  %v3190_v23 = vsel %vm1799_vm0, %v4974_v52, %v3096_v8 }
 0x3f7   :  { %v3205_v9 = vsel %vm1849_vm2, %v3189_v41, %v2564_v34  ;;  %v2732_v53 = vsel %vm1849_vm2, %v2700_v26, %v2564_v34 }
 0x3f9   :  { %v2568_v13 = vpop.permute.xlu1 %2567 }
 0x3fa   :  { %v2566_v28 = vpop.permute.xlu0 %2565  ;;  %v2734_v29 = vsel %vm1849_vm2, %v2702_v51, %v2568_v13  ;;  %v3206_v34 = vsel %vm1849_vm2, %v3190_v23, %v2568_v13 }
 0x3fb   :  { %v8322_v36 = vpop.f32.mrb[0].mxu1  ;;  %v2733_v61 = vsel %vm1849_vm2, %v2701_v55, %v2566_v28 }
 0x3fc   :  { %v8329_v42 = vpop.f32.mrb[1].mxu1 }
 0x3fd   :  { %v3146_v21 = vpop.permute.xlu1 %3145 }
 0x3fe   :  { %v3221_v39 = vsel %vm1900_vm7, %v3205_v9, %v3146_v21  ;;  %v2652_v45 = vpop.permute.xlu0 %2651 }
 0x3ff   :  { %v3263_v58 = vrot.slane %v3221_v39, 2  ;;  %v2763_v32 = vsel %vm1900_vm7, %v2731_v49, %v2652_v45  ;;  %v2764_v54 = vsel %vm1900_vm7, %v2732_v53, %v2652_v45 }
 0x400   :  { %v2831_v20 = vrot.slane %v2763_v32, 1  ;;  %v2832_v0 = vrot.slane %v2764_v54, 1  ;;  %v3262_v22 = vrot.slane %v2763_v32, 2  ;;  %v4976_v54 = vld [vmem:[#allocation2 + $0x78] sm:$0x3] }
 0x401   :  { %v3148_v41 = vpop.permute.xlu1 %3147 }
 0x402   :  { %v3222_v26 = vsel %vm1900_vm7, %v3206_v34, %v3148_v41  ;;  %v2654_v9 = vpop.permute.xlu0 %2653  ;;  %v2833_v21 = vsel %vm9987_vm8, %v2831_v20, %v2832_v0  ;;  %v8345_v8 = vsel %vm3249_vm12, %v3262_v22, %v3263_v58  ;;  %v3268_v34 = vrot.slane %v7752_v56, 2 }
 0x403   :  { %v3266_v49 = vrot.slane %v3222_v26, 2  ;;  %v2765_v53 = vsel %vm1900_vm7, %v2733_v61, %v2654_v9  ;;  %v2766_v60 = vsel %vm1900_vm7, %v2734_v29, %v2654_v9  ;;  %4758 = vmatprep.mubr.msk.f32.mxu0 %vm1951_vm14, %v2833_v21  ;;  %4794 = vmatprep.mubr.msk.f32.mxu1 %vm1951_vm14, %v8345_v8  ;;  %v4977_v61 = vld [vmem:[#allocation2 + $0xc8] sm:$0x3] }
 0x404   :  { %v2834_v13 = vrot.slane %v2765_v53, 1  ;;  %v2835_v28 = vrot.slane %v2766_v60, 1  ;;  %v3265_v39 = vrot.slane %v2765_v53, 2 }
 0x405   :  { %v3100_v45 = vpop.permute.xlu1 %3099 }
 0x406   :  { %v3192_v52 = vsel %vm1799_vm0, %v7725_v11, %v3100_v45  ;;  %v3098_v51 = vpop.permute.xlu0 %3097  ;;  %v2836_v58 = vsel %vm9988_vm9, %v2834_v13, %v2835_v28  ;;  %v8356_v32 = vsel %vm3249_vm12, %v3265_v39, %v3266_v49  ;;  %v4978_v49 = vld [vmem:[#allocation2 + $0xb8] sm:$0x3]  ;;  %v9989_v39 = vld [vmem:[#allocation38_spill] sm:$0xff] }
 0x407   :  { %v3191_v23 = vsel %vm1799_vm0, %v4976_v54, %v3098_v51  ;;  %4759 = vmatmul.mubr.msk.f32.gmra.mrb[20].mxu0 %vm1951_vm14, %v2836_v58  ;;  %4795 = vmatmul.mubr.msk.f32.gmra.mrb[14].mxu1 %vm1951_vm14, %v8356_v32  ;;  %v3208_v11 = vsel %vm1849_vm2, %v3192_v52, %v7721_v30  ;;  %v3271_v30 = vrot.slane %v7746_v24, 2  ;;  %v9990_v45 = vld [vmem:[#allocation26_spill] sm:$0xff] }
 0x408   :  { %4824 = vmatprep.mubr.msk.f32.mxu0 %vm1951_vm14, %v8256_v43  ;;  %v3207_v22 = vsel %vm1849_vm2, %v3191_v23, %v7715_v7  ;;  %v3274_v52 = vrot.slane %v9990_v45, 2 }
 0x409   :  { %v3152_v20 = vpop.permute.xlu1 %3151 }
 0x40a   :  { %v3224_v0 = vsel %vm1900_vm7, %v3208_v11, %v3152_v20  ;;  %v3150_v57 = vpop.permute.xlu0 %3149 }
 0x40b   :  { %v3272_v55 = vrot.slane %v3224_v0, 2  ;;  %v3223_v29 = vsel %vm1900_vm7, %v3207_v22, %v3150_v57  ;;  %4825 = vmatmul.mubr.msk.f32.vlgmr.msra.gmra.mrb[22].mxu0 %vm1951_vm14, %v8299_v15  ;;  %v4979_v0 = vld [vmem:[#allocation2 + $0xd8] sm:$0x3] }
 0x40c   :  { %v3269_v41 = vrot.slane %v3223_v29, 2  ;;  %4827 = vmatprep.mubr.msk.f32.mxu0 %vm1951_vm14, %v8311_v37 }
 0x40d   :  { %v3104_v43 = vpop.permute.xlu1 %3103  ;;  %v8385_v56 = vsel %vm3249_vm12, %v3271_v30, %v3272_v55 }
 0x40e   :  { %v3194_v26 = vsel %vm1799_vm0, %v4977_v61, %v3104_v43  ;;  %v3102_v7 = vpop.permute.xlu0 %3101  ;;  %v8378_v9 = vsel %vm3249_vm12, %v3268_v34, %v3269_v41  ;;  %v3280_v61 = vrot.slane %v8015_v5, 2 }
 0x40f   :  { %v3193_v53 = vsel %vm1799_vm0, %v4978_v49, %v3102_v7  ;;  %4797 = vmatprep.mubr.msk.f32.mxu1 %vm1951_vm14, %v8378_v9  ;;  %4828 = vmatmul.mubr.msk.f32.gmra.mrb[24].mxu0 %vm1951_vm14, %v2833_v21  ;;  %v3210_v24 = vsel %vm1849_vm2, %v3194_v26, %v7888_v19  ;;  %v9992_v19 = vld [vmem:[#allocation52_spill] sm:$0xff]  ;;  %v3283_v7 = vrot.slane %v8008_v59, 2 }
 0x410   :  { %4798 = vmatmul.mubr.msk.f32.gmra.mrb[16].mxu1 %vm1951_vm14, %v8385_v56  ;;  %4830 = vmatprep.mubr.msk.f32.mxu0 %vm1951_vm14, %v2836_v58  ;;  %v3209_v60 = vsel %vm1849_vm2, %v3193_v53, %v7881_v17  ;;  %v9991_v58 = vld [vmem:[#allocation44_spill] sm:$0xff]  ;;  %v3277_v54 = vrot.slane %v9992_v19, 2 }
 0x411   :  { %v3156_v15 = vpop.permute.xlu1 %3155 }
 0x412   :  { %v3226_v37 = vsel %vm1900_vm7, %v3210_v24, %v3156_v15  ;;  %v3154_v13 = vpop.permute.xlu0 %3153  ;;  %v4980_v15 = vld [vmem:[#allocation2 + $0xf8] sm:$0x3] }
 0x413   :  { %v3278_v28 = vrot.slane %v3226_v37, 2  ;;  %v3225_v21 = vsel %vm1900_vm7, %v3209_v60, %v3154_v13  ;;  %4831 = vmatmul.mubr.msk.f32.gmra.mrb[26].mxu0 %vm1951_vm14, %v9989_v39  ;;  %v3286_v39 = vrot.slane %v8104_v6, 2 }
 0x414   :  { %v3275_v51 = vrot.slane %v3225_v21, 2  ;;  %4833 = vmatprep.mubr.msk.f32.mxu0 %vm1951_vm14, %v9991_v58 }
 0x415   :  { %v3108_v23 = vpop.permute.xlu1 %3107  ;;  %v8408_v57 = vsel %vm3249_vm12, %v3277_v54, %v3278_v28  ;;  %v4981_v54 = vld [vmem:[#allocation2 + $0x118] sm:$0x3] }
 0x416   :  { %v3196_v11 = vsel %vm1799_vm0, %v7785_v16, %v3108_v23  ;;  %v3106_v17 = vpop.permute.xlu0 %3105  ;;  %v3276_v20 = vsel %vm3249_vm12, %v3274_v52, %v3275_v51  ;;  %v3289_v52 = vrot.slane %v8098_v10, 2 }
 0x417   :  { %v3195_v22 = vsel %vm1799_vm0, %v4979_v0, %v3106_v17  ;;  %4800 = vmatprep.mubr.msk.f32.mxu1 %vm1951_vm14, %v3276_v20  ;;  %v3212_v55 = vsel %vm1849_vm2, %v3196_v11, %v7989_v50 }
 0x418   :  { %4801 = vmatmul.mubr.msk.f32.gmra.mrb[18].mxu1 %vm1951_vm14, %v8408_v57  ;;  %v3211_v34 = vsel %vm1849_vm2, %v3195_v22, %v7983_v35  ;;  %v3292_v22 = vrot.slane %v8168_v63, 2 }
 0x419   :  { %v3160_v29 = vpop.permute.xlu1 %3159 }
 0x41a   :  { %v3228_v16 = vsel %vm1900_vm7, %v3212_v55, %v3160_v29  ;;  %v3158_v41 = vpop.permute.xlu0 %3157  ;;  %v3295_v29 = vrot.slane %v8160_v47, 2 }
 0x41b   :  { %v3284_v30 = vrot.slane %v3228_v16, 2  ;;  %v3227_v43 = vsel %vm1900_vm7, %v3211_v34, %v3158_v41 }
 0x41c   :  { %v3281_v26 = vrot.slane %v3227_v43, 2 }
 0x41d   :  { %v3112_v49 = vpop.permute.xlu1 %3111  ;;  %v8429_v37 = vsel %vm3249_vm12, %v3283_v7, %v3284_v30 }
 0x41e   :  { %v3198_v53 = vsel %vm1799_vm0, %v7819_v40, %v3112_v49  ;;  %v3110_v50 = vpop.permute.xlu0 %3109  ;;  %v8423_v24 = vsel %vm3249_vm12, %v3280_v61, %v3281_v26 }
 0x41f   :  { %v3197_v35 = vsel %vm1799_vm0, %v4980_v15, %v3110_v50  ;;  %4803 = vmatprep.mubr.msk.f32.mxu1 %vm1951_vm14, %v8423_v24  ;;  %v3214_v59 = vsel %vm1849_vm2, %v3198_v53, %v8078_v44 }
 0x420   :  { %4804 = vmatmul.mubr.msk.f32.gmra.mrb[20].mxu1 %vm1951_vm14, %v8429_v37  ;;  %v3213_v60 = vsel %vm1849_vm2, %v3197_v35, %v8069_v25 }
 0x421   :  { %v3164_v40 = vpop.permute.xlu1 %3163 }
 0x422   :  { %v3230_v5 = vsel %vm1900_vm7, %v3214_v59, %v3164_v40  ;;  %v3162_v13 = vpop.permute.xlu0 %3161 }
 0x423   :  { %v3290_v28 = vrot.slane %v3230_v5, 2  ;;  %v3229_v21 = vsel %vm1900_vm7, %v3213_v60, %v3162_v13  ;;  %v9994_v5 = vld [vmem:[#allocation10_spill] sm:$0xff] }
 0x424   :  { %v3287_v45 = vrot.slane %v3229_v21, 2 }
 0x425   :  { %v3116_v51 = vpop.permute.xlu1 %3115  ;;  %v8450_v23 = vsel %vm3249_vm12, %v3289_v52, %v3290_v28 }
 0x426   :  { %v3200_v58 = vsel %vm1799_vm0, %v8109_v14, %v3116_v51  ;;  %v3114_v44 = vpop.permute.xlu0 %3113  ;;  %v8444_v19 = vsel %vm3249_vm12, %v3286_v39, %v3287_v45  ;;  %v9995_v51 = vld [vmem:[#allocation32_spill] sm:$0xff] }
 0x427   :  { %v3199_v25 = vsel %vm1799_vm0, %v4981_v54, %v3114_v44  ;;  %4806 = vmatprep.mubr.msk.f32.mxu1 %vm1951_vm14, %v8444_v19  ;;  %v3216_v10 = vsel %vm1849_vm2, %v3200_v58, %v8140_v38 }
 0x428   :  { %4807 = vmatmul.mubr.msk.f32.gmra.mrb[22].mxu1 %vm1951_vm14, %v8450_v23  ;;  %v3215_v11 = vsel %vm1849_vm2, %v3199_v25, %v8129_v62 }
 0x429   :  { %v3168_v6 = vpop.permute.xlu1 %3167 }
 0x42a   :  { %v3232_v14 = vsel %vm1900_vm7, %v3216_v10, %v3168_v6  ;;  %v3166_v17 = vpop.permute.xlu0 %3165 }
 0x42b   :  { %v3296_v20 = vrot.slane %v3232_v14, 2  ;;  %v3231_v0 = vsel %vm1900_vm7, %v3215_v11, %v3166_v17 }
 0x42c   :  { %v3293_v55 = vrot.slane %v3231_v0, 2 }
 0x42d   :  { %v3493_v16 = vpop.permute.xlu1 %3492  ;;  %v8470_v62 = vsel %vm3249_vm12, %v3295_v29, %v3296_v20 }
 0x42e   :  { %v3487_v34 = vpop.permute.xlu0 %3486  ;;  %v8463_v41 = vsel %vm3249_vm12, %v3292_v22, %v3293_v55 }
 0x42f   :  { %v3510_v38 = vsel %vm1799_vm0, %v8142_v18, %v3487_v34  ;;  %4809 = vmatprep.mubr.msk.f32.mxu1 %vm1951_vm14, %v8463_v41  ;;  %v3511_v63 = vsel %vm1799_vm0, %v8163_v27, %v3487_v34 }
 0x430   :  { %4810 = vmatmul.mubr.msk.f32.gmra.mrb[24].mxu1 %vm1951_vm14, %v8470_v62  ;;  %v3514_v47 = vsel %vm1849_vm2, %v3510_v38, %v3493_v16 }
 0x431   :  { %v3505_v30 = vpop.permute.xlu1 %3504  ;;  %4860 = vmatprep.mubr.msk.f32.mxu1 %vm1951_vm14, %v8259_v2 }
 0x432   :  { %v3518_v18 = vsel %vm1900_vm7, %v3514_v47, %v3505_v30  ;;  %v3495_v43 = vpop.permute.xlu0 %3494 }
 0x433   :  { %v3515_v61 = vsel %vm1849_vm2, %v3511_v63, %v3495_v43  ;;  %v3526_v7 = vrot.slane %v3518_v18, 1 }
 0x434   :  { %v3519_v26 = vsel %vm1900_vm7, %v3515_v61, %v3505_v30  ;;  %4861 = vmatmul.mubr.msk.f32.vlgmr.msra.gmra.mrb[26].mxu1 %vm1951_vm14, %v8302_v1 }
 0x435   :  { %v3527_v49 = vrot.slane %v3519_v26, 1  ;;  %v3701_v53 = vpop.permute.xlu1 %3700  ;;  %4863 = vmatprep.mubr.msk.f32.mxu1 %vm1951_vm14, %v8314_v12 }
 0x436   :  { %v3695_v50 = vpop.permute.xlu0 %3694 }
 0x437   :  { %v3706_v2 = vsel %vm1799_vm0, %v8163_v27, %v3695_v50  ;;  %v3528_v15 = vsel %vm9993_vm4, %v3526_v7, %v3527_v49  ;;  %v8490_v59 = vpop.f32.mrb[2].mxu1 }
 0x438   :  { %v3708_v35 = vsel %vm1849_vm2, %v3706_v2, %v3495_v43  ;;  %4834 = vmatmul.mubr.msk.f32.gmra.mrb[28].mxu0 %vm1951_vm14, %v3528_v15  ;;  %4864 = vmatmul.mubr.msk.f32.gmra.mrb[28].mxu1 %vm1951_vm14, %v8345_v8  ;;  %v8496_v40 = vpop.f32.mrb[3].mxu1  ;;  %v3714_v8 = vrot.slane %v3518_v18, 2 }
 0x439   :  { %v3710_v1 = vsel %vm1900_vm7, %v3708_v35, %v3701_v53  ;;  %v3497_v12 = vpop.permute.xlu1 %3496  ;;  %4836 = vmatprep.mubr.msk.f32.mxu0 %vm1951_vm14, %v9994_v5  ;;  %4866 = vmatprep.mubr.msk.f32.mxu1 %vm1951_vm14, %v8356_v32 }
 0x43a   :  { %v3489_v27 = vpop.permute.xlu0 %3488  ;;  %v3715_v60 = vrot.slane %v3710_v1, 2 }
 0x43b   :  { %v3512_v13 = vsel %vm1799_vm0, %v8192_v31, %v3489_v27  ;;  %v3513_v28 = vsel %vm1799_vm0, %v8198_v3, %v3489_v27 }
 0x43c   :  { %4837 = vmatmul.mubr.msk.f32.gmra.mrb[30].mxu0 %vm1951_vm14, %v8024_v4  ;;  %4867 = vmatmul.mubr.msk.f32.gmra.mrb[30].mxu1 %vm1951_vm14, %v8378_v9  ;;  %v3516_v31 = vsel %vm1849_vm2, %v3512_v13, %v3497_v12  ;;  %v3716_v45 = vsel %vm3249_vm12, %v3714_v8, %v3715_v60 }
 0x43d   :  { %4839 = vmatprep.mubr.msk.f32.mxu0 %vm1951_vm14, %v8033_v48  ;;  %4869 = vmatprep.mubr.msk.f32.mxu1 %vm1951_vm14, %v8385_v56  ;;  %v3507_v21 = vpop.permute.xlu1 %3506 }
 0x43e   :  { %v3499_v32 = vpop.permute.xlu0 %3498  ;;  %v3520_v48 = vsel %vm1900_vm7, %v3516_v31, %v3507_v21 }
 0x43f   :  { %v3517_v39 = vsel %vm1849_vm2, %v3513_v28, %v3499_v32  ;;  %v3717_v54 = vrot.slane %v3520_v48, 2 }
 0x440   :  { %v3521_v4 = vsel %vm1900_vm7, %v3517_v39, %v3507_v21  ;;  %4840 = vmatmul.mubr.msk.f32.gmra.mrb[32].mxu0 %vm1951_vm14, %v8118_v33  ;;  %4870 = vmatmul.mubr.msk.f32.gmra.mrb[32].mxu1 %vm1951_vm14, %v3716_v45  ;;  %v3529_v33 = vrot.slane %v3520_v48, 1 }
 0x441   :  { %4842 = vmatprep.mubr.msk.f32.mxu0 %vm1951_vm14, %v8124_v46  ;;  %4872 = vmatprep.mubr.msk.f32.mxu1 %vm1951_vm14, %v8408_v57  ;;  %v3530_v56 = vrot.slane %v3521_v4, 1  ;;  %v9996_v46 = vld [vmem:[#allocation37_spill] sm:$0xff]  ;;  %v3703_v57 = vpop.permute.xlu1 %3702 }
 0x442   :  { %v3697_v9 = vpop.permute.xlu0 %3696 }
 0x443   :  { %v3707_v52 = vsel %vm1799_vm0, %v8198_v3, %v3697_v9  ;;  %v3531_v44 = vsel %vm9997_vm6, %v3529_v33, %v3530_v56 }
 0x444   :  { %4843 = vmatmul.mubr.msk.f32.gmra.mrb[34].mxu0 %vm1951_vm14, %v9995_v51  ;;  %4873 = vmatmul.mubr.msk.f32.gmra.mrb[34].mxu1 %vm1951_vm14, %v8423_v24  ;;  %v3709_v58 = vsel %vm1849_vm2, %v3707_v52, %v3499_v32 }
 0x445   :  { %4845 = vmatprep.mubr.msk.f32.mxu0 %vm1951_vm14, %v9996_v46  ;;  %4875 = vmatprep.mubr.msk.f32.mxu1 %vm1951_vm14, %v8429_v37  ;;  %v3711_v3 = vsel %vm1900_vm7, %v3709_v58, %v3703_v57 }
 0x446   :  { %v3718_v24 = vrot.slane %v3711_v3, 2 }
 0x448   :  { %4846 = vmatmul.mubr.msk.f32.gmra.mrb[36].mxu0 %vm1951_vm14, %v3531_v44  ;;  %4876 = vmatmul.mubr.msk.f32.gmra.mrb[36].mxu1 %vm1951_vm14, %v8444_v19  ;;  %v3719_v37 = vsel %vm3249_vm12, %v3717_v54, %v3718_v24 }
 0x449   :  { %4878 = vmatprep.mubr.msk.f32.mxu1 %vm1951_vm14, %v8450_v23 }
 0x44c   :  { %4879 = vmatmul.mubr.msk.f32.gmra.mrb[38].mxu1 %vm1951_vm14, %v8463_v41 }
 0x44d   :  { %4881 = vmatprep.mubr.msk.f32.mxu1 %vm1951_vm14, %v8470_v62 }
 0x450   :  { %4882 = vmatmul.mubr.msk.f32.gmra.mrb[40].mxu1 %vm1951_vm14, %v3719_v37 }
 0x466   :  { %v8550_v25 = vpop.f32.mrb[4].mxu1 }
 0x467   :  { %v8552_v10 = vpop.f32.mrb[5].mxu1 }
 0x483   :  { %v8554_v19 = vpop.f32.mrb[6].mxu1 }
 0x484   :  { %v8556_v6 = vpop.f32.mrb[7].mxu1 }
 0x493   :  { %v8558_v23 = vpop.f32.mrb[8].mxu1 }
 0x494   :  { %v8560_v14 = vpop.f32.mrb[9].mxu1 }
 0x4aa   :  { %v8562_v11 = vpop.f32.mrb[16].mxu0  ;;  %v8564_v17 = vpop.f32.mrb[10].mxu1 }
 0x4ab   :  { %v3877_v20 = vadd.f32 %v8564_v17, %v8562_v11  ;;  %v8568_v0 = vpop.f32.mrb[17].mxu0  ;;  %v8570_v22 = vpop.f32.mrb[11].mxu1 }
 0x4ac   :  { %v3876_v55 = vadd.f32 %v8570_v22, %v8568_v0 }
 0x4c2   :  { %v8574_v29 = vpop.f32.mrb[18].mxu0  ;;  %v8576_v16 = vpop.f32.mrb[12].mxu1 }
 0x4c3   :  { %v3879_v34 = vadd.f32 %v8576_v16, %v8574_v29  ;;  %v8580_v41 = vpop.f32.mrb[19].mxu0  ;;  %v8582_v38 = vpop.f32.mrb[13].mxu1 }
 0x4c4   :  { %v3878_v62 = vadd.f32 %v8582_v38, %v8580_v41 }
 0x4da   :  { %v8586_v63 = vpop.f32.mrb[20].mxu0  ;;  %v8588_v47 = vpop.f32.mrb[14].mxu1 }
 0x4db   :  { %v3881_v30 = vadd.f32 %v8588_v47, %v8586_v63  ;;  %v8592_v18 = vpop.f32.mrb[21].mxu0  ;;  %v8594_v43 = vpop.f32.mrb[15].mxu1 }
 0x4dc   :  { %v3880_v61 = vadd.f32 %v8594_v43, %v8592_v18 }
 0x4de   :  { %v8598_v26 = vpop.f32.mrb[22].mxu0 }
 0x4df   :  { %v3893_v7 = vadd.f32 %v8598_v26, %v3877_v20  ;;  %v8601_v49 = vpop.f32.mrb[23].mxu0 }
 0x4e0   :  { %v3892_v53 = vadd.f32 %v3876_v55, %v8601_v49 }
 0x4e2   :  { %v8604_v50 = vpop.f32.mrb[24].mxu0 }
 0x4e3   :  { %9998 = vst [vmem:[#allocation43_spill] sm:$0xff] %v8604_v50  ;;  %v3895_v2 = vadd.f32 %v8604_v50, %v3879_v34  ;;  %v8607_v15 = vpop.f32.mrb[16].mxu1  ;;  %v8609_v35 = vpop.f32.mrb[25].mxu0 }
 0x4e4   :  { %v3883_v1 = vadd.f32 %v8607_v15, %v8322_v36  ;;  %v3894_v12 = vadd.f32 %v3878_v62, %v8609_v35  ;;  %v8614_v5 = vpop.f32.mrb[17].mxu1 }
 0x4e5   :  { %v3882_v27 = vadd.f32 %v8614_v5, %v8329_v42 }
 0x4e6   :  { %v8618_v60 = vpop.f32.mrb[26].mxu0 }
 0x4e7   :  { %9999 = vst [vmem:[#allocation50_spill] sm:$0xff] %v8618_v60  ;;  %v3897_v13 = vadd.f32 %v8618_v60, %v3881_v30  ;;  %v8621_v28 = vpop.f32.mrb[27].mxu0 }
 0x4e8   :  { %10000 = vst [vmem:[#allocation42_spill] sm:$0xff] %v8621_v28  ;;  %v3896_v8 = vadd.f32 %v3880_v61, %v8621_v28 }
 0x4eb   :  { %v8624_v32 = vpop.f32.mrb[18].mxu1 }
 0x4ec   :  { %v3885_v21 = vadd.f32 %v8624_v32, %v8490_v59  ;;  %v8628_v31 = vpop.f32.mrb[19].mxu1 }
 0x4ed   :  { %v3884_v39 = vadd.f32 %v8628_v31, %v8496_v40 }
 0x4f3   :  { %v8632_v45 = vpop.f32.mrb[20].mxu1 }
 0x4f4   :  { %v3887_v4 = vadd.f32 %v8632_v45, %v8550_v25  ;;  %v8636_v48 = vpop.f32.mrb[21].mxu1 }
 0x4f5   :  { %v3886_v9 = vadd.f32 %v8636_v48, %v8552_v10 }
 0x4fb   :  { %v8640_v56 = vpop.f32.mrb[22].mxu1 }
 0x4fc   :  { %v3889_v52 = vadd.f32 %v8640_v56, %v8554_v19  ;;  %v8644_v51 = vpop.f32.mrb[23].mxu1 }
 0x4fd   :  { %v3888_v33 = vadd.f32 %v8644_v51, %v8556_v6 }
 0x503   :  { %v8648_v58 = vpop.f32.mrb[24].mxu1 }
 0x504   :  { %v3891_v46 = vadd.f32 %v8648_v58, %v8558_v23  ;;  %v8652_v57 = vpop.f32.mrb[25].mxu1 }
 0x505   :  { %v3890_v44 = vadd.f32 %v8652_v57, %v8560_v14 }
 0x507   :  { %v8656_v3 = vpop.f32.mrb[26].mxu1 }
 0x508   :  { %10001 = vst [vmem:[#allocation11_spill] sm:$0xff] %v8656_v3  ;;  %v3909_v24 = vadd.f32 %v8656_v3, %v3893_v7  ;;  %v8659_v54 = vpop.f32.mrb[27].mxu1 }
 0x509   :  { %10002 = vst [vmem:[#allocation49_spill] sm:$0xff] %v8659_v54  ;;  %v3908_v37 = vadd.f32 %v3892_v53, %v8659_v54 }
 0x50a   :  { %v3925_v20 = vsel %vm1765_vm10, %v3909_v24, 0.0 }
 0x50b   :  { %v3924_v55 = vsel %vm1765_vm10, %v3908_v37, 0.0  ;;  %v8664_v34 = vpop.f32.mrb[28].mxu0  ;;  %v8666_v62 = vpop.f32.mrb[28].mxu1 }
 0x50c   :  { %10003 = vst [vmem:[#allocation31_spill] sm:$0xff] %v8664_v34  ;;  %10004 = vst [vmem:[#allocation34_spill] sm:$0xff] %v8666_v62  ;;  %v3926_v30 = vadd.f32 %v3925_v20, %v3924_v55  ;;  %v3899_v61 = vadd.f32 %v8664_v34, %v3883_v1  ;;  %v3911_v60 = vadd.f32 %v8666_v62, %v3895_v2  ;;  %v8670_v28 = vpop.f32.mrb[29].mxu0  ;;  %v8672_v7 = vpop.f32.mrb[29].mxu1 }
 0x50d   :  { %10005 = vst [vmem:[#allocation20_spill] sm:$0xff] %v8672_v7  ;;  %v3898_v3 = vadd.f32 %v3882_v27, %v8670_v28  ;;  %v3910_v53 = vadd.f32 %v3894_v12, %v8672_v7 }
 0x50e   :  { %v3929_v62 = vsel %vm1765_vm10, %v3911_v60, 0.0 }
 0x50f   :  { %v3927_v24 = vsel %vm1765_vm10, %v3910_v53, 0.0  ;;  %v8677_v37 = vpop.f32.mrb[30].mxu0  ;;  %v8679_v54 = vpop.f32.mrb[30].mxu1 }
 0x510   :  { %10006 = vst [vmem:[#allocation41_spill] sm:$0xff] %v8677_v37  ;;  %10007 = vst [vmem:[#allocation40_spill] sm:$0xff] %v8679_v54  ;;  %v3928_v50 = vadd.f32 %v3927_v24, %v3926_v30  ;;  %v3901_v20 = vadd.f32 %v8677_v37, %v3885_v21  ;;  %v3913_v1 = vadd.f32 %v8679_v54, %v3897_v13  ;;  %v8683_v2 = vpop.f32.mrb[31].mxu0  ;;  %v8685_v55 = vpop.f32.mrb[31].mxu1 }
 0x511   :  { %10008 = vst [vmem:[#allocation48_spill] sm:$0xff] %v8685_v55  ;;  %v3900_v27 = vadd.f32 %v3884_v39, %v8683_v2  ;;  %v3912_v12 = vadd.f32 %v3896_v8, %v8685_v55 }
 0x512   :  { %v3930_v53 = vadd.f32 %v3929_v62, %v3928_v50  ;;  %v3933_v60 = vsel %vm1765_vm10, %v3913_v1, 0.0 }
 0x513   :  { %v3931_v7 = vsel %vm1765_vm10, %v3912_v12, 0.0  ;;  %v8691_v34 = vpop.f32.mrb[32].mxu0  ;;  %v8693_v30 = vpop.f32.mrb[32].mxu1 }
 0x514   :  { %10009 = vst [vmem:[#allocation12_spill] sm:$0xff] %v8693_v30  ;;  %v3932_v21 = vadd.f32 %v3931_v7, %v3930_v53  ;;  %v3903_v13 = vadd.f32 %v8691_v34, %v3887_v4  ;;  %v3915_v24 = vadd.f32 %v8693_v30, %v3899_v61  ;;  %v8697_v54 = vpop.f32.mrb[33].mxu0  ;;  %v8699_v37 = vpop.f32.mrb[33].mxu1 }
 0x515   :  { %10010 = vst [vmem:[#allocation56_spill] sm:$0xff] %v8699_v37  ;;  %v3902_v8 = vadd.f32 %v3886_v9, %v8697_v54  ;;  %v3914_v50 = vadd.f32 %v3898_v3, %v8699_v37 }
 0x516   :  { %v3934_v39 = vadd.f32 %v3933_v60, %v3932_v21  ;;  %v3937_v9 = vsel %vm1765_vm10, %v3915_v24, 0.0 }
 0x517   :  { %v3935_v62 = vsel %vm1765_vm10, %v3914_v50, 0.0  ;;  %v8705_v12 = vpop.f32.mrb[34].mxu0  ;;  %v8707_v7 = vpop.f32.mrb[34].mxu1 }
 0x518   :  { %10011 = vst [vmem:[#allocation16_spill] sm:$0xff] %v8707_v7  ;;  %v3936_v4 = vadd.f32 %v3935_v62, %v3934_v39  ;;  %v3905_v61 = vadd.f32 %v8705_v12, %v3889_v52  ;;  %v3917_v53 = vadd.f32 %v8707_v7, %v3901_v20  ;;  %v8711_v30 = vpop.f32.mrb[35].mxu0  ;;  %v8713_v55 = vpop.f32.mrb[35].mxu1 }
 0x519   :  { %10012 = vst [vmem:[#allocation14_spill] sm:$0xff] %v8713_v55  ;;  %v3904_v3 = vadd.f32 %v3888_v33, %v8711_v30  ;;  %v3916_v1 = vadd.f32 %v3900_v27, %v8713_v55 }
 0x51a   :  { %v3938_v21 = vadd.f32 %v3937_v9, %v3936_v4  ;;  %v3941_v33 = vsel %vm1765_vm10, %v3917_v53, 0.0 }
 0x51b   :  { %v3939_v60 = vsel %vm1765_vm10, %v3916_v1, 0.0  ;;  %v8719_v50 = vpop.f32.mrb[36].mxu0  ;;  %v8721_v39 = vpop.f32.mrb[36].mxu1 }
 0x51c   :  { %10013 = vst [vmem:[#allocation17_spill] sm:$0xff] %v8721_v39  ;;  %v3940_v52 = vadd.f32 %v3939_v60, %v3938_v21  ;;  %v3907_v20 = vadd.f32 %v8719_v50, %v3891_v46  ;;  %v3919_v62 = vadd.f32 %v8721_v39, %v3903_v13  ;;  %v8725_v7 = vpop.f32.mrb[37].mxu0  ;;  %v8727_v37 = vpop.f32.mrb[37].mxu1 }
 0x51d   :  { %v3906_v27 = vadd.f32 %v3890_v44, %v8725_v7  ;;  %v3918_v24 = vadd.f32 %v3902_v8, %v8727_v37 }
 0x51e   :  { %v3942_v4 = vadd.f32 %v3941_v33, %v3940_v52  ;;  %v3945_v13 = vsel %vm1765_vm10, %v3919_v62, 0.0 }
 0x51f   :  { %v3943_v9 = vsel %vm1765_vm10, %v3918_v24, 0.0  ;;  %v8733_v1 = vpop.f32.mrb[38].mxu1 }
 0x520   :  { %v3944_v21 = vadd.f32 %v3943_v9, %v3942_v4  ;;  %v3921_v46 = vadd.f32 %v8733_v1, %v3905_v61  ;;  %v8736_v60 = vpop.f32.mrb[39].mxu1 }
 0x521   :  { %v3920_v39 = vadd.f32 %v3904_v3, %v8736_v60 }
 0x522   :  { %v3946_v55 = vadd.f32 %v3945_v13, %v3944_v21  ;;  %v3949_v24 = vsel %vm1765_vm10, %v3921_v46, 0.0 }
 0x523   :  { %v3947_v53 = vsel %vm1765_vm10, %v3920_v39, 0.0  ;;  %v8741_v44 = vpop.f32.mrb[40].mxu1 }
 0x524   :  { %v3948_v8 = vadd.f32 %v3947_v53, %v3946_v55  ;;  %v3923_v52 = vadd.f32 %v8741_v44, %v3907_v20  ;;  %v8744_v33 = vpop.f32.mrb[41].mxu1 }
 0x525   :  { %v3922_v61 = vadd.f32 %v3906_v27, %v8744_v33 }
 0x526   :  { %v3950_v4 = vadd.f32 %v3949_v24, %v3948_v8  ;;  %v3953_v3 = vsel %vm1765_vm10, %v3923_v52, 0.0 }
 0x527   :  { %v3951_v9 = vsel %vm1765_vm10, %v3922_v61, 0.0 }
 0x528   :  { %v3952_v62 = vadd.f32 %v3951_v9, %v3950_v4 }
 0x52a   :  { %v3954_v21 = vadd.f32 %v3953_v3, %v3952_v62 }
 0x52c   :  { %v3955_v13 = vrot.slane %v3954_v21, 4 }
 0x52e   :  { %v3956_v39 = vadd.f32 %v3955_v13, %v3954_v21 }
 0x530   :  { %v3957_v55 = vrot.slane %v3956_v39, 2 }
 0x531   :  { %4993 = shalt.err (!%p4990_p4)
}
 0x532   :  { %s4994_s18 = scalar_lea.hbm %s9577_s5, 2048 }
 0x533   :  { %p4995_p5 = scmp.ne.s32.totalorder %s9577_s5, %s4994_s18  ;;  %p4998_p6 = scmp.lt.u32.totalorder %s4994_s18, %s9577_s5 }
 0x535   :  { %p5000_p7 = pnand %p4998_p6, %p4995_p5 }
 0x537   :  { %5003 = shalt.err (!%p5000_p7)
}
 0x538   :  { %s5023_s3 = smov 128   ;;  %v3958_v20 = vadd.f32 %v3957_v55, %v3956_v39 }
 0x539   :  { %4321 = dma.vmem_to_hbm [thread:$0]  %s4316_s29, 2048, %s9577_s5, [#allocation4], %s5023_s3, %s5023_s3, %s5007_s20  }
 0x53a   :  { %v3959_v27 = vrot.slane %v3958_v20, 1 }
 0x53c   :  { %v3960_v46 = vadd.f32 %v3959_v27, %v3958_v20 }
 0x53e   :  { %v8763_v53 = vmul.f32 0.001953125, %v3960_v46 }
 0x540   :  { %v8767_v8 = vsub.f32 %v8568_v0, %v8763_v53  ;;  %v8771_v52 = vsub.f32 %v8562_v11, %v8763_v53  ;;  %v8775_v24 = vsub.f32 %v8580_v41, %v8763_v53  ;;  %v8779_v61 = vsub.f32 %v8574_v29, %v8763_v53 }
 0x541   :  { %v8783_v4 = vsub.f32 %v8592_v18, %v8763_v53  ;;  %v8787_v0 = vsub.f32 %v8586_v63, %v8763_v53  ;;  %v8791_v11 = vsub.f32 %v8329_v42, %v8763_v53  ;;  %v8795_v41 = vsub.f32 %v8322_v36, %v8763_v53 }
 0x542   :  { %10014 = vst [vmem:[#allocation58_spill] sm:$0xff] %v8771_v52  ;;  %10015 = vst [vmem:[#allocation35_spill] sm:$0xff] %v8775_v24  ;;  %v8799_v29 = vsub.f32 %v8496_v40, %v8763_v53  ;;  %v8803_v18 = vsub.f32 %v8490_v59, %v8763_v53  ;;  %v8807_v63 = vsub.f32 %v8552_v10, %v8763_v53 }
 0x543   :  { %10016 = vst [vmem:[#allocation8_spill] sm:$0xff] %v8779_v61  ;;  %10017 = vst [vmem:[#allocation29_spill] sm:$0xff] %v8783_v4  ;;  %v8811_v42 = vsub.f32 %v8550_v25, %v8763_v53  ;;  %v8815_v36 = vsub.f32 %v8556_v6, %v8763_v53  ;;  %v8819_v40 = vsub.f32 %v8554_v19, %v8763_v53 }
 0x544   :  { %10018 = vst [vmem:[#allocation18_spill] sm:$0xff] %v8787_v0  ;;  %10019 = vst [vmem:[#allocation23_spill] sm:$0xff] %v8791_v11  ;;  %v8823_v59 = vsub.f32 %v8560_v14, %v8763_v53  ;;  %v8827_v10 = vsub.f32 %v8558_v23, %v8763_v53  ;;  %v8831_v25 = vmul.f32 %v8767_v8, %v8767_v8 }
 0x545   :  { %10020 = vst [vmem:[#allocation15_spill] sm:$0xff] %v8795_v41  ;;  %10021 = vst [vmem:[#allocation7_spill] sm:$0xff] %v8799_v29  ;;  %v8835_v6 = vmul.f32 %v8771_v52, %v8771_v52  ;;  %v8839_v19 = vmul.f32 %v8775_v24, %v8775_v24  ;;  %v8843_v14 = vmul.f32 %v8779_v61, %v8779_v61 }
 0x546   :  { %10022 = vst [vmem:[#allocation30_spill] sm:$0xff] %v8803_v18  ;;  %10023 = vst [vmem:[#allocation19_spill] sm:$0xff] %v8807_v63  ;;  %v8847_v23 = vmul.f32 %v8783_v4, %v8783_v4  ;;  %v3984_v9 = vmul.f32 %v8787_v0, %v8787_v0  ;;  %v3985_v62 = vmul.f32 %v8791_v11, %v8791_v11 }
 0x547   :  { %10024 = vst [vmem:[#allocation36_spill] sm:$0xff] %v8811_v42  ;;  %10025 = vst [vmem:[#allocation13_spill] sm:$0xff] %v8815_v36  ;;  %v3986_v3 = vmul.f32 %v8795_v41, %v8795_v41  ;;  %v3987_v21 = vmul.f32 %v8799_v29, %v8799_v29  ;;  %v3988_v13 = vmul.f32 %v8803_v18, %v8803_v18 }
 0x548   :  { %10026 = vst [vmem:[#allocation28_spill] sm:$0xff] %v8819_v40  ;;  %10027 = vst [vmem:[#allocation57_spill] sm:$0xff] %v8823_v59  ;;  %v3989_v39 = vmul.f32 %v8807_v63, %v8807_v63  ;;  %v8863_v55 = vsub.f32 %v8570_v22, %v8763_v53  ;;  %v8867_v20 = vsub.f32 %v8564_v17, %v8763_v53 }
 0x549   :  { %10028 = vst [vmem:[#allocation25_spill] sm:$0xff] %v8827_v10  ;;  %v8871_v27 = vsub.f32 %v8582_v38, %v8763_v53  ;;  %v8875_v46 = vsub.f32 %v8576_v16, %v8763_v53  ;;  %v8879_v18 = vsub.f32 %v8594_v43, %v8763_v53  ;;  %v8883_v22 = vsub.f32 %v8588_v47, %v8763_v53 }
 0x54a   :  { %10029 = vst [vmem:[#allocation54_spill] sm:$0xff] %v8863_v55  ;;  %10030 = vst [vmem:[#allocation24_spill] sm:$0xff] %v8867_v20  ;;  %v8887_v17 = vsub.f32 %v8614_v5, %v8763_v53  ;;  %v8891_v38 = vsub.f32 %v8607_v15, %v8763_v53  ;;  %v8895_v16 = vsub.f32 %v8628_v31, %v8763_v53 }
 0x54b   :  { %10031 = vst [vmem:[#allocation46_spill] sm:$0xff] %v8871_v27  ;;  %10032 = vst [vmem:[#allocation47_spill] sm:$0xff] %v8875_v46  ;;  %v8899_v43 = vsub.f32 %v8624_v32, %v8763_v53  ;;  %v8903_v47 = vsub.f32 %v8636_v48, %v8763_v53  ;;  %v8907_v5 = vsub.f32 %v8632_v45, %v8763_v53 }
 0x54c   :  { %10033 = vst [vmem:[#allocation21_spill] sm:$0xff] %v8883_v22  ;;  %10034 = vst [vmem:[#allocation39_spill] sm:$0xff] %v8887_v17  ;;  %v8911_v15 = vsub.f32 %v8644_v51, %v8763_v53  ;;  %v8915_v31 = vsub.f32 %v8640_v56, %v8763_v53  ;;  %v8919_v32 = vsub.f32 %v8652_v57, %v8763_v53 }
 0x54d   :  { %10035 = vst [vmem:[#allocation51_spill] sm:$0xff] %v8891_v38  ;;  %10036 = vst [vmem:[#allocation55_spill] sm:$0xff] %v8895_v16  ;;  %v8923_v48 = vsub.f32 %v8648_v58, %v8763_v53  ;;  %v3990_v45 = vmul.f32 %v8811_v42, %v8811_v42  ;;  %v3991_v63 = vmul.f32 %v8815_v36, %v8815_v36 }
 0x54e   :  { %10037 = vst [vmem:[#allocation45_spill] sm:$0xff] %v8899_v43  ;;  %10038 = vst [vmem:[#allocation6_spill] sm:$0xff] %v8903_v47  ;;  %v3992_v51 = vmul.f32 %v8819_v40, %v8819_v40  ;;  %v3993_v56 = vmul.f32 %v8823_v59, %v8823_v59  ;;  %v3994_v57 = vmul.f32 %v8827_v10, %v8827_v10 }
 0x54f   :  { %10039 = vst [vmem:[#allocation9_spill] sm:$0xff] %v8907_v5  ;;  %10040 = vst [vmem:[#allocation27_spill] sm:$0xff] %v8911_v15  ;;  %v4016_v29 = vmul.f32 %v8883_v22, %v8883_v22  ;;  %v4017_v58 = vmul.f32 %v8887_v17, %v8887_v17  ;;  %v4018_v42 = vmul.f32 %v8891_v38, %v8891_v38 }
 0x550   :  { %10041 = vst [vmem:[#allocation22_spill] sm:$0xff] %v8915_v31  ;;  %10042 = vst [vmem:[#allocation53_spill] sm:$0xff] %v8919_v32  ;;  %v4019_v36 = vmul.f32 %v8895_v16, %v8895_v16  ;;  %v4020_v40 = vmul.f32 %v8899_v43, %v8899_v43  ;;  %v4021_v59 = vmul.f32 %v8903_v47, %v8903_v47 }
 0x551   :  { %10043 = vst [vmem:[#allocation33_spill] sm:$0xff] %v8923_v48  ;;  %v4022_v10 = vmul.f32 %v8907_v5, %v8907_v5  ;;  %v4023_v22 = vmul.f32 %v8911_v15, %v8911_v15  ;;  %v4024_v17 = vmul.f32 %v8915_v31, %v8915_v31  ;;  %v4025_v38 = vmul.f32 %v8919_v32, %v8919_v32 }
 0x552   :  { %v4026_v16 = vmul.f32 %v8923_v48, %v8923_v48  ;;  %v4011_v43 = vmul.f32 %v8863_v55, %v8863_v55  ;;  %v4012_v47 = vmul.f32 %v8867_v20, %v8867_v20  ;;  %v4013_v5 = vmul.f32 %v8871_v27, %v8871_v27 }
 0x553   :  { %v4014_v15 = vmul.f32 %v8875_v46, %v8875_v46  ;;  %v4015_v31 = vmul.f32 %v8879_v18, %v8879_v18  ;;  %v8967_v41 = vadd.f32 %v4016_v29, %v3984_v9  ;;  %v4033_v32 = vadd.f32 %v4017_v58, %v3985_v62  ;;  %v10048_v62 = vld [vmem:[#allocation41_spill] sm:$0xff] }
 0x554   :  { %v4034_v11 = vadd.f32 %v4018_v42, %v3986_v3  ;;  %v4035_v48 = vadd.f32 %v4019_v36, %v3987_v21  ;;  %v4036_v0 = vadd.f32 %v4020_v40, %v3988_v13  ;;  %v4037_v4 = vadd.f32 %v4021_v59, %v3989_v39  ;;  %v10044_v42 = vld [vmem:[#allocation43_spill] sm:$0xff]  ;;  %v10046_v59 = vld [vmem:[#allocation50_spill] sm:$0xff] }
 0x555   :  { %v4038_v55 = vadd.f32 %v4022_v10, %v3990_v45  ;;  %v4039_v61 = vadd.f32 %v4023_v22, %v3991_v63  ;;  %v4040_v24 = vadd.f32 %v4024_v17, %v3992_v51  ;;  %v4041_v20 = vadd.f32 %v4025_v38, %v3993_v56  ;;  %v10045_v63 = vld [vmem:[#allocation42_spill] sm:$0xff]  ;;  %v10047_v10 = vld [vmem:[#allocation31_spill] sm:$0xff] }
 0x556   :  { %v4042_v52 = vadd.f32 %v4026_v16, %v3994_v57  ;;  %v8971_v27 = vsub.f32 %v8601_v49, %v8763_v53  ;;  %v8975_v46 = vsub.f32 %v8598_v26, %v8763_v53  ;;  %v8979_v29 = vsub.f32 %v8609_v35, %v8763_v53 }
 0x557   :  { %v8983_v36 = vsub.f32 %v10044_v42, %v8763_v53  ;;  %v8987_v40 = vsub.f32 %v10045_v63, %v8763_v53  ;;  %v8991_v49 = vsub.f32 %v10046_v59, %v8763_v53  ;;  %v8995_v26 = vsub.f32 %v8670_v28, %v8763_v53 }
 0x558   :  { %v8999_v35 = vsub.f32 %v10047_v10, %v8763_v53  ;;  %v9003_v9 = vsub.f32 %v8683_v2, %v8763_v53  ;;  %v9007_v3 = vsub.f32 %v10048_v62, %v8763_v53  ;;  %v9011_v21 = vsub.f32 %v8697_v54, %v8763_v53 }
 0x559   :  { %v9015_v28 = vsub.f32 %v8691_v34, %v8763_v53  ;;  %v9019_v13 = vsub.f32 %v8711_v30, %v8763_v53  ;;  %v9023_v2 = vsub.f32 %v8705_v12, %v8763_v53  ;;  %v9027_v39 = vsub.f32 %v8725_v7, %v8763_v53 }
 0x55a   :  { %10049 = vst [vmem:[#allocation38_spill] sm:$0xff] %v9007_v3  ;;  %10050 = vst [vmem:[#allocation26_spill] sm:$0xff] %v9011_v21  ;;  %v9031_v54 = vsub.f32 %v8719_v50, %v8763_v53  ;;  %v4027_v22 = vadd.f32 %v4011_v43, %v8831_v25  ;;  %v4028_v34 = vadd.f32 %v4012_v47, %v8835_v6 }
 0x55b   :  { %10051 = vst [vmem:[#allocation44_spill] sm:$0xff] %v9015_v28  ;;  %10052 = vst [vmem:[#allocation52_spill] sm:$0xff] %v9019_v13  ;;  %v4029_v17 = vadd.f32 %v4013_v5, %v8839_v19  ;;  %v4030_v30 = vadd.f32 %v4014_v15, %v8843_v14  ;;  %v4031_v38 = vadd.f32 %v4015_v31, %v8847_v23 }
 0x55c   :  { %10053 = vst [vmem:[#allocation10_spill] sm:$0xff] %v9023_v2  ;;  %10054 = vst [vmem:[#allocation32_spill] sm:$0xff] %v9027_v39  ;;  %v4059_v12 = vmul.f32 %v8971_v27, %v8971_v27  ;;  %v4060_v7 = vmul.f32 %v8975_v46, %v8975_v46  ;;  %v4061_v50 = vmul.f32 %v8979_v29, %v8979_v29 }
 0x55d   :  { %v4062_v25 = vmul.f32 %v8983_v36, %v8983_v36  ;;  %v4063_v6 = vmul.f32 %v8987_v40, %v8987_v40  ;;  %v4064_v19 = vmul.f32 %v8991_v49, %v8991_v49  ;;  %v4065_v14 = vmul.f32 %v8995_v26, %v8995_v26 }
 0x55e   :  { %v4066_v23 = vmul.f32 %v8999_v35, %v8999_v35  ;;  %v4067_v16 = vmul.f32 %v9003_v9, %v9003_v9  ;;  %v4068_v43 = vmul.f32 %v9007_v3, %v9007_v3  ;;  %v4069_v47 = vmul.f32 %v9011_v21, %v9011_v21  ;;  %v10055_v21 = vld [vmem:[#allocation49_spill] sm:$0xff] }
 0x55f   :  { %v4070_v5 = vmul.f32 %v9015_v28, %v9015_v28  ;;  %v4071_v15 = vmul.f32 %v9019_v13, %v9019_v13  ;;  %v4072_v31 = vmul.f32 %v9023_v2, %v9023_v2  ;;  %v4073_v45 = vmul.f32 %v9027_v39, %v9027_v39  ;;  %v10056_v39 = vld [vmem:[#allocation11_spill] sm:$0xff] }
 0x560   :  { %v4074_v51 = vmul.f32 %v9031_v54, %v9031_v54  ;;  %v9070_v56 = vadd.f32 %v4065_v14, %v4033_v32  ;;  %v4082_v57 = vadd.f32 %v4066_v23, %v4034_v11  ;;  %v4083_v58 = vadd.f32 %v4067_v16, %v4035_v48  ;;  %v10057_v32 = vld [vmem:[#allocation20_spill] sm:$0xff] }
 0x561   :  { %v4084_v42 = vadd.f32 %v4068_v43, %v4036_v0  ;;  %v4085_v63 = vadd.f32 %v4069_v47, %v4037_v4  ;;  %v4086_v59 = vadd.f32 %v4070_v5, %v4038_v55  ;;  %v4087_v10 = vadd.f32 %v4071_v15, %v4039_v61  ;;  %v10058_v0 = vld [vmem:[#allocation34_spill] sm:$0xff]  ;;  %v10061_v55 = vld [vmem:[#allocation56_spill] sm:$0xff]  ;;  %v10068_v5 = vld [vmem:[#allocation17_spill] sm:$0xff] }
 0x562   :  { %v4088_v62 = vadd.f32 %v4072_v31, %v4040_v24  ;;  %v4089_v28 = vadd.f32 %v4073_v45, %v4041_v20  ;;  %v4090_v13 = vadd.f32 %v4074_v51, %v4042_v52  ;;  %v9074_v2 = vsub.f32 %v10055_v21, %v8763_v53  ;;  %v10059_v24 = vld [vmem:[#allocation48_spill] sm:$0xff] }
 0x563   :  { %v9078_v3 = vsub.f32 %v10056_v39, %v8763_v53  ;;  %v9082_v14 = vsub.f32 %v10057_v32, %v8763_v53  ;;  %v9086_v4 = vsub.f32 %v10058_v0, %v8763_v53  ;;  %v9090_v61 = vsub.f32 %v10059_v24, %v8763_v53  ;;  %v10060_v52 = vld [vmem:[#allocation40_spill] sm:$0xff]  ;;  %v10063_v39 = vld [vmem:[#allocation14_spill] sm:$0xff] }
 0x564   :  { %v9094_v11 = vsub.f32 %v10060_v52, %v8763_v53  ;;  %v9098_v20 = vsub.f32 %v10061_v55, %v8763_v53  ;;  %v10062_v48 = vld [vmem:[#allocation12_spill] sm:$0xff]  ;;  %v9106_v23 = vsub.f32 %v10063_v39, %v8763_v53  ;;  %v9114_v47 = vsub.f32 %v8727_v37, %v8763_v53 }
 0x565   :  { %v9102_v21 = vsub.f32 %v10062_v48, %v8763_v53  ;;  %v10065_v16 = vld [vmem:[#allocation16_spill] sm:$0xff]  ;;  %v9118_v15 = vsub.f32 %v10068_v5, %v8763_v53  ;;  %v9122_v31 = vsub.f32 %v8736_v60, %v8763_v53  ;;  %v9126_v45 = vsub.f32 %v8733_v1, %v8763_v53 }
 0x566   :  { %10064 = vst [vmem:[#allocation37_spill] sm:$0xff] %v9106_v23  ;;  %v9110_v43 = vsub.f32 %v10065_v16, %v8763_v53  ;;  %10067 = vst [vmem:[#allocation42_spill] sm:$0xff] %v9114_v47  ;;  %v9130_v51 = vsub.f32 %v8744_v33, %v8763_v53  ;;  %v9134_v37 = vsub.f32 %v8741_v44, %v8763_v53 }
 0x567   :  { %10069 = vst [vmem:[#allocation50_spill] sm:$0xff] %v9118_v15  ;;  %10070 = vst [vmem:[#allocation31_spill] sm:$0xff] %v9122_v31  ;;  %v4075_v32 = vadd.f32 %v4059_v12, %v4027_v22  ;;  %v4076_v0 = vadd.f32 %v4060_v7, %v4028_v34  ;;  %v4077_v24 = vadd.f32 %v4061_v50, %v4029_v17 }
 0x568   :  { %10066 = vst [vmem:[#allocation43_spill] sm:$0xff] %v9110_v43  ;;  %10071 = vst [vmem:[#allocation41_spill] sm:$0xff] %v9130_v51  ;;  %v4078_v52 = vadd.f32 %v4062_v25, %v4030_v30  ;;  %v4079_v55 = vadd.f32 %v4063_v6, %v4031_v38  ;;  %v4080_v60 = vadd.f32 %v4064_v19, %v8967_v41 }
 0x569   :  { %v4107_v48 = vmul.f32 %v9074_v2, %v9074_v2  ;;  %v4108_v1 = vmul.f32 %v9078_v3, %v9078_v3  ;;  %v4109_v33 = vmul.f32 %v9082_v14, %v9082_v14  ;;  %v4110_v44 = vmul.f32 %v9086_v4, %v9086_v4 }
 0x56a   :  { %v4114_v53 = vmul.f32 %v9102_v21, %v9102_v21  ;;  %v4115_v22 = vmul.f32 %v9106_v23, %v9106_v23  ;;  %v4116_v41 = vmul.f32 %v9110_v43, %v9110_v43  ;;  %v4117_v34 = vmul.f32 %v9114_v47, %v9114_v47 }
 0x56b   :  { %v4118_v17 = vmul.f32 %v9118_v15, %v9118_v15  ;;  %v4119_v30 = vmul.f32 %v9122_v31, %v9122_v31  ;;  %v4120_v38 = vmul.f32 %v9126_v45, %v9126_v45  ;;  %v4123_v12 = vadd.f32 %v4107_v48, %v4075_v32 }
 0x56c   :  { %v4124_v7 = vadd.f32 %v4108_v1, %v4076_v0  ;;  %v4121_v50 = vmul.f32 %v9130_v51, %v9130_v51  ;;  %v4122_v25 = vmul.f32 %v9134_v37, %v9134_v37  ;;  %v4125_v6 = vadd.f32 %v4109_v33, %v4077_v24 }
 0x56d   :  { %v4130_v19 = vadd.f32 %v4114_v53, %v4082_v57  ;;  %v4131_v39 = vadd.f32 %v4115_v22, %v4083_v58  ;;  %v4132_v16 = vadd.f32 %v4116_v41, %v4084_v42  ;;  %v4133_v5 = vadd.f32 %v4117_v34, %v4085_v63 }
 0x56e   :  { %v4134_v15 = vadd.f32 %v4118_v17, %v4086_v59  ;;  %v4135_v47 = vadd.f32 %v4119_v30, %v4087_v10  ;;  %v4136_v43 = vadd.f32 %v4120_v38, %v4088_v62  ;;  %v4137_v31 = vadd.f32 %v4121_v50, %v4089_v28 }
 0x56f   :  { %v4138_v23 = vadd.f32 %v4122_v25, %v4090_v13  ;;  %v4111_v32 = vmul.f32 %v9090_v61, %v9090_v61  ;;  %v4126_v0 = vadd.f32 %v4110_v44, %v4078_v52  ;;  %v4139_v48 = vsel %vm1765_vm10, %v4123_v12, 0.0 }
 0x570   :  { %v4140_v1 = vsel %vm1765_vm10, %v4124_v7, 0.0  ;;  %v4112_v57 = vmul.f32 %v9094_v11, %v9094_v11  ;;  %v4142_v42 = vsel %vm1765_vm10, %v4125_v6, 0.0  ;;  %v4113_v28 = vmul.f32 %v9098_v20, %v9098_v20 }
 0x571   :  { %v4141_v51 = vadd.f32 %v4140_v1, %v4139_v48  ;;  %v4127_v58 = vadd.f32 %v4111_v32, %v4079_v55  ;;  %v4144_v59 = vsel %vm1765_vm10, %v4126_v0, 0.0  ;;  %v4154_v41 = vsel %vm1765_vm10, %v4131_v39, 0.0 }
 0x572   :  { %v4128_v13 = vadd.f32 %v4112_v57, %v4080_v60  ;;  %v4129_v62 = vadd.f32 %v4113_v28, %v9070_v56  ;;  %v4156_v34 = vsel %vm1765_vm10, %v4132_v16, 0.0  ;;  %v4158_v56 = vsel %vm1765_vm10, %v4133_v5, 0.0  ;;  %v10073_v28 = vld [vmem:[#allocation35_spill] sm:$0xff] }
 0x573   :  { %v4143_v63 = vadd.f32 %v4142_v42, %v4141_v51  ;;  %v4146_v24 = vsel %vm1765_vm10, %v4127_v58, 0.0  ;;  %v4152_v51 = vsel %vm1765_vm10, %v4130_v19, 0.0  ;;  %v4160_v38 = vsel %vm1765_vm10, %v4134_v15, 0.0 }
 0x574   :  { %v4148_v33 = vsel %vm1765_vm10, %v4128_v13, 0.0  ;;  %v4150_v55 = vsel %vm1765_vm10, %v4129_v62, 0.0  ;;  %v4162_v7 = vsel %vm1765_vm10, %v4135_v47, 0.0  ;;  %v4164_v25 = vsel %vm1765_vm10, %v4136_v43, 0.0  ;;  %v10074_v13 = vld [vmem:[#allocation8_spill] sm:$0xff] }
 0x575   :  { %v4145_v10 = vadd.f32 %v4144_v59, %v4143_v63  ;;  %v4166_v19 = vsel %vm1765_vm10, %v4137_v31, 0.0  ;;  %v4168_v39 = vsel %vm1765_vm10, %v4138_v23, 0.0  ;;  %v10072_v63 = vld [vmem:[#allocation58_spill] sm:$0xff] }
 0x577   :  { %v4147_v52 = vadd.f32 %v4146_v24, %v4145_v10  ;;  %v10075_v10 = vld [vmem:[#allocation29_spill] sm:$0xff]  ;;  %v10076_v24 = vld [vmem:[#allocation18_spill] sm:$0xff] }
 0x579   :  { %v4149_v44 = vadd.f32 %v4148_v33, %v4147_v52  ;;  %v10077_v33 = vld [vmem:[#allocation23_spill] sm:$0xff] }
 0x57b   :  { %v4151_v53 = vadd.f32 %v4150_v55, %v4149_v44  ;;  %v10078_v55 = vld [vmem:[#allocation15_spill] sm:$0xff] }
 0x57d   :  { %v4153_v22 = vadd.f32 %v4152_v51, %v4151_v53  ;;  %v10079_v53 = vld [vmem:[#allocation7_spill] sm:$0xff] }
 0x57f   :  { %v4155_v60 = vadd.f32 %v4154_v41, %v4153_v22  ;;  %v10080_v22 = vld [vmem:[#allocation30_spill] sm:$0xff] }
 0x581   :  { %v4157_v17 = vadd.f32 %v4156_v34, %v4155_v60  ;;  %v10081_v60 = vld [vmem:[#allocation19_spill] sm:$0xff] }
 0x583   :  { %v4159_v30 = vadd.f32 %v4158_v56, %v4157_v17  ;;  %v10082_v17 = vld [vmem:[#allocation36_spill] sm:$0xff] }
 0x585   :  { %v4161_v12 = vadd.f32 %v4160_v38, %v4159_v30  ;;  %v10083_v30 = vld [vmem:[#allocation13_spill] sm:$0xff] }
 0x587   :  { %v4163_v50 = vadd.f32 %v4162_v7, %v4161_v12  ;;  %v10084_v12 = vld [vmem:[#allocation28_spill] sm:$0xff] }
 0x589   :  { %v4165_v6 = vadd.f32 %v4164_v25, %v4163_v50  ;;  %v10085_v50 = vld [vmem:[#allocation57_spill] sm:$0xff] }
 0x58b   :  { %v4167_v32 = vadd.f32 %v4166_v19, %v4165_v6  ;;  %v10086_v6 = vld [vmem:[#allocation25_spill] sm:$0xff] }
 0x58d   :  { %v4169_v0 = vadd.f32 %v4168_v39, %v4167_v32  ;;  %v10087_v32 = vld [vmem:[#allocation54_spill] sm:$0xff] }
 0x58f   :  { %v4170_v16 = vrot.slane %v4169_v0, 4 }
 0x591   :  { %v4171_v48 = vadd.f32 %v4170_v16, %v4169_v0  ;;  %v10088_v0 = vld [vmem:[#allocation24_spill] sm:$0xff] }
 0x593   :  { %v4172_v1 = vrot.slane %v4171_v48, 2 }
 0x595   :  { %v4173_v5 = vadd.f32 %v4172_v1, %v4171_v48  ;;  %v10089_v48 = vld [vmem:[#allocation46_spill] sm:$0xff] }
 0x597   :  { %v4174_v57 = vrot.slane %v4173_v5, 1 }
 0x599   :  { %v4175_v58 = vadd.f32 %v4174_v57, %v4173_v5  ;;  %v10090_v5 = vld [vmem:[#allocation47_spill] sm:$0xff] }
 0x59b   :  { %v4176_v15 = vmul.f32 0.001953125, %v4175_v58 }
 0x59d   :  { %v4177_v42 = vadd.f32 1e-05, %v4176_v15  ;;  %v10091_v15 = vld [vmem:[#allocation21_spill] sm:$0xff] }
 0x59f   :  { %4972 = vrsqrt.f32 %v4177_v42 }
 0x5a9   :  { %v9186_v47 = vpop.eup %4972 }
 0x5aa   :  { %v4179_v43 = vmul.f32 %v9186_v47, %v8767_v8  ;;  %v4180_v31 = vmul.f32 %v9186_v47, %v10072_v63  ;;  %v4181_v23 = vmul.f32 %v9186_v47, %v10073_v28  ;;  %v4182_v59 = vmul.f32 %v9186_v47, %v10074_v13 }
 0x5ab   :  { %v4183_v62 = vmul.f32 %v9186_v47, %v10075_v10  ;;  %v4184_v52 = vmul.f32 %v9186_v47, %v10076_v24  ;;  %v4185_v44 = vmul.f32 %v9186_v47, %v10077_v33  ;;  %v4186_v8 = vmul.f32 %v9186_v47, %v10078_v55  ;;  %v10098_v33 = vld [vmem:[#allocation27_spill] sm:$0xff]  ;;  %v10099_v55 = vld [vmem:[#allocation22_spill] sm:$0xff] }
 0x5ac   :  { %v4187_v51 = vmul.f32 %v9186_v47, %v10079_v53  ;;  %v4188_v41 = vmul.f32 %v9186_v47, %v10080_v22  ;;  %v4189_v34 = vmul.f32 %v9186_v47, %v10081_v60  ;;  %v4190_v56 = vmul.f32 %v9186_v47, %v10082_v17  ;;  %4195 = vst.msk [vmem:[%s9579_s7] sm:$0xff] %vm1765_vm10, %v4179_v43  ;;  %v10092_v43 = vld [vmem:[#allocation39_spill] sm:$0xff]  ;;  %v10100_v53 = vld [vmem:[#allocation53_spill] sm:$0xff] }
 0x5ad   :  { %4196 = vst.msk [vmem:[%s9579_s7 + $0x8] sm:$0xff] %vm1765_vm10, %v4180_v31  ;;  %4197 = vst.msk [vmem:[%s9579_s7 + $0x10] sm:$0xff] %vm1765_vm10, %v4181_v23  ;;  %v4191_v38 = vmul.f32 %v9186_v47, %v10083_v30  ;;  %v4192_v7 = vmul.f32 %v9186_v47, %v10084_v12  ;;  %v4193_v25 = vmul.f32 %v9186_v47, %v10085_v50  ;;  %v10093_v31 = vld [vmem:[#allocation51_spill] sm:$0xff]  ;;  %v10101_v22 = vld [vmem:[#allocation33_spill] sm:$0xff] }
 0x5ae   :  { %4198 = vst.msk [vmem:[%s9579_s7 + $0x18] sm:$0xff] %vm1765_vm10, %v4182_v59  ;;  %v4194_v19 = vmul.f32 %v9186_v47, %v10086_v6  ;;  %4199 = vst.msk [vmem:[%s9579_s7 + $0x20] sm:$0xff] %vm1765_vm10, %v4183_v62  ;;  %v4211_v39 = vmul.f32 %v9186_v47, %v10087_v32  ;;  %v4212_v16 = vmul.f32 %v9186_v47, %v10088_v0  ;;  %v10094_v23 = vld [vmem:[#allocation55_spill] sm:$0xff]  ;;  %v10095_v59 = vld [vmem:[#allocation45_spill] sm:$0xff] }
 0x5af   :  { %4200 = vst.msk [vmem:[%s9579_s7 + $0x28] sm:$0xff] %vm1765_vm10, %v4184_v52  ;;  %4201 = vst.msk [vmem:[%s9579_s7 + $0x30] sm:$0xff] %vm1765_vm10, %v4185_v44  ;;  %v4213_v1 = vmul.f32 %v9186_v47, %v10089_v48  ;;  %v4214_v57 = vmul.f32 %v9186_v47, %v10090_v5  ;;  %v4215_v58 = vmul.f32 %v9186_v47, %v8879_v18  ;;  %v10096_v62 = vld [vmem:[#allocation6_spill] sm:$0xff]  ;;  %v10097_v52 = vld [vmem:[#allocation9_spill] sm:$0xff] }
 0x5b0   :  { %4202 = vst.msk [vmem:[%s9579_s7 + $0x38] sm:$0xff] %vm1765_vm10, %v4186_v8  ;;  %4203 = vst.msk [vmem:[%s9579_s7 + $0x40] sm:$0xff] %vm1765_vm10, %v4187_v51  ;;  %v4216_v42 = vmul.f32 %v9186_v47, %v10091_v15  ;;  %v4217_v63 = vmul.f32 %v9186_v47, %v10092_v43  ;;  %v4218_v28 = vmul.f32 %v9186_v47, %v10093_v31  ;;  %v10107_v6 = vld [vmem:[#allocation32_spill] sm:$0xff]  ;;  %v10108_v48 = vld [vmem:[#allocation37_spill] sm:$0xff] }
 0x5b1   :  { %4204 = vst.msk [vmem:[%s9579_s7 + $0x48] sm:$0xff] %vm1765_vm10, %v4188_v41  ;;  %4205 = vst.msk [vmem:[%s9579_s7 + $0x50] sm:$0xff] %vm1765_vm10, %v4189_v34  ;;  %v4219_v13 = vmul.f32 %v9186_v47, %v10094_v23  ;;  %v4220_v10 = vmul.f32 %v9186_v47, %v10095_v59  ;;  %v4221_v24 = vmul.f32 %v9186_v47, %v10096_v62  ;;  %v10109_v5 = vld [vmem:[#allocation43_spill] sm:$0xff]  ;;  %v10113_v43 = vld [vmem:[#allocation41_spill] sm:$0xff] }
 0x5b2   :  { %4206 = vst.msk [vmem:[%s9579_s7 + $0x58] sm:$0xff] %vm1765_vm10, %v4190_v56  ;;  %4207 = vst.msk [vmem:[%s9579_s7 + $0x60] sm:$0xff] %vm1765_vm10, %v4191_v38  ;;  %v4222_v18 = vmul.f32 %v9186_v47, %v10097_v52  ;;  %v4223_v44 = vmul.f32 %v9186_v47, %v10098_v33  ;;  %v4224_v8 = vmul.f32 %v9186_v47, %v10099_v55  ;;  %v10102_v38 = vld [vmem:[#allocation38_spill] sm:$0xff] }
 0x5b3   :  { %4208 = vst.msk [vmem:[%s9579_s7 + $0x68] sm:$0xff] %vm1765_vm10, %v4192_v7  ;;  %4209 = vst.msk [vmem:[%s9579_s7 + $0x70] sm:$0xff] %vm1765_vm10, %v4193_v25  ;;  %v4225_v51 = vmul.f32 %v9186_v47, %v10100_v53  ;;  %v4226_v41 = vmul.f32 %v9186_v47, %v10101_v22  ;;  %v4244_v60 = vmul.f32 %v9186_v47, %v8971_v27  ;;  %v10103_v7 = vld [vmem:[#allocation26_spill] sm:$0xff]  ;;  %v10104_v25 = vld [vmem:[#allocation44_spill] sm:$0xff] }
 0x5b4   :  { %4210 = vst.msk [vmem:[%s9579_s7 + $0x78] sm:$0xff] %vm1765_vm10, %v4194_v19  ;;  %4540 = vst.msk [vmem:[%s9579_s7 + $0x80] sm:$0xff] %vm1765_vm10, %v4211_v39  ;;  %v4245_v34 = vmul.f32 %v9186_v47, %v8975_v46  ;;  %v4246_v17 = vmul.f32 %v9186_v47, %v8979_v29  ;;  %v4247_v56 = vmul.f32 %v9186_v47, %v8983_v36 }
 0x5b5   :  { %4541 = vst.msk [vmem:[%s9579_s7 + $0x88] sm:$0xff] %vm1765_vm10, %v4212_v16  ;;  %4542 = vst.msk [vmem:[%s9579_s7 + $0x90] sm:$0xff] %vm1765_vm10, %v4213_v1  ;;  %v4248_v27 = vmul.f32 %v9186_v47, %v8987_v40  ;;  %v4249_v46 = vmul.f32 %v9186_v47, %v8991_v49  ;;  %v4250_v29 = vmul.f32 %v9186_v47, %v8995_v26  ;;  %v10105_v49 = vld [vmem:[#allocation52_spill] sm:$0xff] }
 0x5b6   :  { %4543 = vst.msk [vmem:[%s9579_s7 + $0x98] sm:$0xff] %vm1765_vm10, %v4214_v57  ;;  %4544 = vst.msk [vmem:[%s9579_s7 + $0xa0] sm:$0xff] %vm1765_vm10, %v4215_v58  ;;  %v4251_v36 = vmul.f32 %v9186_v47, %v8999_v35  ;;  %v4252_v30 = vmul.f32 %v9186_v47, %v9003_v9  ;;  %v4253_v12 = vmul.f32 %v9186_v47, %v10102_v38  ;;  %v10106_v35 = vld [vmem:[#allocation10_spill] sm:$0xff] }
 0x5b7   :  { %4545 = vst.msk [vmem:[%s9579_s7 + $0xa8] sm:$0xff] %vm1765_vm10, %v4216_v42  ;;  %4546 = vst.msk [vmem:[%s9579_s7 + $0xb0] sm:$0xff] %vm1765_vm10, %v4217_v63  ;;  %v4254_v50 = vmul.f32 %v9186_v47, %v10103_v7  ;;  %v4255_v40 = vmul.f32 %v9186_v47, %v10104_v25  ;;  %v4256_v26 = vmul.f32 %v9186_v47, %v10105_v49  ;;  %v10110_v58 = vld [vmem:[#allocation42_spill] sm:$0xff] }
 0x5b8   :  { %4547 = vst.msk [vmem:[%s9579_s7 + $0xb8] sm:$0xff] %vm1765_vm10, %v4218_v28  ;;  %4548 = vst.msk [vmem:[%s9579_s7 + $0xc0] sm:$0xff] %vm1765_vm10, %v4219_v13  ;;  %v4257_v9 = vmul.f32 %v9186_v47, %v10106_v35  ;;  %v4258_v19 = vmul.f32 %v9186_v47, %v10107_v6  ;;  %v4259_v32 = vmul.f32 %v9186_v47, %v9031_v54  ;;  %v10111_v42 = vld [vmem:[#allocation50_spill] sm:$0xff] }
 0x5b9   :  { %4549 = vst.msk [vmem:[%s9579_s7 + $0xc8] sm:$0xff] %vm1765_vm10, %v4220_v10  ;;  %4550 = vst.msk [vmem:[%s9579_s7 + $0xd0] sm:$0xff] %vm1765_vm10, %v4221_v24  ;;  %v4277_v54 = vmul.f32 %v9186_v47, %v9074_v2  ;;  %v4278_v39 = vmul.f32 %v9186_v47, %v9078_v3  ;;  %v4279_v0 = vmul.f32 %v9186_v47, %v9082_v14 }
 0x5ba   :  { %4551 = vst.msk [vmem:[%s9579_s7 + $0xd8] sm:$0xff] %vm1765_vm10, %v4222_v18  ;;  %4552 = vst.msk [vmem:[%s9579_s7 + $0xe0] sm:$0xff] %vm1765_vm10, %v4223_v44  ;;  %v4280_v16 = vmul.f32 %v9186_v47, %v9086_v4  ;;  %v4281_v3 = vmul.f32 %v9186_v47, %v9090_v61  ;;  %v4282_v2 = vmul.f32 %v9186_v47, %v9094_v11  ;;  %v10112_v11 = vld [vmem:[#allocation31_spill] sm:$0xff] }
 0x5bb   :  { %4553 = vst.msk [vmem:[%s9579_s7 + $0xe8] sm:$0xff] %vm1765_vm10, %v4224_v8  ;;  %4554 = vst.msk [vmem:[%s9579_s7 + $0xf0] sm:$0xff] %vm1765_vm10, %v4225_v51  ;;  %v4283_v14 = vmul.f32 %v9186_v47, %v9098_v20  ;;  %v4284_v4 = vmul.f32 %v9186_v47, %v9102_v21  ;;  %v4285_v1 = vmul.f32 %v9186_v47, %v10108_v48 }
 0x5bc   :  { %4555 = vst.msk [vmem:[%s9579_s7 + $0xf8] sm:$0xff] %vm1765_vm10, %v4226_v41  ;;  %4556 = vst.msk [vmem:[%s9579_s7 + $0x100] sm:$0xff] %vm1765_vm10, %v4244_v60  ;;  %v4286_v57 = vmul.f32 %v9186_v47, %v10109_v5  ;;  %v4287_v15 = vmul.f32 %v9186_v47, %v10110_v58  ;;  %v4288_v61 = vmul.f32 %v9186_v47, %v10111_v42 }
 0x5bd   :  { %4557 = vst.msk [vmem:[%s9579_s7 + $0x108] sm:$0xff] %vm1765_vm10, %v4245_v34  ;;  %4558 = vst.msk [vmem:[%s9579_s7 + $0x110] sm:$0xff] %vm1765_vm10, %v4246_v17  ;;  %v4289_v20 = vmul.f32 %v9186_v47, %v10112_v11  ;;  %v4290_v21 = vmul.f32 %v9186_v47, %v9126_v45  ;;  %v4291_v63 = vmul.f32 %v9186_v47, %v10113_v43 }
 0x5be   :  { %4559 = vst.msk [vmem:[%s9579_s7 + $0x118] sm:$0xff] %vm1765_vm10, %v4247_v56  ;;  %4560 = vst.msk [vmem:[%s9579_s7 + $0x120] sm:$0xff] %vm1765_vm10, %v4248_v27  ;;  %v4292_v31 = vmul.f32 %v9186_v47, %v9134_v37 }
 0x5bf   :  { %4561 = vst.msk [vmem:[%s9579_s7 + $0x128] sm:$0xff] %vm1765_vm10, %v4249_v46  ;;  %4562 = vst.msk [vmem:[%s9579_s7 + $0x130] sm:$0xff] %vm1765_vm10, %v4250_v29 }
 0x5c0   :  { %4563 = vst.msk [vmem:[%s9579_s7 + $0x138] sm:$0xff] %vm1765_vm10, %v4251_v36  ;;  %4564 = vst.msk [vmem:[%s9579_s7 + $0x140] sm:$0xff] %vm1765_vm10, %v4252_v30 }
 0x5c1   :  { %4565 = vst.msk [vmem:[%s9579_s7 + $0x148] sm:$0xff] %vm1765_vm10, %v4253_v12  ;;  %4566 = vst.msk [vmem:[%s9579_s7 + $0x150] sm:$0xff] %vm1765_vm10, %v4254_v50 }
 0x5c2   :  { %4567 = vst.msk [vmem:[%s9579_s7 + $0x158] sm:$0xff] %vm1765_vm10, %v4255_v40  ;;  %4568 = vst.msk [vmem:[%s9579_s7 + $0x160] sm:$0xff] %vm1765_vm10, %v4256_v26 }
 0x5c3   :  { %4569 = vst.msk [vmem:[%s9579_s7 + $0x168] sm:$0xff] %vm1765_vm10, %v4257_v9  ;;  %4570 = vst.msk [vmem:[%s9579_s7 + $0x170] sm:$0xff] %vm1765_vm10, %v4258_v19 }
 0x5c4   :  { %4571 = vst.msk [vmem:[%s9579_s7 + $0x178] sm:$0xff] %vm1765_vm10, %v4259_v32  ;;  %4572 = vst.msk [vmem:[%s9579_s7 + $0x180] sm:$0xff] %vm1765_vm10, %v4277_v54 }
 0x5c5   :  { %4573 = vst.msk [vmem:[%s9579_s7 + $0x188] sm:$0xff] %vm1765_vm10, %v4278_v39  ;;  %4574 = vst.msk [vmem:[%s9579_s7 + $0x190] sm:$0xff] %vm1765_vm10, %v4279_v0 }
 0x5c6   :  { %4575 = vst.msk [vmem:[%s9579_s7 + $0x198] sm:$0xff] %vm1765_vm10, %v4280_v16  ;;  %4576 = vst.msk [vmem:[%s9579_s7 + $0x1a0] sm:$0xff] %vm1765_vm10, %v4281_v3 }
 0x5c7   :  { %4577 = vst.msk [vmem:[%s9579_s7 + $0x1a8] sm:$0xff] %vm1765_vm10, %v4282_v2  ;;  %4578 = vst.msk [vmem:[%s9579_s7 + $0x1b0] sm:$0xff] %vm1765_vm10, %v4283_v14 }
 0x5c8   :  { %4579 = vst.msk [vmem:[%s9579_s7 + $0x1b8] sm:$0xff] %vm1765_vm10, %v4284_v4  ;;  %4580 = vst.msk [vmem:[%s9579_s7 + $0x1c0] sm:$0xff] %vm1765_vm10, %v4285_v1 }
 0x5c9   :  { %4581 = vst.msk [vmem:[%s9579_s7 + $0x1c8] sm:$0xff] %vm1765_vm10, %v4286_v57  ;;  %4582 = vst.msk [vmem:[%s9579_s7 + $0x1d0] sm:$0xff] %vm1765_vm10, %v4287_v15 }
 0x5ca   :  { %4583 = vst.msk [vmem:[%s9579_s7 + $0x1d8] sm:$0xff] %vm1765_vm10, %v4288_v61  ;;  %4584 = vst.msk [vmem:[%s9579_s7 + $0x1e0] sm:$0xff] %vm1765_vm10, %v4289_v20 }
 0x5cb   :  { %4585 = vst.msk [vmem:[%s9579_s7 + $0x1e8] sm:$0xff] %vm1765_vm10, %v4290_v21  ;;  %4586 = vst.msk [vmem:[%s9579_s7 + $0x1f0] sm:$0xff] %vm1765_vm10, %v4291_v63 }
 0x5cc   :  { %4587 = vst.msk [vmem:[%s9579_s7 + $0x1f8] sm:$0xff] %vm1765_vm10, %v4292_v31 }
 0x5cd   :  { %5004 = dma.done.wait [#allocation4], 2048  }
 0x5ce   :  { %5005 = vsyncadd [#allocation4], 4294965248 }
 0x5cf   :  { %4333 = vsyncpa [#allocation4], 1 }

</bundles_post_ra>
